<compile_context>
chip_gen: v5e
topology: v5e:2x2
jax: 0.10.0
libtpu: 0.0.40
codegen_flags: <defaults>
</compile_context>

<pallas_src>
import numpy as np

import jax
import jax.numpy as jnp
from jax import lax
from jax.experimental import pallas as pl
from jax.experimental.pallas import tpu as pltpu


# ----------------------------------------------------------------------------
# Pallas kernel: fused BiFPN weighted-sum prologue + 3x3 conv with in-VMEM
# im2col (9 shifted slices -> 9 accumulating MXU dots).
# ----------------------------------------------------------------------------
def _make_conv3x3_kernel(n_inputs, H, W, Cin, Cout):
    """Kernel factory.  Per grid step (one image of the batch):

      in_refs[i] : (1, H+2, W+2, Cin)  bf16, zero-padded, pre-scaled by its
                   BiFPN fusion weight (scaling fuses into the producer in XLA).
      w_ref      : (9, Cin, Cout)      bf16 dense 3x3 weight, taps major; the
                   1/sum(fusion_w) scale is already folded in (conv is linear).
      o_ref      : (1, H*W, Cout)      f32 output rows.
    """

    def kernel(*refs):
        in_refs = refs[:n_inputs]
        w_ref = refs[n_inputs]
        o_ref = refs[n_inputs + 1]

        # Fused weighted-sum prologue, in f32 (v5e VPU has no bf16).
        x = in_refs[0][0].astype(jnp.float32)
        for r in in_refs[1:]:
            x = x + r[0].astype(jnp.float32)

        # In-kernel im2col: the halo tile lives in VMEM; each of the 9 taps is
        # a static shifted slice feeding one accumulating MXU dot.  No patch
        # matrix ever touches HBM.
        acc = None
        for dy in range(3):
            for dx in range(3):
                tap = x[dy:dy + H, dx:dx + W, :].reshape(H * W, Cin)
                d = jnp.dot(tap.astype(jnp.bfloat16), w_ref[3 * dy + dx],
                            preferred_element_type=jnp.float32)
                acc = d if acc is None else acc + d

        # TODO(synk): at production channel counts emit the result transposed
        # ((Cout, rows) with rows lane-dense) to avoid masked narrow stores;
        # at Cout=8/32 on these 256-row tiles the masked-vst cost is noise.
        o_ref[0] = acc

    return kernel


def _route_to_pallas(Nb, H, W, Cin, Cout):
    # Size-based routing floor (perf review): below this, per-call launch plus
    # ~0.35 us/grid-step overhead dwarfs the ~1-2 MFLOP conv, and XLA can fuse
    # the matmul with the surrounding BiFPN glue instead.
    M = Nb * H * W
    K = 9 * Cin
    return (M >= 512) and (K >= 128) and (H % 8 == 0) and (W % 8 == 0)


def conv3x3_fused(inputs, scales, w):
    """Dense 3x3 conv (stride 1, pad 1, no bias) of sum_i scales[i]*inputs[i].

    inputs: list of NHWC f32 tensors with identical shape.
    scales: list of scalars (None entries mean "no scaling").
    w:      (3, 3, Cin, Cout) f32 dense weight.
    Routes to the fused Pallas kernel when large enough, else stays in XLA.
    """
    Nb, H, W, Cin = inputs[0].shape
    Cout = w.shape[-1]

    if not _route_to_pallas(Nb, H, W, Cin, Cout):
        x = None
        for xi, si in zip(inputs, scales):
            t = xi if si is None else si * xi
            x = t if x is None else x + t
        return lax.conv_general_dilated(
            x, w, window_strides=(1, 1), padding="SAME",
            dimension_numbers=("NHWC", "HWIO", "NHWC"))

    # ---- Pallas path -------------------------------------------------------
    # Scale in f32, cast once to bf16 (so only bf16 activations are
    # materialized), pad the 1-px halo; the sum itself happens in-kernel.
    padded = []
    for xi, si in zip(inputs, scales):
        t = xi if si is None else si * xi
        padded.append(jnp.pad(t.astype(jnp.bfloat16),
                              ((0, 0), (1, 1), (1, 1), (0, 0))))
    wf = w.reshape(9, Cin, Cout).astype(jnp.bfloat16)

    Hp, Wp = H + 2, W + 2
    kernel = _make_conv3x3_kernel(len(inputs), H, W, Cin, Cout)
    in_block = pl.BlockSpec((1, Hp, Wp, Cin), lambda n: (n, 0, 0, 0))
    cost = pl.CostEstimate(
        flops=2 * Nb * H * W * 9 * Cin * Cout,
        transcendentals=0,
        bytes_accessed=(len(inputs) * Nb * Hp * Wp * Cin * 2
                        + 9 * Cin * Cout * 2
                        + Nb * H * W * Cout * 4),
    )

    out = pl.pallas_call(
        kernel,
        out_shape=jax.ShapeDtypeStruct((Nb, H * W, Cout), jnp.float32),
        grid_spec=pltpu.PrefetchScalarGridSpec(
            num_scalar_prefetch=0,
            # Grid over batch: >=2 programs at batch>=2 feeds both v7x
            # TensorCores; on single-TC v5e/v6e the extra serial step is <1 us.
            grid=(Nb,),
            in_specs=[in_block] * len(inputs) + [
                # Constant block index over the batch sweep: the weight is
                # DMA'd once per call, not once per grid step.
                pl.BlockSpec((9, Cin, Cout), lambda n: (0, 0, 0)),
            ],
            out_specs=pl.BlockSpec((1, H * W, Cout), lambda n: (n, 0, 0)),
        ),
        compiler_params=pltpu.CompilerParams(
            dimension_semantics=("parallel",),
            # Per-step footprint << 1 MiB; default scoped VMEM limit is fine on
            # every generation, including the 64 MiB v7x.
        ),
        cost_estimate=cost,
    )(*padded, wf)
    return out.reshape(Nb, H, W, Cout)


def sep_weight(dw, pw, scale):
    """Depthwise 3x3 (groups=C) followed by pointwise 1x1 == dense 3x3 conv
    with a per-tap rank-1 weight; the BiFPN 1/sum(w) scale folds in."""
    return dw[:, :, :, None] * pw[None, None, :, :] * scale


# ----------------------------------------------------------------------------
# Small XLA-routed ops (tiny at this size; XLA fuses them with the glue)
# ----------------------------------------------------------------------------
def conv1x1(x, w):
    """x: (N,H,W,Cin), w: (Cin,Cout).  K<=64 here -> stays in XLA."""
    return jnp.einsum("nhwc,cd->nhwd", x, w)


def conv_transpose2x2(x, w, b):
    """nn.ConvTranspose2d(Cin, Cout, 2, 2).  x: (N,H,W,Cin), w: (Cin,Cout,2,2).
    K=8 at this size -> left to XLA."""
    Nb, H, W, Cin = x.shape
    Cout = w.shape[1]
    wf = jnp.transpose(w, (0, 2, 3, 1)).reshape(Cin, 4 * Cout)  # cols = (a,b,co)
    y = jnp.dot(x.reshape(Nb * H * W, Cin), wf) + jnp.tile(b, 4)
    y = y.reshape(Nb, H, W, 2, 2, Cout)
    y = jnp.transpose(y, (0, 1, 3, 2, 4, 5)).reshape(Nb, 2 * H, 2 * W, Cout)
    return y


def relu(x):
    return jnp.maximum(x, 0.0)


def bn_train(x, gamma, beta, eps=1e-5):
    # BatchNorm2d in training mode: batch statistics over (N,H,W), biased var.
    mean = jnp.mean(x, axis=(0, 1, 2), keepdims=True)
    var = jnp.mean((x - mean) ** 2, axis=(0, 1, 2), keepdims=True)
    return (x - mean) * lax.rsqrt(var + eps) * gamma + beta


def up_nearest(x, s):
    return jnp.repeat(jnp.repeat(x, s, axis=1), s, axis=2)


def down_half(x):
    # F.interpolate(scale_factor=0.5, mode='nearest') -> even indices.
    return x[:, ::2, ::2, :]


# ----------------------------------------------------------------------------
# Parameters (deterministic synthetic init, kaiming-style scaling)
# ----------------------------------------------------------------------------
def init_params(key, in_channels=(8, 16, 32, 64), inner=32):
    outer = inner // 4
    keys = iter(jax.random.split(key, 64))

    def kdense(kh, kw, cin, cout):
        fan_in = kh * kw * cin
        return (jax.random.normal(next(keys), (kh, kw, cin, cout), jnp.float32)
                * np.sqrt(2.0 / fan_in))

    def k1x1(cin, cout):
        return kdense(1, 1, cin, cout)[0, 0]

    def kdepthwise(c):   # Conv2d(c, c, 3, groups=c): per-channel fan_in = 9
        return (jax.random.normal(next(keys), (3, 3, c), jnp.float32)
                * np.sqrt(2.0 / 9.0))

    p = {}
    # input 1x1 projections (bias=False)
    p["in5"] = k1x1(in_channels[3], inner)
    p["in4"] = k1x1(in_channels[2], inner)
    p["in3"] = k1x1(in_channels[1], inner)
    p["in2"] = k1x1(in_channels[0], inner)

    # BiFPN nodes: depthwise 3x3 + pointwise 1x1 (bias=False)
    for name in ["pt3", "pt4", "out5_d", "out4_d", "out3_d", "out2_d"]:
        p[name + "_dw"] = kdepthwise(inner)
        p[name + "_pw"] = k1x1(inner, inner)

    # BiFPN fusion weights (torch.Tensor([1,...]))
    p["pt4_w"] = jnp.ones((2,), jnp.float32)
    p["pt3_w"] = jnp.ones((2,), jnp.float32)
    p["out2_w"] = jnp.ones((2,), jnp.float32)
    p["out3_w"] = jnp.ones((3,), jnp.float32)
    p["out4_w"] = jnp.ones((3,), jnp.float32)
    p["out5_w"] = jnp.ones((2,), jnp.float32)

    # p2..p5 heads: 1x1 conv inner -> inner//4 (bias=False)
    p["p5"] = k1x1(inner, outer)
    p["p4"] = k1x1(inner, outer)
    p["p3"] = k1x1(inner, outer)
    p["p2"] = k1x1(inner, outer)

    # binarize head
    p["bin_conv"] = kdense(3, 3, inner, outer)
    p["bin_bn1_g"] = jnp.ones((outer,), jnp.float32)
    p["bin_bn1_b"] = jnp.full((outer,), 1e-4, jnp.float32)
    p["bin_ct1_w"] = (jax.random.normal(next(keys), (outer, outer, 2, 2), jnp.float32)
                      * np.sqrt(2.0 / (outer * 4)))
    p["bin_ct1_b"] = jnp.zeros((outer,), jnp.float32)
    p["bin_bn2_g"] = jnp.ones((outer,), jnp.float32)
    p["bin_bn2_b"] = jnp.full((outer,), 1e-4, jnp.float32)
    p["bin_ct2_w"] = (jax.random.normal(next(keys), (outer, 1, 2, 2), jnp.float32)
                      * np.sqrt(2.0 / (outer * 4)))
    p["bin_ct2_b"] = jnp.zeros((1,), jnp.float32)
    return p


# ----------------------------------------------------------------------------
# Sub-modules
# ----------------------------------------------------------------------------
def bifpn(p, in2, in3, in4, in5):
    w = relu(p["pt4_w"]); s = 1.0 / jnp.sum(w)
    pt4 = conv3x3_fused([in4, up_nearest(in5, 2)], [w[0], w[1]],
                        sep_weight(p["pt4_dw"], p["pt4_pw"], s))
    w = relu(p["pt3_w"]); s = 1.0 / jnp.sum(w)     # pt3_w[0] used twice: reference bug
    pt3 = conv3x3_fused([in3, up_nearest(pt4, 2)], [w[0], w[0]],
                        sep_weight(p["pt3_dw"], p["pt3_pw"], s))
    w = relu(p["out2_w"]); s = 1.0 / jnp.sum(w)    # out2_w[0] used twice: reference bug
    b2 = conv3x3_fused([in2, up_nearest(pt3, 2)], [w[0], w[0]],
                       sep_weight(p["out2_d_dw"], p["out2_d_pw"], s))
    w = relu(p["out3_w"]); s = 1.0 / jnp.sum(w)
    b3 = conv3x3_fused([in3, pt3, down_half(b2)], [w[0], w[1], w[2]],
                       sep_weight(p["out3_d_dw"], p["out3_d_pw"], s))
    w = relu(p["out4_w"]); s = 1.0 / jnp.sum(w)
    b4 = conv3x3_fused([in4, pt4, down_half(b3)], [w[0], w[1], w[2]],
                       sep_weight(p["out4_d_dw"], p["out4_d_pw"], s))
    w = relu(p["out5_w"]); s = 1.0 / jnp.sum(w)
    b5 = conv3x3_fused([in5, down_half(b4)], [w[0], w[1]],
                       sep_weight(p["out5_d_dw"], p["out5_d_pw"], s))
    return b2, b3, b4, b5


def binarize(fuse, p):
    x = conv3x3_fused([fuse], [None], p["bin_conv"])   # Pallas at this size
    # TODO(synk): fusing the post-stats BN scale/shift + ReLU into the conv
    # epilogue needs a two-pass kernel (batch stats are a cross-image
    # reduction); left in XLA here.
    x = relu(bn_train(x, p["bin_bn1_g"], p["bin_bn1_b"]))
    x = conv_transpose2x2(x, p["bin_ct1_w"], p["bin_ct1_b"])
    x = relu(bn_train(x, p["bin_bn2_g"], p["bin_bn2_b"]))
    x = conv_transpose2x2(x, p["bin_ct2_w"], p["bin_ct2_b"])
    return jax.nn.sigmoid(x)


# ----------------------------------------------------------------------------
# Full forward (self.training == True default, adaptive == False)
# ----------------------------------------------------------------------------
def forward(params, c2, c3, c4, c5):
    to_nhwc = lambda x: jnp.transpose(x, (0, 2, 3, 1))
    to_nchw = lambda x: jnp.transpose(x, (0, 3, 1, 2))

    # 1x1 input projections: K = 8..64 here -> below the routing floor, XLA.
    in5 = conv1x1(to_nhwc(c5), params["in5"])
    in4 = conv1x1(to_nhwc(c4), params["in4"])
    in3 = conv1x1(to_nhwc(c3), params["in3"])
    in2 = conv1x1(to_nhwc(c2), params["in2"])

    b2, b3, b4, b5 = bifpn(params, in2, in3, in4, in5)

    # p2..p5 heads consume different inputs, so their weights can't be batched
    # along N into one matmul; micro 1x1s left to XLA fusion.
    p5 = up_nearest(conv1x1(b5, params["p5"]), 8)
    p4 = up_nearest(conv1x1(b4, params["p4"]), 4)
    p3 = up_nearest(conv1x1(b3, params["p3"]), 2)
    p2 = conv1x1(b2, params["p2"])
    fuse = jnp.concatenate([p5, p4, p3, p2], axis=-1)

    binary = binarize(fuse, params)
    # TODO(synk): adaptive/serial thresh branch not exercised (adaptive=False).
    return {"binary": to_nchw(binary)}


# ----------------------------------------------------------------------------
if __name__ == "__main__":
    # Small, self-consistent shapes: in_channels=[8,16,32,64], inner_channels=32.
    key = jax.random.PRNGKey(0)
    pkey, dkey = jax.random.split(key)
    params = init_params(pkey, in_channels=(8, 16, 32, 64), inner=32)

    ks = jax.random.split(dkey, 4)
    c2 = jax.random.normal(ks[0], (2, 8, 16, 16), jnp.float32)   # NCHW
    c3 = jax.random.normal(ks[1], (2, 16, 8, 8), jnp.float32)
    c4 = jax.random.normal(ks[2], (2, 32, 4, 4), jnp.float32)
    c5 = jax.random.normal(ks[3], (2, 64, 2, 2), jnp.float32)

    fwd = jax.jit(forward)
    out = fwd(params, c2, c3, c4, c5)
    out = jax.tree_util.tree_map(jax.block_until_ready, out)

    assert set(out.keys()) == {"binary"}, out.keys()
    assert out["binary"].shape == (2, 1, 64, 64), out["binary"].shape
    assert bool(jnp.all(jnp.isfinite(out["binary"])))
    print("KERNEL_OK")
</pallas_src>

<mosaic_0001>
module attributes {stable_mosaic.version = 11 : i64} {
  func.func @kernel(%arg0: i32, %arg1: memref<1x18x18x32xbf16, #tpu.memory_space<vmem>>, %arg2: memref<1x18x18x32xbf16, #tpu.memory_space<vmem>>, %arg3: memref<9x32x32xbf16, #tpu.memory_space<vmem>>, %arg4: memref<1x256x32xf32, #tpu.memory_space<vmem>>) attributes {dimension_semantics = [#tpu.dimension_semantics<parallel>], iteration_bounds = array<i64: 2>, scalar_prefetch = 0 : i64, scratch_operands = 0 : i64, tpu.core_type = #tpu.core_type<tc>, window_params = [{transform_indices = @transform_0, window_bounds = array<i64: 1, 18, 18, 32>}, {transform_indices = @transform_1, window_bounds = array<i64: 1, 18, 18, 32>}, {pipeline_mode = #tpu.pipeline_mode<synchronous>, transform_indices = @transform_2, window_bounds = array<i64: 9, 32, 32>}, {transform_indices = @transform_3, window_bounds = array<i64: 1, 256, 32>}]} {
    %c0 = arith.constant 0 : index
    %c0_0 = arith.constant 0 : index
    %c0_1 = arith.constant 0 : index
    %c0_2 = arith.constant 0 : index
    %0 = vector.load %arg1[%c0, %c0_0, %c0_1, %c0_2] : memref<1x18x18x32xbf16, #tpu.memory_space<vmem>>, vector<1x18x18x32xbf16>
    %1 = vector.shape_cast %0 : vector<1x18x18x32xbf16> to vector<18x18x32xbf16>
    %2 = arith.extf %1 : vector<18x18x32xbf16> to vector<18x18x32xf32>
    %c0_3 = arith.constant 0 : index
    %c0_4 = arith.constant 0 : index
    %c0_5 = arith.constant 0 : index
    %c0_6 = arith.constant 0 : index
    %3 = vector.load %arg2[%c0_3, %c0_4, %c0_5, %c0_6] : memref<1x18x18x32xbf16, #tpu.memory_space<vmem>>, vector<1x18x18x32xbf16>
    %4 = vector.shape_cast %3 : vector<1x18x18x32xbf16> to vector<18x18x32xbf16>
    %5 = arith.extf %4 : vector<18x18x32xbf16> to vector<18x18x32xf32>
    %6 = arith.addf %2, %5 : vector<18x18x32xf32>
    %7 = vector.extract_strided_slice %6 {offsets = [0, 0, 0], sizes = [16, 16, 32], strides = [1, 1, 1]} : vector<18x18x32xf32> to vector<16x16x32xf32>
    %8 = vector.shape_cast %7 : vector<16x16x32xf32> to vector<256x32xf32>
    %9 = arith.truncf %8 : vector<256x32xf32> to vector<256x32xbf16>
    %c0_7 = arith.constant 0 : index
    %c0_8 = arith.constant 0 : index
    %c0_9 = arith.constant 0 : index
    %10 = vector.load %arg3[%c0_7, %c0_8, %c0_9] : memref<9x32x32xbf16, #tpu.memory_space<vmem>>, vector<1x32x32xbf16>
    %11 = vector.shape_cast %10 : vector<1x32x32xbf16> to vector<32x32xbf16>
    %cst = arith.constant dense<0.000000e+00> : vector<256x32xf32>
    %12 = tpu.matmul %9, %11, %cst {dimension_numbers = #tpu.dot_dimension_numbers<[1], [0], [0], [1], [0, 0, 1, 1], [], []>} : vector<256x32xbf16>, vector<32x32xbf16>, vector<256x32xf32> -> vector<256x32xf32>
    %13 = vector.extract_strided_slice %6 {offsets = [0, 1, 0], sizes = [16, 16, 32], strides = [1, 1, 1]} : vector<18x18x32xf32> to vector<16x16x32xf32>
    %14 = vector.shape_cast %13 : vector<16x16x32xf32> to vector<256x32xf32>
    %15 = arith.truncf %14 : vector<256x32xf32> to vector<256x32xbf16>
    %c1 = arith.constant 1 : index
    %c0_10 = arith.constant 0 : index
    %c0_11 = arith.constant 0 : index
    %16 = vector.load %arg3[%c1, %c0_10, %c0_11] : memref<9x32x32xbf16, #tpu.memory_space<vmem>>, vector<1x32x32xbf16>
    %17 = vector.shape_cast %16 : vector<1x32x32xbf16> to vector<32x32xbf16>
    %cst_12 = arith.constant dense<0.000000e+00> : vector<256x32xf32>
    %18 = tpu.matmul %15, %17, %cst_12 {dimension_numbers = #tpu.dot_dimension_numbers<[1], [0], [0], [1], [0, 0, 1, 1], [], []>} : vector<256x32xbf16>, vector<32x32xbf16>, vector<256x32xf32> -> vector<256x32xf32>
    %19 = arith.addf %12, %18 : vector<256x32xf32>
    %20 = vector.extract_strided_slice %6 {offsets = [0, 2, 0], sizes = [16, 16, 32], strides = [1, 1, 1]} : vector<18x18x32xf32> to vector<16x16x32xf32>
    %21 = vector.shape_cast %20 : vector<16x16x32xf32> to vector<256x32xf32>
    %22 = arith.truncf %21 : vector<256x32xf32> to vector<256x32xbf16>
    %c2 = arith.constant 2 : index
    %c0_13 = arith.constant 0 : index
    %c0_14 = arith.constant 0 : index
    %23 = vector.load %arg3[%c2, %c0_13, %c0_14] : memref<9x32x32xbf16, #tpu.memory_space<vmem>>, vector<1x32x32xbf16>
    %24 = vector.shape_cast %23 : vector<1x32x32xbf16> to vector<32x32xbf16>
    %cst_15 = arith.constant dense<0.000000e+00> : vector<256x32xf32>
    %25 = tpu.matmul %22, %24, %cst_15 {dimension_numbers = #tpu.dot_dimension_numbers<[1], [0], [0], [1], [0, 0, 1, 1], [], []>} : vector<256x32xbf16>, vector<32x32xbf16>, vector<256x32xf32> -> vector<256x32xf32>
    %26 = arith.addf %19, %25 : vector<256x32xf32>
    %27 = vector.extract_strided_slice %6 {offsets = [1, 0, 0], sizes = [16, 16, 32], strides = [1, 1, 1]} : vector<18x18x32xf32> to vector<16x16x32xf32>
    %28 = vector.shape_cast %27 : vector<16x16x32xf32> to vector<256x32xf32>
    %29 = arith.truncf %28 : vector<256x32xf32> to vector<256x32xbf16>
    %c3 = arith.constant 3 : index
    %c0_16 = arith.constant 0 : index
    %c0_17 = arith.constant 0 : index
    %30 = vector.load %arg3[%c3, %c0_16, %c0_17] : memref<9x32x32xbf16, #tpu.memory_space<vmem>>, vector<1x32x32xbf16>
    %31 = vector.shape_cast %30 : vector<1x32x32xbf16> to vector<32x32xbf16>
    %cst_18 = arith.constant dense<0.000000e+00> : vector<256x32xf32>
    %32 = tpu.matmul %29, %31, %cst_18 {dimension_numbers = #tpu.dot_dimension_numbers<[1], [0], [0], [1], [0, 0, 1, 1], [], []>} : vector<256x32xbf16>, vector<32x32xbf16>, vector<256x32xf32> -> vector<256x32xf32>
    %33 = arith.addf %26, %32 : vector<256x32xf32>
    %34 = vector.extract_strided_slice %6 {offsets = [1, 1, 0], sizes = [16, 16, 32], strides = [1, 1, 1]} : vector<18x18x32xf32> to vector<16x16x32xf32>
    %35 = vector.shape_cast %34 : vector<16x16x32xf32> to vector<256x32xf32>
    %36 = arith.truncf %35 : vector<256x32xf32> to vector<256x32xbf16>
    %c4 = arith.constant 4 : index
    %c0_19 = arith.constant 0 : index
    %c0_20 = arith.constant 0 : index
    %37 = vector.load %arg3[%c4, %c0_19, %c0_20] : memref<9x32x32xbf16, #tpu.memory_space<vmem>>, vector<1x32x32xbf16>
    %38 = vector.shape_cast %37 : vector<1x32x32xbf16> to vector<32x32xbf16>
    %cst_21 = arith.constant dense<0.000000e+00> : vector<256x32xf32>
    %39 = tpu.matmul %36, %38, %cst_21 {dimension_numbers = #tpu.dot_dimension_numbers<[1], [0], [0], [1], [0, 0, 1, 1], [], []>} : vector<256x32xbf16>, vector<32x32xbf16>, vector<256x32xf32> -> vector<256x32xf32>
    %40 = arith.addf %33, %39 : vector<256x32xf32>
    %41 = vector.extract_strided_slice %6 {offsets = [1, 2, 0], sizes = [16, 16, 32], strides = [1, 1, 1]} : vector<18x18x32xf32> to vector<16x16x32xf32>
    %42 = vector.shape_cast %41 : vector<16x16x32xf32> to vector<256x32xf32>
    %43 = arith.truncf %42 : vector<256x32xf32> to vector<256x32xbf16>
    %c5 = arith.constant 5 : index
    %c0_22 = arith.constant 0 : index
    %c0_23 = arith.constant 0 : index
    %44 = vector.load %arg3[%c5, %c0_22, %c0_23] : memref<9x32x32xbf16, #tpu.memory_space<vmem>>, vector<1x32x32xbf16>
    %45 = vector.shape_cast %44 : vector<1x32x32xbf16> to vector<32x32xbf16>
    %cst_24 = arith.constant dense<0.000000e+00> : vector<256x32xf32>
    %46 = tpu.matmul %43, %45, %cst_24 {dimension_numbers = #tpu.dot_dimension_numbers<[1], [0], [0], [1], [0, 0, 1, 1], [], []>} : vector<256x32xbf16>, vector<32x32xbf16>, vector<256x32xf32> -> vector<256x32xf32>
    %47 = arith.addf %40, %46 : vector<256x32xf32>
    %48 = vector.extract_strided_slice %6 {offsets = [2, 0, 0], sizes = [16, 16, 32], strides = [1, 1, 1]} : vector<18x18x32xf32> to vector<16x16x32xf32>
    %49 = vector.shape_cast %48 : vector<16x16x32xf32> to vector<256x32xf32>
    %50 = arith.truncf %49 : vector<256x32xf32> to vector<256x32xbf16>
    %c6 = arith.constant 6 : index
    %c0_25 = arith.constant 0 : index
    %c0_26 = arith.constant 0 : index
    %51 = vector.load %arg3[%c6, %c0_25, %c0_26] : memref<9x32x32xbf16, #tpu.memory_space<vmem>>, vector<1x32x32xbf16>
    %52 = vector.shape_cast %51 : vector<1x32x32xbf16> to vector<32x32xbf16>
    %cst_27 = arith.constant dense<0.000000e+00> : vector<256x32xf32>
    %53 = tpu.matmul %50, %52, %cst_27 {dimension_numbers = #tpu.dot_dimension_numbers<[1], [0], [0], [1], [0, 0, 1, 1], [], []>} : vector<256x32xbf16>, vector<32x32xbf16>, vector<256x32xf32> -> vector<256x32xf32>
    %54 = arith.addf %47, %53 : vector<256x32xf32>
    %55 = vector.extract_strided_slice %6 {offsets = [2, 1, 0], sizes = [16, 16, 32], strides = [1, 1, 1]} : vector<18x18x32xf32> to vector<16x16x32xf32>
    %56 = vector.shape_cast %55 : vector<16x16x32xf32> to vector<256x32xf32>
    %57 = arith.truncf %56 : vector<256x32xf32> to vector<256x32xbf16>
    %c7 = arith.constant 7 : index
    %c0_28 = arith.constant 0 : index
    %c0_29 = arith.constant 0 : index
    %58 = vector.load %arg3[%c7, %c0_28, %c0_29] : memref<9x32x32xbf16, #tpu.memory_space<vmem>>, vector<1x32x32xbf16>
    %59 = vector.shape_cast %58 : vector<1x32x32xbf16> to vector<32x32xbf16>
    %cst_30 = arith.constant dense<0.000000e+00> : vector<256x32xf32>
    %60 = tpu.matmul %57, %59, %cst_30 {dimension_numbers = #tpu.dot_dimension_numbers<[1], [0], [0], [1], [0, 0, 1, 1], [], []>} : vector<256x32xbf16>, vector<32x32xbf16>, vector<256x32xf32> -> vector<256x32xf32>
    %61 = arith.addf %54, %60 : vector<256x32xf32>
    %62 = vector.extract_strided_slice %6 {offsets = [2, 2, 0], sizes = [16, 16, 32], strides = [1, 1, 1]} : vector<18x18x32xf32> to vector<16x16x32xf32>
    %63 = vector.shape_cast %62 : vector<16x16x32xf32> to vector<256x32xf32>
    %64 = arith.truncf %63 : vector<256x32xf32> to vector<256x32xbf16>
    %c8 = arith.constant 8 : index
    %c0_31 = arith.constant 0 : index
    %c0_32 = arith.constant 0 : index
    %65 = vector.load %arg3[%c8, %c0_31, %c0_32] : memref<9x32x32xbf16, #tpu.memory_space<vmem>>, vector<1x32x32xbf16>
    %66 = vector.shape_cast %65 : vector<1x32x32xbf16> to vector<32x32xbf16>
    %cst_33 = arith.constant dense<0.000000e+00> : vector<256x32xf32>
    %67 = tpu.matmul %64, %66, %cst_33 {dimension_numbers = #tpu.dot_dimension_numbers<[1], [0], [0], [1], [0, 0, 1, 1], [], []>} : vector<256x32xbf16>, vector<32x32xbf16>, vector<256x32xf32> -> vector<256x32xf32>
    %68 = arith.addf %61, %67 : vector<256x32xf32>
    %c0_34 = arith.constant 0 : index
    %c0_35 = arith.constant 0 : index
    %c0_36 = arith.constant 0 : index
    %69 = vector.load %arg4[%c0_34, %c0_35, %c0_36] : memref<1x256x32xf32, #tpu.memory_space<vmem>>, vector<1x256x32xf32>
    %70 = vector.shape_cast %69 : vector<1x256x32xf32> to vector<256x32xf32>
    %71 = vector.shape_cast %68 : vector<256x32xf32> to vector<1x256x32xf32>
    tpu.vector_store %arg4[%c0_34, %c0_35, %c0_36], %71 {strides = array<i32>} : memref<1x256x32xf32, #tpu.memory_space<vmem>>, vector<1x256x32xf32>,
    return
  }
  func.func @transform_0(%arg0: i32) -> (i32, i32, i32, i32) {
    %c0_i32 = arith.constant 0 : i32
    %c0_i32_0 = arith.constant 0 : i32
    %c0_i32_1 = arith.constant 0 : i32
    %c0_i32_2 = arith.constant 0 : i32
    return %arg0, %c0_i32, %c0_i32_0, %c0_i32_1 : i32, i32, i32, i32
  }
  func.func @transform_1(%arg0: i32) -> (i32, i32, i32, i32) {
    %c0_i32 = arith.constant 0 : i32
    %c0_i32_0 = arith.constant 0 : i32
    %c0_i32_1 = arith.constant 0 : i32
    %c0_i32_2 = arith.constant 0 : i32
    return %arg0, %c0_i32, %c0_i32_0, %c0_i32_1 : i32, i32, i32, i32
  }
  func.func @transform_2(%arg0: i32) -> (i32, i32, i32) {
    %c0_i32 = arith.constant 0 : i32
    %c0_i32_0 = arith.constant 0 : i32
    %c0_i32_1 = arith.constant 0 : i32
    %c0_i32_2 = arith.constant 0 : i32
    return %c0_i32, %c0_i32_0, %c0_i32_1 : i32, i32, i32
  }
  func.func @transform_3(%arg0: i32) -> (i32, i32, i32) {
    %c0_i32 = arith.constant 0 : i32
    %c0_i32_0 = arith.constant 0 : i32
    %c0_i32_1 = arith.constant 0 : i32
    return %arg0, %c0_i32, %c0_i32_0 : i32, i32, i32
  }
}

module attributes {stable_mosaic.version = 11 : i64} {
  func.func @kernel(%arg0: i32, %arg1: memref<1x18x18x32xbf16, #tpu.memory_space<vmem>>, %arg2: memref<9x32x8xbf16, #tpu.memory_space<vmem>>, %arg3: memref<1x256x8xf32, #tpu.memory_space<vmem>>) attributes {dimension_semantics = [#tpu.dimension_semantics<parallel>], iteration_bounds = array<i64: 2>, scalar_prefetch = 0 : i64, scratch_operands = 0 : i64, tpu.core_type = #tpu.core_type<tc>, window_params = [{transform_indices = @transform_0, window_bounds = array<i64: 1, 18, 18, 32>}, {pipeline_mode = #tpu.pipeline_mode<synchronous>, transform_indices = @transform_1, window_bounds = array<i64: 9, 32, 8>}, {transform_indices = @transform_2, window_bounds = array<i64: 1, 256, 8>}]} {
    %c0 = arith.constant 0 : index
    %c0_0 = arith.constant 0 : index
    %c0_1 = arith.constant 0 : index
    %c0_2 = arith.constant 0 : index
    %0 = vector.load %arg1[%c0, %c0_0, %c0_1, %c0_2] : memref<1x18x18x32xbf16, #tpu.memory_space<vmem>>, vector<1x18x18x32xbf16>
    %1 = vector.shape_cast %0 : vector<1x18x18x32xbf16> to vector<18x18x32xbf16>
    %2 = arith.extf %1 : vector<18x18x32xbf16> to vector<18x18x32xf32>
    %3 = vector.extract_strided_slice %2 {offsets = [0, 0, 0], sizes = [16, 16, 32], strides = [1, 1, 1]} : vector<18x18x32xf32> to vector<16x16x32xf32>
    %4 = vector.shape_cast %3 : vector<16x16x32xf32> to vector<256x32xf32>
    %5 = arith.truncf %4 : vector<256x32xf32> to vector<256x32xbf16>
    %c0_3 = arith.constant 0 : index
    %c0_4 = arith.constant 0 : index
    %c0_5 = arith.constant 0 : index
    %6 = vector.load %arg2[%c0_3, %c0_4, %c0_5] : memref<9x32x8xbf16, #tpu.memory_space<vmem>>, vector<1x32x8xbf16>
    %7 = vector.shape_cast %6 : vector<1x32x8xbf16> to vector<32x8xbf16>
    %cst = arith.constant dense<0.000000e+00> : vector<256x8xf32>
    %8 = tpu.matmul %5, %7, %cst {dimension_numbers = #tpu.dot_dimension_numbers<[1], [0], [0], [1], [0, 0, 1, 1], [], []>} : vector<256x32xbf16>, vector<32x8xbf16>, vector<256x8xf32> -> vector<256x8xf32>
    %9 = vector.extract_strided_slice %2 {offsets = [0, 1, 0], sizes = [16, 16, 32], strides = [1, 1, 1]} : vector<18x18x32xf32> to vector<16x16x32xf32>
    %10 = vector.shape_cast %9 : vector<16x16x32xf32> to vector<256x32xf32>
    %11 = arith.truncf %10 : vector<256x32xf32> to vector<256x32xbf16>
    %c1 = arith.constant 1 : index
    %c0_6 = arith.constant 0 : index
    %c0_7 = arith.constant 0 : index
    %12 = vector.load %arg2[%c1, %c0_6, %c0_7] : memref<9x32x8xbf16, #tpu.memory_space<vmem>>, vector<1x32x8xbf16>
    %13 = vector.shape_cast %12 : vector<1x32x8xbf16> to vector<32x8xbf16>
    %cst_8 = arith.constant dense<0.000000e+00> : vector<256x8xf32>
    %14 = tpu.matmul %11, %13, %cst_8 {dimension_numbers = #tpu.dot_dimension_numbers<[1], [0], [0], [1], [0, 0, 1, 1], [], []>} : vector<256x32xbf16>, vector<32x8xbf16>, vector<256x8xf32> -> vector<256x8xf32>
    %15 = arith.addf %8, %14 : vector<256x8xf32>
    %16 = vector.extract_strided_slice %2 {offsets = [0, 2, 0], sizes = [16, 16, 32], strides = [1, 1, 1]} : vector<18x18x32xf32> to vector<16x16x32xf32>
    %17 = vector.shape_cast %16 : vector<16x16x32xf32> to vector<256x32xf32>
    %18 = arith.truncf %17 : vector<256x32xf32> to vector<256x32xbf16>
    %c2 = arith.constant 2 : index
    %c0_9 = arith.constant 0 : index
    %c0_10 = arith.constant 0 : index
    %19 = vector.load %arg2[%c2, %c0_9, %c0_10] : memref<9x32x8xbf16, #tpu.memory_space<vmem>>, vector<1x32x8xbf16>
    %20 = vector.shape_cast %19 : vector<1x32x8xbf16> to vector<32x8xbf16>
    %cst_11 = arith.constant dense<0.000000e+00> : vector<256x8xf32>
    %21 = tpu.matmul %18, %20, %cst_11 {dimension_numbers = #tpu.dot_dimension_numbers<[1], [0], [0], [1], [0, 0, 1, 1], [], []>} : vector<256x32xbf16>, vector<32x8xbf16>, vector<256x8xf32> -> vector<256x8xf32>
    %22 = arith.addf %15, %21 : vector<256x8xf32>
    %23 = vector.extract_strided_slice %2 {offsets = [1, 0, 0], sizes = [16, 16, 32], strides = [1, 1, 1]} : vector<18x18x32xf32> to vector<16x16x32xf32>
    %24 = vector.shape_cast %23 : vector<16x16x32xf32> to vector<256x32xf32>
    %25 = arith.truncf %24 : vector<256x32xf32> to vector<256x32xbf16>
    %c3 = arith.constant 3 : index
    %c0_12 = arith.constant 0 : index
    %c0_13 = arith.constant 0 : index
    %26 = vector.load %arg2[%c3, %c0_12, %c0_13] : memref<9x32x8xbf16, #tpu.memory_space<vmem>>, vector<1x32x8xbf16>
    %27 = vector.shape_cast %26 : vector<1x32x8xbf16> to vector<32x8xbf16>
    %cst_14 = arith.constant dense<0.000000e+00> : vector<256x8xf32>
    %28 = tpu.matmul %25, %27, %cst_14 {dimension_numbers = #tpu.dot_dimension_numbers<[1], [0], [0], [1], [0, 0, 1, 1], [], []>} : vector<256x32xbf16>, vector<32x8xbf16>, vector<256x8xf32> -> vector<256x8xf32>
    %29 = arith.addf %22, %28 : vector<256x8xf32>
    %30 = vector.extract_strided_slice %2 {offsets = [1, 1, 0], sizes = [16, 16, 32], strides = [1, 1, 1]} : vector<18x18x32xf32> to vector<16x16x32xf32>
    %31 = vector.shape_cast %30 : vector<16x16x32xf32> to vector<256x32xf32>
    %32 = arith.truncf %31 : vector<256x32xf32> to vector<256x32xbf16>
    %c4 = arith.constant 4 : index
    %c0_15 = arith.constant 0 : index
    %c0_16 = arith.constant 0 : index
    %33 = vector.load %arg2[%c4, %c0_15, %c0_16] : memref<9x32x8xbf16, #tpu.memory_space<vmem>>, vector<1x32x8xbf16>
    %34 = vector.shape_cast %33 : vector<1x32x8xbf16> to vector<32x8xbf16>
    %cst_17 = arith.constant dense<0.000000e+00> : vector<256x8xf32>
    %35 = tpu.matmul %32, %34, %cst_17 {dimension_numbers = #tpu.dot_dimension_numbers<[1], [0], [0], [1], [0, 0, 1, 1], [], []>} : vector<256x32xbf16>, vector<32x8xbf16>, vector<256x8xf32> -> vector<256x8xf32>
    %36 = arith.addf %29, %35 : vector<256x8xf32>
    %37 = vector.extract_strided_slice %2 {offsets = [1, 2, 0], sizes = [16, 16, 32], strides = [1, 1, 1]} : vector<18x18x32xf32> to vector<16x16x32xf32>
    %38 = vector.shape_cast %37 : vector<16x16x32xf32> to vector<256x32xf32>
    %39 = arith.truncf %38 : vector<256x32xf32> to vector<256x32xbf16>
    %c5 = arith.constant 5 : index
    %c0_18 = arith.constant 0 : index
    %c0_19 = arith.constant 0 : index
    %40 = vector.load %arg2[%c5, %c0_18, %c0_19] : memref<9x32x8xbf16, #tpu.memory_space<vmem>>, vector<1x32x8xbf16>
    %41 = vector.shape_cast %40 : vector<1x32x8xbf16> to vector<32x8xbf16>
    %cst_20 = arith.constant dense<0.000000e+00> : vector<256x8xf32>
    %42 = tpu.matmul %39, %41, %cst_20 {dimension_numbers = #tpu.dot_dimension_numbers<[1], [0], [0], [1], [0, 0, 1, 1], [], []>} : vector<256x32xbf16>, vector<32x8xbf16>, vector<256x8xf32> -> vector<256x8xf32>
    %43 = arith.addf %36, %42 : vector<256x8xf32>
    %44 = vector.extract_strided_slice %2 {offsets = [2, 0, 0], sizes = [16, 16, 32], strides = [1, 1, 1]} : vector<18x18x32xf32> to vector<16x16x32xf32>
    %45 = vector.shape_cast %44 : vector<16x16x32xf32> to vector<256x32xf32>
    %46 = arith.truncf %45 : vector<256x32xf32> to vector<256x32xbf16>
    %c6 = arith.constant 6 : index
    %c0_21 = arith.constant 0 : index
    %c0_22 = arith.constant 0 : index
    %47 = vector.load %arg2[%c6, %c0_21, %c0_22] : memref<9x32x8xbf16, #tpu.memory_space<vmem>>, vector<1x32x8xbf16>
    %48 = vector.shape_cast %47 : vector<1x32x8xbf16> to vector<32x8xbf16>
    %cst_23 = arith.constant dense<0.000000e+00> : vector<256x8xf32>
    %49 = tpu.matmul %46, %48, %cst_23 {dimension_numbers = #tpu.dot_dimension_numbers<[1], [0], [0], [1], [0, 0, 1, 1], [], []>} : vector<256x32xbf16>, vector<32x8xbf16>, vector<256x8xf32> -> vector<256x8xf32>
    %50 = arith.addf %43, %49 : vector<256x8xf32>
    %51 = vector.extract_strided_slice %2 {offsets = [2, 1, 0], sizes = [16, 16, 32], strides = [1, 1, 1]} : vector<18x18x32xf32> to vector<16x16x32xf32>
    %52 = vector.shape_cast %51 : vector<16x16x32xf32> to vector<256x32xf32>
    %53 = arith.truncf %52 : vector<256x32xf32> to vector<256x32xbf16>
    %c7 = arith.constant 7 : index
    %c0_24 = arith.constant 0 : index
    %c0_25 = arith.constant 0 : index
    %54 = vector.load %arg2[%c7, %c0_24, %c0_25] : memref<9x32x8xbf16, #tpu.memory_space<vmem>>, vector<1x32x8xbf16>
    %55 = vector.shape_cast %54 : vector<1x32x8xbf16> to vector<32x8xbf16>
    %cst_26 = arith.constant dense<0.000000e+00> : vector<256x8xf32>
    %56 = tpu.matmul %53, %55, %cst_26 {dimension_numbers = #tpu.dot_dimension_numbers<[1], [0], [0], [1], [0, 0, 1, 1], [], []>} : vector<256x32xbf16>, vector<32x8xbf16>, vector<256x8xf32> -> vector<256x8xf32>
    %57 = arith.addf %50, %56 : vector<256x8xf32>
    %58 = vector.extract_strided_slice %2 {offsets = [2, 2, 0], sizes = [16, 16, 32], strides = [1, 1, 1]} : vector<18x18x32xf32> to vector<16x16x32xf32>
    %59 = vector.shape_cast %58 : vector<16x16x32xf32> to vector<256x32xf32>
    %60 = arith.truncf %59 : vector<256x32xf32> to vector<256x32xbf16>
    %c8 = arith.constant 8 : index
    %c0_27 = arith.constant 0 : index
    %c0_28 = arith.constant 0 : index
    %61 = vector.load %arg2[%c8, %c0_27, %c0_28] : memref<9x32x8xbf16, #tpu.memory_space<vmem>>, vector<1x32x8xbf16>
    %62 = vector.shape_cast %61 : vector<1x32x8xbf16> to vector<32x8xbf16>
    %cst_29 = arith.constant dense<0.000000e+00> : vector<256x8xf32>
    %63 = tpu.matmul %60, %62, %cst_29 {dimension_numbers = #tpu.dot_dimension_numbers<[1], [0], [0], [1], [0, 0, 1, 1], [], []>} : vector<256x32xbf16>, vector<32x8xbf16>, vector<256x8xf32> -> vector<256x8xf32>
    %64 = arith.addf %57, %63 : vector<256x8xf32>
    %c0_30 = arith.constant 0 : index
    %c0_31 = arith.constant 0 : index
    %c0_32 = arith.constant 0 : index
    %65 = vector.load %arg3[%c0_30, %c0_31, %c0_32] : memref<1x256x8xf32, #tpu.memory_space<vmem>>, vector<1x256x8xf32>
    %66 = vector.shape_cast %65 : vector<1x256x8xf32> to vector<256x8xf32>
    %67 = vector.shape_cast %64 : vector<256x8xf32> to vector<1x256x8xf32>
    tpu.vector_store %arg3[%c0_30, %c0_31, %c0_32], %67 {strides = array<i32>} : memref<1x256x8xf32, #tpu.memory_space<vmem>>, vector<1x256x8xf32>,
    return
  }
  func.func @transform_0(%arg0: i32) -> (i32, i32, i32, i32) {
    %c0_i32 = arith.constant 0 : i32
    %c0_i32_0 = arith.constant 0 : i32
    %c0_i32_1 = arith.constant 0 : i32
    %c0_i32_2 = arith.constant 0 : i32
    return %arg0, %c0_i32, %c0_i32_0, %c0_i32_1 : i32, i32, i32, i32
  }
  func.func @transform_1(%arg0: i32) -> (i32, i32, i32) {
    %c0_i32 = arith.constant 0 : i32
    %c0_i32_0 = arith.constant 0 : i32
    %c0_i32_1 = arith.constant 0 : i32
    %c0_i32_2 = arith.constant 0 : i32
    return %c0_i32, %c0_i32_0, %c0_i32_1 : i32, i32, i32
  }
  func.func @transform_2(%arg0: i32) -> (i32, i32, i32) {
    %c0_i32 = arith.constant 0 : i32
    %c0_i32_0 = arith.constant 0 : i32
    %c0_i32_1 = arith.constant 0 : i32
    return %arg0, %c0_i32, %c0_i32_0 : i32, i32, i32
  }
}

</mosaic_0001>

<bundles_post_ra>
// kernel: tile.13
= control target key start
LH: loop header
LB: loop body
LE: loop exit
PB: predicated region body
PF: predicated region fallthrough
CT: control target
= control target key end

     0   :  { %2 = vsyncpa [#allocation1], 0  ;;  %s48_s8 = smov [#allocation0]   ;;  %s65_s0 = inlined_call_operand.hbm [shape: f32[8], index: 0, kind: input, shape index: {}]   ;;  %s66_s1 = inlined_call_operand.vmem [shape: f32[4,8], index: 1, kind: output, shape index: {}]  }
   0x1   :  { %s8_s0 = sshll.u32 %s65_s0, 4  ;;  %s10_s9 = sshll.u32 %s48_s8, 4  ;;  %s9_s0 = int_to_ptr.hbm [resolvable:$true] %s8_s0  ;;  %s11_s9 = int_to_ptr.vmem [resolvable:$true] %s10_s9 }
   0x2   :  { %13 = dma.hbm_to_vmem [thread:$0]  %s9_s0, 16, %s11_s9, [#allocation1]  }
   0x3   :  { %46 = dma.done.wait [#allocation1], 16  }
   0x4   :  { %47 = vsyncadd [#allocation1], 4294967280  ;;  %v18_v0 = vld [vmem:[#allocation0] ss:$0 sm:$0xff] }
   0x5   :  { %19 = vst [vmem:[%s66_s1] sm:$0xf] %v18_v0 }
   0x6   :  { %20 = vsyncpa [#allocation1], 1 }

// kernel: reverse.1
= control target key start
LH: loop header
LB: loop body
LE: loop exit
PB: predicated region body
PF: predicated region fallthrough
CT: control target
= control target key end

     0   :  { %s440_s0 = inlined_call_operand.vmem [shape: f32[3,3,32,32], index: 0, kind: input, shape index: {}]   ;;  %s441_s1 = inlined_call_operand.vmem [shape: f32[3,3,32,32], index: 1, kind: output, shape index: {}]  }
   0x1   :  { %v144_v0 = vld [vmem:[%s440_s0 + $0x100] sm:$0xff]  ;;  %v160_v9 = vld [vmem:[%s440_s0 + $0x108] sm:$0xff]  ;;  %v178_v18 = vld [vmem:[%s440_s0 + $0x110] sm:$0xff] }
   0x2   :  { %v145_v1 = vld [vmem:[%s440_s0 + $0xa0] sm:$0xff]  ;;  %4 = vst [vmem:[%s441_s1] sm:$0xff] %v144_v0  ;;  %v162_v10 = vld [vmem:[%s440_s0 + $0xa8] sm:$0xff]  ;;  %v180_v19 = vld [vmem:[%s440_s0 + $0xb0] sm:$0xff] }
   0x3   :  { %v147_v2 = vld [vmem:[%s440_s0 + $0x40] sm:$0xff]  ;;  %146 = vst [vmem:[%s441_s1 + $0x60] sm:$0xff] %v145_v1  ;;  %v164_v11 = vld [vmem:[%s440_s0 + $0x48] sm:$0xff]  ;;  %v182_v20 = vld [vmem:[%s440_s0 + $0x50] sm:$0xff] }
   0x4   :  { %v149_v3 = vld [vmem:[%s440_s0 + $0xe0] sm:$0xff]  ;;  %148 = vst [vmem:[%s441_s1 + $0xc0] sm:$0xff] %v147_v2  ;;  %v166_v12 = vld [vmem:[%s440_s0 + $0xe8] sm:$0xff]  ;;  %v184_v21 = vld [vmem:[%s440_s0 + $0xf0] sm:$0xff] }
   0x5   :  { %v151_v4 = vld [vmem:[%s440_s0 + $0x80] sm:$0xff]  ;;  %150 = vst [vmem:[%s441_s1 + $0x20] sm:$0xff] %v149_v3  ;;  %v168_v13 = vld [vmem:[%s440_s0 + $0x88] sm:$0xff]  ;;  %v186_v22 = vld [vmem:[%s440_s0 + $0x90] sm:$0xff] }
   0x6   :  { %v153_v5 = vld [vmem:[%s440_s0 + $0x20] sm:$0xff]  ;;  %152 = vst [vmem:[%s441_s1 + $0x80] sm:$0xff] %v151_v4  ;;  %v170_v14 = vld [vmem:[%s440_s0 + $0x28] sm:$0xff]  ;;  %v188_v23 = vld [vmem:[%s440_s0 + $0x30] sm:$0xff] }
   0x7   :  { %v155_v6 = vld [vmem:[%s440_s0 + $0xc0] sm:$0xff]  ;;  %154 = vst [vmem:[%s441_s1 + $0xe0] sm:$0xff] %v153_v5  ;;  %v172_v15 = vld [vmem:[%s440_s0 + $0xc8] sm:$0xff]  ;;  %v190_v24 = vld [vmem:[%s440_s0 + $0xd0] sm:$0xff] }
   0x8   :  { %v157_v7 = vld [vmem:[%s440_s0 + $0x60] sm:$0xff]  ;;  %156 = vst [vmem:[%s441_s1 + $0x40] sm:$0xff] %v155_v6  ;;  %v174_v16 = vld [vmem:[%s440_s0 + $0x68] sm:$0xff]  ;;  %v192_v25 = vld [vmem:[%s440_s0 + $0x70] sm:$0xff] }
   0x9   :  { %v33_v8 = vld [vmem:[%s440_s0] sm:$0xff]  ;;  %158 = vst [vmem:[%s441_s1 + $0xa0] sm:$0xff] %v157_v7  ;;  %v176_v17 = vld [vmem:[%s440_s0 + $0x8] sm:$0xff]  ;;  %v194_v26 = vld [vmem:[%s440_s0 + $0x10] sm:$0xff] }
   0xa   :  { %159 = vst [vmem:[%s441_s1 + $0x100] sm:$0xff] %v33_v8  ;;  %v196_v27 = vld [vmem:[%s440_s0 + $0x118] sm:$0xff] }
   0xb   :  { %161 = vst [vmem:[%s441_s1 + $0x8] sm:$0xff] %v160_v9  ;;  %v198_v28 = vld [vmem:[%s440_s0 + $0xb8] sm:$0xff] }
   0xc   :  { %163 = vst [vmem:[%s441_s1 + $0x68] sm:$0xff] %v162_v10  ;;  %v200_v29 = vld [vmem:[%s440_s0 + $0x58] sm:$0xff] }
   0xd   :  { %165 = vst [vmem:[%s441_s1 + $0xc8] sm:$0xff] %v164_v11  ;;  %v202_v30 = vld [vmem:[%s440_s0 + $0xf8] sm:$0xff] }
   0xe   :  { %167 = vst [vmem:[%s441_s1 + $0x28] sm:$0xff] %v166_v12  ;;  %v204_v31 = vld [vmem:[%s440_s0 + $0x98] sm:$0xff] }
   0xf   :  { %169 = vst [vmem:[%s441_s1 + $0x88] sm:$0xff] %v168_v13  ;;  %v206_v32 = vld [vmem:[%s440_s0 + $0x38] sm:$0xff] }
  0x10   :  { %171 = vst [vmem:[%s441_s1 + $0xe8] sm:$0xff] %v170_v14  ;;  %v208_v33 = vld [vmem:[%s440_s0 + $0xd8] sm:$0xff] }
  0x11   :  { %173 = vst [vmem:[%s441_s1 + $0x48] sm:$0xff] %v172_v15  ;;  %v210_v34 = vld [vmem:[%s440_s0 + $0x78] sm:$0xff] }
  0x12   :  { %175 = vst [vmem:[%s441_s1 + $0xa8] sm:$0xff] %v174_v16  ;;  %v212_v35 = vld [vmem:[%s440_s0 + $0x18] sm:$0xff] }
  0x13   :  { %177 = vst [vmem:[%s441_s1 + $0x108] sm:$0xff] %v176_v17 }
  0x14   :  { %179 = vst [vmem:[%s441_s1 + $0x10] sm:$0xff] %v178_v18 }
  0x15   :  { %181 = vst [vmem:[%s441_s1 + $0x70] sm:$0xff] %v180_v19 }
  0x16   :  { %183 = vst [vmem:[%s441_s1 + $0xd0] sm:$0xff] %v182_v20 }
  0x17   :  { %185 = vst [vmem:[%s441_s1 + $0x30] sm:$0xff] %v184_v21 }
  0x18   :  { %187 = vst [vmem:[%s441_s1 + $0x90] sm:$0xff] %v186_v22 }
  0x19   :  { %189 = vst [vmem:[%s441_s1 + $0xf0] sm:$0xff] %v188_v23 }
  0x1a   :  { %191 = vst [vmem:[%s441_s1 + $0x50] sm:$0xff] %v190_v24 }
  0x1b   :  { %193 = vst [vmem:[%s441_s1 + $0xb0] sm:$0xff] %v192_v25 }
  0x1c   :  { %195 = vst [vmem:[%s441_s1 + $0x110] sm:$0xff] %v194_v26 }
  0x1d   :  { %197 = vst [vmem:[%s441_s1 + $0x18] sm:$0xff] %v196_v27 }
  0x1e   :  { %199 = vst [vmem:[%s441_s1 + $0x78] sm:$0xff] %v198_v28 }
  0x1f   :  { %201 = vst [vmem:[%s441_s1 + $0xd8] sm:$0xff] %v200_v29 }
  0x20   :  { %203 = vst [vmem:[%s441_s1 + $0x38] sm:$0xff] %v202_v30 }
  0x21   :  { %205 = vst [vmem:[%s441_s1 + $0x98] sm:$0xff] %v204_v31 }
  0x22   :  { %207 = vst [vmem:[%s441_s1 + $0xf8] sm:$0xff] %v206_v32 }
  0x23   :  { %209 = vst [vmem:[%s441_s1 + $0x58] sm:$0xff] %v208_v33 }
  0x24   :  { %211 = vst [vmem:[%s441_s1 + $0xb8] sm:$0xff] %v210_v34 }
  0x25   :  { %213 = vst [vmem:[%s441_s1 + $0x118] sm:$0xff] %v212_v35 }

// kernel: forward.2
= control target key start
LH: loop header
LB: loop body
LE: loop exit
PB: predicated region body
PF: predicated region fallthrough
CT: control target
= control target key end

     0   :  { %s2672_s12 = smov 0   ;;  %s3750_s0 = inlined_call_operand.vmem [shape: bf16[2,18,18,32], index: 0, kind: input, shape index: {}]   ;;  %s3751_s1 = inlined_call_operand.vmem [shape: bf16[2,18,18,32], index: 1, kind: input, shape index: {}]   ;;  %s3752_s2 = inlined_call_operand.vmem [shape: bf16[9,32,32], index: 2, kind: input, shape index: {}]   ;;  %s3753_s3 = inlined_call_operand.vmem [shape: f32[2,256,32], index: 3, kind: output, shape index: {}]  }
   0x1 LB: > { %s2263_s13 = sadd.s32 4294967295, %s2650_s12   ;;  %p2267_p0 = scmp.ge.s32.totalorder %s2650_s12, 1  ;;  %s2650_s12 = sphi %s2672_s12, %s13_s12  }
   0x2   : > { %p147_p1 = scmp.lt.s32.totalorder %s2650_s12, 3 }
   0x4   : > { %p148_p2 = pnand %p2267_p0, %p147_p1 }
   0x6   : > { %151 = sbr.rel (%p148_p2) target bundleno = 739 (0x2e3), region = 32 }
   0xb   : > { %v2526_v0 = vld [vmem:[%s3752_s2 + $0x18] sm:$0xff]  ;;  %p176_p3 = scmp.lt.s32.totalorder %s2263_s13, 1  ;;  %v2525_v1 = vld [vmem:[%s3752_s2 + $0x10] sm:$0xff]  ;;  %v2528_v2 = vld [vmem:[%s3752_s2 + $0x28] sm:$0xff]  ;;  %vm530_vm0 = vcmask 1046528   ;;  %vm676_vm1 = vcmask 261120  }
   0xc   : > { %2629 = vmatpush.bf16.msra.mxu1 %v2526_v0  ;;  %2630 = vmatpush.bf16.msra.mxu2 %v2526_v0  ;;  %v2530_v3 = vld [vmem:[%s3752_s2 + $0x38] sm:$0xff]  ;;  %v2524_v4 = vld [vmem:[%s3752_s2 + $0x8] sm:$0xff]  ;;  %vm963_vm2 = vcmask 1045504  }
   0xd   : > { %s3905_s13 = smov (!%p176_p3, %s2263_s13), 1  ;;  %2631 = vmatpush.bf16.msra.mxu3 %v2526_v0  ;;  %731 = vmatpush.bf16.msra.mxu0 %v2526_v0  ;;  %v2532_v5 = vld [vmem:[%s3752_s2 + $0x48] sm:$0xff] }
   0xe   : > { %s2635_s18 = smul.u32 216, %s3905_s13  ;;  %s2522_s7 = sshll.u32 %s3905_s13, 8 }
   0xf   : > { %s3586_s10 = scalar_lea.vmem %s3753_s3, %s2522_s7 }
  0x10   : > { %2632 = vmatpush.bf16.msra.mxu1 %v2525_v1  ;;  %2633 = vmatpush.bf16.msra.mxu2 %v2525_v1  ;;  %s2704_s29 = scalar_lea.vmem %s3750_s0, %s2635_s18  ;;  %s2709_s5 = scalar_lea.vmem %s3751_s1, %s2635_s18 }
  0x11   : > { %2634 = vmatpush.bf16.msra.mxu3 %v2525_v1  ;;  %732 = vmatpush.bf16.msra.mxu0 %v2525_v1  ;;  %v2614_v6 = vld [vmem:[%s2704_s29 + $0x30] sm:$0xff]   ;;  %v206_v7 = vld [vmem:[%s2704_s29 + $0x38] sm:$0x1]  ;;  %v2616_v14 = vld [vmem:[%s2704_s29 + $0x60] sm:$0xff]  }
  0x12   : > { %v2622_v8 = vld [vmem:[%s2709_s5 + $0x30] sm:$0xff]   ;;  %v2551_v9 = vunpack.c.l.bf16 %v2614_v6  ;;  %v2552_v10 = vunpack.c.h.bf16 %v2614_v6  ;;  %v260_v11 = vunpack.c.l.bf16 %v206_v7  ;;  %v314_v13 = vld [vmem:[%s2709_s5 + $0x38] sm:$0x1]  ;;  %v218_v15 = vld [vmem:[%s2704_s29 + $0x68] sm:$0x1]  ;;  %v2559_v18 = vunpack.c.l.bf16 %v2616_v14 }
  0x13   : > { %v2587_v12 = vunpack.c.l.bf16 %v2622_v8  ;;  %v2588_v16 = vunpack.c.h.bf16 %v2622_v8  ;;  %v368_v17 = vunpack.c.l.bf16 %v314_v13  ;;  %v2560_v19 = vunpack.c.h.bf16 %v2616_v14  ;;  %v2624_v20 = vld [vmem:[%s2709_s5 + $0x60] sm:$0xff]   ;;  %v326_v21 = vld [vmem:[%s2709_s5 + $0x68] sm:$0x1]  ;;  %v2618_v22 = vld [vmem:[%s2704_s29 + $0x90] sm:$0xff]  }
  0x14   : > { %1163 = vmatpush.bf16.msrb.mxu2 %v2528_v2  ;;  %880 = vmatpush.bf16.msrb.mxu1 %v2524_v4  ;;  %v272_v24 = vunpack.c.l.bf16 %v218_v15  ;;  %v2595_v25 = vunpack.c.l.bf16 %v2624_v20  ;;  %v2596_v26 = vunpack.c.h.bf16 %v2624_v20  ;;  %v230_v27 = vld [vmem:[%s2704_s29 + $0x98] sm:$0x1]  ;;  %v380_v30 = vunpack.c.l.bf16 %v326_v21  ;;  %v2626_v32 = vld [vmem:[%s2709_s5 + $0x90] sm:$0xff]   ;;  %v2542_v46 = vld [vmem:[%s2704_s29] sm:$0xff]  }
  0x15   : > { %1305 = vmatpush.bf16.msrb.mxu3 %v2530_v3  ;;  %1457 = vmatpush.bf16.msrb.mxu0 %v2532_v5  ;;  %v2720_v23 = vadd.f32 %v2587_v12, %v2551_v9  ;;  %v2723_v28 = vadd.f32 %v2588_v16, %v2552_v10  ;;  %v2725_v29 = vadd.f32 %v368_v17, %v260_v11  ;;  %v2567_v31 = vunpack.c.l.bf16 %v2618_v22  ;;  %v338_v37 = vld [vmem:[%s2709_s5 + $0x98] sm:$0x1]  ;;  %v194_v51 = vld [vmem:[%s2704_s29 + $0x8] sm:$0x1]  ;;  %v2578_v56 = vld [vmem:[%s2709_s5] sm:$0xff]  }
  0x16   : > { %v2729_v34 = vadd.f32 %v2595_v25, %v2559_v18  ;;  %v2731_v35 = vadd.f32 %v2596_v26, %v2560_v19  ;;  %v2568_v36 = vunpack.c.h.bf16 %v2618_v22  ;;  %v2736_v40 = vadd.f32 %v380_v30, %v272_v24  ;;  %v302_v57 = vld [vmem:[%s2709_s5 + $0x8] sm:$0x1]  ;;  %v207_v62 = vld [vmem:[%s2704_s29 + $0x3c] sm:$0xff]   ;;  %v209_v63 = vld [vmem:[%s2704_s29 + $0x44] sm:$0x1] }
  0x17   : > { %v551_v33 = vrot.slane %v2720_v23, 1  ;;  %v552_v38 = vrot.slane %v2723_v28, 1  ;;  %v554_v39 = vrot.slane %v2725_v29, 1  ;;  %v284_v41 = vunpack.c.l.bf16 %v230_v27  ;;  %v315_v8 = vld [vmem:[%s2709_s5 + $0x3c] sm:$0xff]   ;;  %v317_v9 = vld [vmem:[%s2709_s5 + $0x44] sm:$0x1] }
  0x18   : > { %v571_v42 = vrot.slane %v2729_v34, 1  ;;  %v572_v43 = vrot.slane %v2731_v35, 1  ;;  %v2603_v44 = vunpack.c.l.bf16 %v2626_v32  ;;  %v2604_v45 = vunpack.c.h.bf16 %v2626_v32  ;;  %v219_v14 = vld [vmem:[%s2704_s29 + $0x6c] sm:$0xff]   ;;  %v221_v24 = vld [vmem:[%s2704_s29 + $0x74] sm:$0x1] }
  0x19   : > { %v553_v47 = vsel %vm530_vm0, %v551_v33, %v552_v38  ;;  %v555_v48 = vsel %vm530_vm0, %v552_v38, %v554_v39  ;;  %v574_v49 = vrot.slane %v2736_v40, 1  ;;  %v392_v50 = vunpack.c.l.bf16 %v338_v37  ;;  %v327_v25 = vld [vmem:[%s2709_s5 + $0x6c] sm:$0xff]   ;;  %v329_v38 = vld [vmem:[%s2709_s5 + $0x74] sm:$0x1]  ;;  %v231_v39 = vld [vmem:[%s2704_s29 + $0x9c] sm:$0xff]  }
  0x1a   : > { %v2745_v52 = vpack.c.bf16 %v555_v48, %v553_v47  ;;  %v573_v53 = vsel %vm530_vm0, %v571_v42, %v572_v43  ;;  %v2748_v54 = vadd.f32 %v2603_v44, %v2567_v31  ;;  %v2750_v55 = vadd.f32 %v2604_v45, %v2568_v36 }
  0x1b   : > { %v575_v58 = vsel %vm530_vm0, %v572_v43, %v574_v49  ;;  %v2755_v59 = vadd.f32 %v392_v50, %v284_v41  ;;  %v2543_v60 = vunpack.c.l.bf16 %v2542_v46  ;;  %v2544_v61 = vunpack.c.h.bf16 %v2542_v46  ;;  %v2527_v41 = vld [vmem:[%s3752_s2 + $0x20] sm:$0xff] }
  0x1c   : > { %3804 = vst [vmem:[#allocation2_spill] sm:$0xff] %v2748_v54  ;;  %2288 = vmatmul.msk.bf16.vlgmr.msra.gmra.mxu1 %vm676_vm1, %v2745_v52  ;;  %v2761_v0 = vpack.c.bf16 %v575_v58, %v573_v53  ;;  %v591_v1 = vrot.slane %v2748_v54, 1  ;;  %v592_v2 = vrot.slane %v2750_v55, 1  ;;  %v248_v3 = vunpack.c.l.bf16 %v194_v51  ;;  %v233_v46 = vld [vmem:[%s2704_s29 + $0xa4] sm:$0x1]  ;;  %v339_v51 = vld [vmem:[%s2709_s5 + $0x9c] sm:$0xff]   ;;  %1164 = vmatpush.bf16.msrb.mxu2 %v2527_v41 }
  0x1d   : > { %3805 = vst [vmem:[#allocation3_spill] sm:$0xff] %v2750_v55  ;;  %v594_v4 = vrot.slane %v2755_v59, 1  ;;  %v2579_v5 = vunpack.c.l.bf16 %v2578_v56  ;;  %v2580_v6 = vunpack.c.h.bf16 %v2578_v56  ;;  %v356_v7 = vunpack.c.l.bf16 %v302_v57  ;;  %v311_v54 = vld [vmem:[%s2709_s5 + $0x2c] sm:$0x1] }
  0x1e   : > { %3806 = vst [vmem:[#allocation4_spill] sm:$0xff] %v2755_v59  ;;  %2292 = vmatmul.msk.bf16.vlgmr.msra.gmra.mxu2 %vm676_vm1, %v2761_v0  ;;  %v593_v10 = vsel %vm530_vm0, %v591_v1, %v592_v2  ;;  %v261_v11 = vunpack.c.l.bf16 %v207_v62  ;;  %v262_v12 = vunpack.c.h.bf16 %v207_v62  ;;  %v263_v13 = vunpack.c.l.bf16 %v209_v63  ;;  %v197_v62 = vld [vmem:[%s2704_s29 + $0x14] sm:$0x1]  ;;  %v203_v59 = vld [vmem:[%s2704_s29 + $0x2c] sm:$0x1] }
  0x1f   : > { %3807 = vst [vmem:[#allocation5_spill] sm:$0xff] %v2761_v0  ;;  %v595_v15 = vsel %vm530_vm0, %v592_v2, %v594_v4  ;;  %v2773_v16 = vadd.f32 %v2579_v5, %v2543_v60  ;;  %v2775_v17 = vadd.f32 %v2580_v6, %v2544_v61  ;;  %v2777_v18 = vadd.f32 %v356_v7, %v248_v3  ;;  %v341_v60 = vld [vmem:[%s2709_s5 + $0xa4] sm:$0x1]  ;;  %v195_v61 = vld [vmem:[%s2704_s29 + $0xc] sm:$0xff]  }
  0x20   : > { %v2779_v19 = vpack.c.bf16 %v595_v15, %v593_v10  ;;  %v369_v20 = vunpack.c.l.bf16 %v315_v8  ;;  %v370_v21 = vunpack.c.h.bf16 %v315_v8  ;;  %v371_v22 = vunpack.c.l.bf16 %v317_v9  ;;  %v2529_v4 = vld [vmem:[%s3752_s2 + $0x30] sm:$0xff]  ;;  %v2523_v5 = vld [vmem:[%s3752_s2] sm:$0xff] }
  0x21   : > { %v531_v26 = vrot.slane %v2773_v16, 1  ;;  %v532_v27 = vrot.slane %v2775_v17, 1  ;;  %v534_v30 = vrot.slane %v2777_v18, 1  ;;  %v273_v31 = vunpack.c.l.bf16 %v219_v14  ;;  %v2531_v6 = vld [vmem:[%s3752_s2 + $0x40] sm:$0xff]  ;;  %1306 = vmatpush.bf16.msrb.mxu3 %v2529_v4  ;;  %881 = vmatpush.bf16.msrb.mxu1 %v2523_v5 }
  0x22   : > { %3808 = vst [vmem:[#allocation6_spill] sm:$0xff] %v2779_v19  ;;  %2296 = vmatmul.msk.bf16.vlgmr.msra.gmra.mxu3 %vm676_vm1, %v2779_v19  ;;  %v2788_v32 = vadd.f32 %v369_v20, %v261_v11  ;;  %v2790_v33 = vadd.f32 %v370_v21, %v262_v12  ;;  %v2792_v36 = vadd.f32 %v371_v22, %v263_v13  ;;  %v274_v37 = vunpack.c.h.bf16 %v219_v14  ;;  %v303_v11 = vld [vmem:[%s2709_s5 + $0xc] sm:$0xff]   ;;  %v305_v20 = vld [vmem:[%s2709_s5 + $0x14] sm:$0x1] }
  0x23   : > { %v533_v42 = vsel %vm530_vm0, %v531_v26, %v532_v27  ;;  %v535_v43 = vsel %vm530_vm0, %v532_v27, %v534_v30  ;;  %v275_v44 = vunpack.c.l.bf16 %v221_v24  ;;  %v381_v45 = vunpack.c.l.bf16 %v327_v25  ;;  %1458 = vmatpush.bf16.msrb.mxu0 %v2531_v6 }
  0x24   : > { %v643_v47 = vpack.c.bf16 %v535_v43, %v533_v42  ;;  %v556_v48 = vrot.slane %v2788_v32, 1  ;;  %v557_v49 = vrot.slane %v2790_v33, 1  ;;  %v559_v50 = vrot.slane %v2792_v36, 1  ;;  %v212_v43 = vld [vmem:[%s2704_s29 + $0x50] sm:$0x1] }
  0x25   : > { %v382_v53 = vunpack.c.h.bf16 %v327_v25  ;;  %v383_v56 = vunpack.c.l.bf16 %v329_v38  ;;  %v2806_v57 = vadd.f32 %v381_v45, %v273_v31  ;;  %v285_v58 = vunpack.c.l.bf16 %v231_v39 }
  0x26   : > { %2284 = vmatmul.msk.bf16.vlgmr.msra.gmra.mxu0 %vm676_vm1, %v643_v47  ;;  %v558_v63 = vsel %vm530_vm0, %v556_v48, %v557_v49  ;;  %v560_v1 = vsel %vm530_vm0, %v557_v49, %v559_v50  ;;  %v286_v2 = vunpack.c.h.bf16 %v231_v39  ;;  %v287_v3 = vunpack.c.l.bf16 %v233_v46 }
  0x27   : > { %v2823_v7 = vpack.c.bf16 %v560_v1, %v558_v63  ;;  %v2825_v8 = vadd.f32 %v382_v53, %v274_v37  ;;  %v2827_v9 = vadd.f32 %v383_v56, %v275_v44  ;;  %v576_v10 = vrot.slane %v2806_v57, 1  ;;  %v2615_v37 = vld [vmem:[%s2704_s29 + $0x48] sm:$0xff]   ;;  %v320_v56 = vld [vmem:[%s2709_s5 + $0x50] sm:$0x1]  ;;  %v224_v1 = vld [vmem:[%s2704_s29 + $0x80] sm:$0x1] }
  0x28   : > { %v393_v12 = vunpack.c.l.bf16 %v339_v51  ;;  %v394_v13 = vunpack.c.h.bf16 %v339_v51  ;;  %v395_v14 = vunpack.c.l.bf16 %v341_v60  ;;  %v249_v15 = vunpack.c.l.bf16 %v195_v61  ;;  %v2623_v53 = vld [vmem:[%s2709_s5 + $0x48] sm:$0xff]  }
  0x29   : > { %v577_v21 = vrot.slane %v2825_v8, 1  ;;  %v579_v22 = vrot.slane %v2827_v9, 1  ;;  %v250_v24 = vunpack.c.h.bf16 %v195_v61  ;;  %v251_v25 = vunpack.c.l.bf16 %v197_v62 }
  0x2a   : > { %v2834_v26 = vadd.f32 %v393_v12, %v285_v58  ;;  %v2836_v27 = vadd.f32 %v394_v13, %v286_v2  ;;  %v2838_v30 = vadd.f32 %v395_v14, %v287_v3  ;;  %v357_v31 = vunpack.c.l.bf16 %v303_v11  ;;  %v2617_v58 = vld [vmem:[%s2704_s29 + $0x78] sm:$0xff]   ;;  %v332_v14 = vld [vmem:[%s2709_s5 + $0x80] sm:$0x1] }
  0x2b   : > { %v578_v38 = vsel %vm530_vm0, %v576_v10, %v577_v21  ;;  %v580_v39 = vsel %vm530_vm0, %v577_v21, %v579_v22  ;;  %v358_v41 = vunpack.c.h.bf16 %v303_v11  ;;  %v359_v42 = vunpack.c.l.bf16 %v305_v20  ;;  %v2625_v13 = vld [vmem:[%s2709_s5 + $0x78] sm:$0xff]  }
  0x2c   : > { %3809 = vst [vmem:[#allocation7_spill] sm:$0xff] %v2834_v26  ;;  %2289 = vmatmul.msk.bf16.gmra.mxu1 %vm676_vm1, %v2823_v7  ;;  %v2846_v44 = vpack.c.bf16 %v580_v39, %v578_v38  ;;  %v596_v45 = vrot.slane %v2834_v26, 1  ;;  %v597_v46 = vrot.slane %v2836_v27, 1  ;;  %v599_v47 = vrot.slane %v2838_v30, 1  ;;  %v236_v39 = vld [vmem:[%s2704_s29 + $0xb0] sm:$0x1] }
  0x2d   : > { %3810 = vst [vmem:[#allocation8_spill] sm:$0xff] %v2836_v27  ;;  %v2851_v48 = vadd.f32 %v357_v31, %v249_v15  ;;  %v2853_v49 = vadd.f32 %v358_v41, %v250_v24  ;;  %v2855_v50 = vadd.f32 %v359_v42, %v251_v25  ;;  %v2555_v51 = vunpack.c.l.bf16 %v2615_v37  ;;  %v2619_v15 = vld [vmem:[%s2704_s29 + $0xa8] sm:$0xff]   ;;  %v239_v27 = vld [vmem:[%s2704_s29 + $0xbc] sm:$0x1] }
  0x2e   : > { %3811 = vst [vmem:[#allocation9_spill] sm:$0xff] %v2838_v30  ;;  %2293 = vmatmul.msk.bf16.gmra.mxu2 %vm676_vm1, %v2846_v44  ;;  %v598_v60 = vsel %vm530_vm0, %v596_v45, %v597_v46  ;;  %v600_v61 = vsel %vm530_vm0, %v597_v46, %v599_v47  ;;  %v2556_v62 = vunpack.c.h.bf16 %v2615_v37  ;;  %v266_v63 = vunpack.c.l.bf16 %v212_v43  ;;  %v2627_v46 = vld [vmem:[%s2709_s5 + $0xa8] sm:$0xff]  }
  0x2f   : > { %3812 = vst [vmem:[#allocation10_spill] sm:$0xff] %v2846_v44  ;;  %v2865_v2 = vpack.c.bf16 %v600_v61, %v598_v60  ;;  %v536_v3 = vrot.slane %v2851_v48, 1  ;;  %v537_v4 = vrot.slane %v2853_v49, 1  ;;  %v539_v5 = vrot.slane %v2855_v50, 1  ;;  %v225_v30 = vld [vmem:[%s2704_s29 + $0x84] sm:$0xff]  }
  0x30   : > { %v2591_v6 = vunpack.c.l.bf16 %v2623_v53  ;;  %v2592_v10 = vunpack.c.h.bf16 %v2623_v53  ;;  %v374_v11 = vunpack.c.l.bf16 %v320_v56  ;;  %v2563_v12 = vunpack.c.l.bf16 %v2617_v58 }
  0x31   : > { %3813 = vst [vmem:[#allocation11_spill] sm:$0xff] %v2865_v2  ;;  %v538_v20 = vsel %vm530_vm0, %v536_v3, %v537_v4  ;;  %v540_v21 = vsel %vm530_vm0, %v537_v4, %v539_v5  ;;  %v2564_v22 = vunpack.c.h.bf16 %v2617_v58  ;;  %v278_v24 = vunpack.c.l.bf16 %v224_v1  ;;  %v2613_v1 = vld [vmem:[%s2704_s29 + $0x18] sm:$0xff]  }
  0x32   : > { %2297 = vmatmul.msk.bf16.gmra.mxu3 %vm676_vm1, %v2865_v2  ;;  %v2877_v25 = vpack.c.bf16 %v540_v21, %v538_v20  ;;  %v2879_v31 = vadd.f32 %v2591_v6, %v2555_v51  ;;  %v2881_v37 = vadd.f32 %v2592_v10, %v2556_v62  ;;  %v2883_v38 = vadd.f32 %v374_v11, %v266_v63  ;;  %v344_v63 = vld [vmem:[%s2709_s5 + $0xb0] sm:$0x1]  ;;  %v200_v10 = vld [vmem:[%s2704_s29 + $0x20] sm:$0x1] }
  0x33   : > { %v2599_v41 = vunpack.c.l.bf16 %v2625_v13  ;;  %v2600_v42 = vunpack.c.h.bf16 %v2625_v13  ;;  %v386_v43 = vunpack.c.l.bf16 %v332_v14  ;;  %v2571_v45 = vunpack.c.l.bf16 %v2619_v15 }
  0x34   : > { %v561_v47 = vrot.slane %v2879_v31, 1  ;;  %v562_v53 = vrot.slane %v2881_v37, 1  ;;  %v564_v51 = vrot.slane %v2883_v38, 1  ;;  %v2572_v56 = vunpack.c.h.bf16 %v2619_v15 }
  0x35   : > { %v2890_v58 = vadd.f32 %v2599_v41, %v2563_v12  ;;  %v2892_v60 = vadd.f32 %v2600_v42, %v2564_v22  ;;  %v2894_v61 = vadd.f32 %v386_v43, %v278_v24  ;;  %v290_v62 = vunpack.c.l.bf16 %v236_v39  ;;  %v2621_v24 = vld [vmem:[%s2709_s5 + $0x18] sm:$0xff]   ;;  %v308_v39 = vld [vmem:[%s2709_s5 + $0x20] sm:$0x1] }
  0x36   : > { %2285 = vmatmul.msk.bf16.gmra.mxu0 %vm676_vm1, %v2877_v25  ;;  %v563_v3 = vsel %vm530_vm0, %v561_v47, %v562_v53  ;;  %v565_v4 = vsel %vm530_vm0, %v562_v53, %v564_v51  ;;  %v2607_v5 = vunpack.c.l.bf16 %v2627_v46  ;;  %v2608_v6 = vunpack.c.h.bf16 %v2627_v46  ;;  %v213_v41 = vld [vmem:[%s2704_s29 + $0x54] sm:$0xff]   ;;  %v215_v53 = vld [vmem:[%s2704_s29 + $0x5c] sm:$0x1] }
  0x37   : > { %3814 = vst [vmem:[#allocation12_spill] sm:$0xff] %v2890_v58  ;;  %v2903_v11 = vpack.c.bf16 %v565_v4, %v563_v3  ;;  %v581_v12 = vrot.slane %v2890_v58, 1  ;;  %v582_v13 = vrot.slane %v2892_v60, 1  ;;  %v584_v14 = vrot.slane %v2894_v61, 1  ;;  %v321_v3 = vld [vmem:[%s2709_s5 + $0x54] sm:$0xff]  }
  0x38   : > { %3815 = vst [vmem:[#allocation13_spill] sm:$0xff] %v2892_v60  ;;  %v398_v15 = vunpack.c.l.bf16 %v344_v63  ;;  %v2908_v20 = vadd.f32 %v2607_v5, %v2571_v45  ;;  %v2910_v21 = vadd.f32 %v2608_v6, %v2572_v56  ;;  %v2547_v22 = vunpack.c.l.bf16 %v2613_v1 }
  0x39   : > { %3816 = vst [vmem:[#allocation14_spill] sm:$0xff] %v2894_v61  ;;  %v583_v42 = vsel %vm530_vm0, %v581_v12, %v582_v13  ;;  %v585_v43 = vsel %vm530_vm0, %v582_v13, %v584_v14  ;;  %v2548_v46 = vunpack.c.h.bf16 %v2613_v1  ;;  %v254_v47 = vunpack.c.l.bf16 %v200_v10  ;;  %v323_v12 = vld [vmem:[%s2709_s5 + $0x5c] sm:$0x1] }
  0x3a   : > { %3817 = vst [vmem:[#allocation15_spill] sm:$0xff] %v2908_v20  ;;  %v2918_v51 = vpack.c.bf16 %v585_v43, %v583_v42  ;;  %v2920_v63 = vadd.f32 %v398_v15, %v290_v62  ;;  %v601_v45 = vrot.slane %v2908_v20, 1  ;;  %v602_v56 = vrot.slane %v2910_v21, 1 }
  0x3b   : > { %3818 = vst [vmem:[#allocation16_spill] sm:$0xff] %v2910_v21  ;;  %v2583_v4 = vunpack.c.l.bf16 %v2621_v24  ;;  %v2584_v5 = vunpack.c.h.bf16 %v2621_v24  ;;  %v362_v6 = vunpack.c.l.bf16 %v308_v39  ;;  %v267_v2 = vunpack.c.l.bf16 %v213_v41  ;;  %v227_v21 = vld [vmem:[%s2704_s29 + $0x8c] sm:$0x1] }
  0x3c   : > { %3819 = vst [vmem:[#allocation17_spill] sm:$0xff] %v2918_v51  ;;  %2290 = vmatmul.msk.bf16.gmra.mxu1 %vm676_vm1, %v2903_v11  ;;  %v603_v1 = vsel %vm530_vm0, %v601_v45, %v602_v56  ;;  %v604_v62 = vrot.slane %v2920_v63, 1  ;;  %v268_v10 = vunpack.c.h.bf16 %v213_v41  ;;  %v269_v13 = vunpack.c.l.bf16 %v215_v53  ;;  %v333_v41 = vld [vmem:[%s2709_s5 + $0x84] sm:$0xff]  }
  0x3d   : > { %3820 = vst [vmem:[#allocation18_spill] sm:$0xff] %v2920_v63  ;;  %v2931_v14 = vadd.f32 %v2583_v4, %v2547_v22  ;;  %v2933_v15 = vadd.f32 %v2584_v5, %v2548_v46  ;;  %v2935_v24 = vadd.f32 %v362_v6, %v254_v47  ;;  %v375_v39 = vunpack.c.l.bf16 %v321_v3 }
  0x3e   : > { %2294 = vmatmul.msk.bf16.gmra.mxu2 %vm676_vm1, %v2918_v51  ;;  %v605_v42 = vsel %vm530_vm0, %v602_v56, %v604_v62  ;;  %v376_v43 = vunpack.c.h.bf16 %v321_v3  ;;  %v377_v45 = vunpack.c.l.bf16 %v323_v12  ;;  %v279_v63 = vunpack.c.l.bf16 %v225_v30  ;;  %v335_v3 = vld [vmem:[%s2709_s5 + $0x8c] sm:$0x1]  ;;  %v237_v12 = vld [vmem:[%s2704_s29 + $0xb4] sm:$0xff]  }
  0x3f   : > { %v2942_v22 = vpack.c.bf16 %v605_v42, %v603_v1  ;;  %v541_v46 = vrot.slane %v2931_v14, 1  ;;  %v542_v47 = vrot.slane %v2933_v15, 1  ;;  %v544_v53 = vrot.slane %v2935_v24, 1 }
  0x40   : > { %v2947_v4 = vadd.f32 %v375_v39, %v267_v2  ;;  %v2949_v5 = vadd.f32 %v376_v43, %v268_v10  ;;  %v2951_v6 = vadd.f32 %v377_v45, %v269_v13  ;;  %v280_v56 = vunpack.c.h.bf16 %v225_v30  ;;  %v2536_v39 = vld [vmem:[%s3752_s2 + $0x68] sm:$0xff] }
  0x41   : > { %3821 = vst [vmem:[#allocation19_spill] sm:$0xff] %v2942_v22  ;;  %v543_v62 = vsel %vm530_vm0, %v541_v46, %v542_v47  ;;  %v545_v1 = vsel %vm530_vm0, %v542_v47, %v544_v53  ;;  %v281_v42 = vunpack.c.l.bf16 %v227_v21  ;;  %v387_v20 = vunpack.c.l.bf16 %v333_v41  ;;  %v345_v47 = vld [vmem:[%s2709_s5 + $0xb4] sm:$0xff]   ;;  %v347_v53 = vld [vmem:[%s2709_s5 + $0xbc] sm:$0x1]  ;;  %1748 = vmatpush.bf16.msra.mxu2 %v2536_v39 }
  0x42   : > { %2298 = vmatmul.msk.bf16.gmra.mxu3 %vm676_vm1, %v2942_v22  ;;  %v2960_v2 = vpack.c.bf16 %v545_v1, %v543_v62  ;;  %v566_v30 = vrot.slane %v2947_v4, 1  ;;  %v567_v10 = vrot.slane %v2949_v5, 1  ;;  %v569_v13 = vrot.slane %v2951_v6, 1  ;;  %v201_v62 = vld [vmem:[%s2704_s29 + $0x24] sm:$0xff]  }
  0x43   : > { %v388_v43 = vunpack.c.h.bf16 %v333_v41  ;;  %v389_v21 = vunpack.c.l.bf16 %v335_v3  ;;  %v2968_v45 = vadd.f32 %v387_v20, %v279_v63  ;;  %v291_v46 = vunpack.c.l.bf16 %v237_v12  ;;  %v309_v63 = vld [vmem:[%s2709_s5 + $0x24] sm:$0xff]  }
  0x44   : > { %v568_v1 = vsel %vm530_vm0, %v566_v30, %v567_v10  ;;  %v570_v22 = vsel %vm530_vm0, %v567_v10, %v569_v13  ;;  %v292_v26 = vunpack.c.h.bf16 %v237_v12  ;;  %v293_v19 = vunpack.c.l.bf16 %v239_v27  ;;  %v2538_v27 = vld [vmem:[%s3752_s2 + $0x78] sm:$0xff] }
  0x45   : > { %3822 = vst [vmem:[#allocation20_spill] sm:$0xff] %v2968_v45  ;;  %v2976_v55 = vpack.c.bf16 %v570_v22, %v568_v1  ;;  %v2978_v41 = vadd.f32 %v388_v43, %v280_v56  ;;  %v2980_v3 = vadd.f32 %v389_v21, %v281_v42  ;;  %v586_v20 = vrot.slane %v2968_v45, 1  ;;  %v2534_v22 = vld [vmem:[%s3752_s2 + $0x58] sm:$0xff]  ;;  %v2540_v56 = vld [vmem:[%s3752_s2 + $0x88] sm:$0xff]  ;;  %1900 = vmatpush.bf16.msra.mxu3 %v2538_v27 }
  0x46   : > { %2286 = vmatmul.msk.bf16.gmra.mxu0 %vm676_vm1, %v2960_v2  ;;  %v399_v30 = vunpack.c.l.bf16 %v345_v47  ;;  %v400_v51 = vunpack.c.h.bf16 %v345_v47  ;;  %v401_v10 = vunpack.c.l.bf16 %v347_v53  ;;  %v255_v12 = vunpack.c.l.bf16 %v201_v62  ;;  %1606 = vmatpush.bf16.msra.mxu1 %v2534_v22 }
  0x47   : > { %3823 = vst [vmem:[#allocation21_spill] sm:$0xff] %v2976_v55  ;;  %v587_v42 = vrot.slane %v2978_v41, 1  ;;  %v589_v13 = vrot.slane %v2980_v3, 1  ;;  %v256_v39 = vunpack.c.h.bf16 %v201_v62  ;;  %v257_v43 = vunpack.c.l.bf16 %v203_v59  ;;  %2049 = vmatpush.bf16.msra.mxu0 %v2540_v56 }
  0x48   : > { %3824 = vst [vmem:[#allocation22_spill] sm:$0xff] %v2978_v41  ;;  %v2998_v21 = vadd.f32 %v399_v30, %v291_v46  ;;  %v3000_v47 = vadd.f32 %v400_v51, %v292_v26  ;;  %v3002_v53 = vadd.f32 %v401_v10, %v293_v19  ;;  %v363_v1 = vunpack.c.l.bf16 %v309_v63 }
  0x49   : > { %v588_v45 = vsel %vm530_vm0, %v586_v20, %v587_v42  ;;  %v590_v61 = vsel %vm530_vm0, %v587_v42, %v589_v13  ;;  %v364_v60 = vunpack.c.h.bf16 %v309_v63  ;;  %v365_v58 = vunpack.c.l.bf16 %v311_v54 }
  0x4a   : > { %v3006_v41 = vpack.c.bf16 %v590_v61, %v588_v45  ;;  %v606_v59 = vrot.slane %v2998_v21, 1  ;;  %v607_v46 = vrot.slane %v3000_v47, 1  ;;  %v609_v26 = vrot.slane %v3002_v53, 1 }
  0x4b   : > { %v417_v19 = vadd.f32 %v363_v1, %v255_v12  ;;  %v418_v51 = vadd.f32 %v364_v60, %v256_v39  ;;  %v419_v62 = vadd.f32 %v365_v58, %v257_v43  ;;  %v964_v12 = vrot.slane %v2773_v16, 2 }
  0x4c   : > { %2291 = vmatmul.msk.bf16.gmra.mxu1 %vm676_vm1, %v2976_v55  ;;  %v608_v20 = vsel %vm530_vm0, %v606_v59, %v607_v46  ;;  %v610_v63 = vsel %vm530_vm0, %v607_v46, %v609_v26  ;;  %v965_v27 = vrot.slane %v2775_v17, 2  ;;  %v967_v22 = vrot.slane %v2777_v18, 2 }
  0x4d   : > { %v546_v54 = vrot.slane %v417_v19, 1  ;;  %v547_v30 = vrot.slane %v418_v51, 1  ;;  %v549_v61 = vrot.slane %v419_v62, 1  ;;  %v3017_v45 = vpack.c.bf16 %v610_v63, %v608_v20 }
  0x4e   : > { %2295 = vmatmul.msk.bf16.gmra.mxu2 %vm676_vm1, %v3006_v41  ;;  %v966_v56 = vsel %vm963_vm2, %v964_v12, %v965_v27  ;;  %v968_v42 = vsel %vm963_vm2, %v965_v27, %v967_v22  ;;  %v462_v13 = vpack.c.bf16 %v2775_v17, %v2773_v16  ;;  %v463_v43 = vpack.c.bf16 %v2853_v49, %v2851_v48 }
  0x4f   : > { %v548_v10 = vsel %vm530_vm0, %v546_v54, %v547_v30  ;;  %v550_v60 = vsel %vm530_vm0, %v547_v30, %v549_v61  ;;  %v1076_v39 = vpack.c.bf16 %v968_v42, %v966_v56  ;;  %v969_v18 = vrot.slane %v2851_v48, 2 }
  0x50   : > { %v3023_v58 = vpack.c.bf16 %v550_v60, %v548_v10  ;;  %v970_v1 = vrot.slane %v2853_v49, 2  ;;  %v972_v59 = vrot.slane %v2855_v50, 2  ;;  %v3053_v48 = vpack.c.bf16 %v2933_v15, %v2931_v14 }
  0x51   : > { %v974_v49 = vrot.slane %v2931_v14, 2  ;;  %v975_v50 = vrot.slane %v2933_v15, 2  ;;  %v3070_v14 = vpack.c.bf16 %v418_v51, %v417_v19  ;;  %v979_v15 = vrot.slane %v417_v19, 2 }
  0x52   : > { %2299 = vmatmul.msk.bf16.gmra.mxu3 %vm676_vm1, %v3017_v45  ;;  %v971_v16 = vsel %vm963_vm2, %v969_v18, %v970_v1  ;;  %v973_v17 = vsel %vm963_vm2, %v970_v1, %v972_v59  ;;  %v982_v54 = vrot.slane %v419_v62, 2  ;;  %v3086_v19 = vpack.c.bf16 %v2723_v28, %v2720_v23 }
  0x53   : > { %v3046_v46 = vpack.c.bf16 %v973_v17, %v971_v16  ;;  %v976_v26 = vsel %vm963_vm2, %v974_v49, %v975_v50  ;;  %v985_v62 = vrot.slane %v2723_v28, 2  ;;  %v987_v60 = vrot.slane %v2725_v29, 2 }
  0x55   : > { %v988_v27 = vsel %vm963_vm2, %v985_v62, %v987_v60 }
  0x56   : > { %2287 = vmatmul.msk.bf16.gmra.mxu0 %vm676_vm1, %v3023_v58 }
  0x5c   : > { %2308 = vmatmul.msk.bf16.vlgmr.msrb.gmra.mxu1 %vm676_vm1, %v462_v13  ;;  %v989_v13 = vrot.slane %v2788_v32, 2 }
  0x5e   : > { %2336 = vmatmul.msk.bf16.vlgmr.msrb.gmra.mxu2 %vm676_vm1, %v1076_v39  ;;  %v990_v39 = vrot.slane %v2790_v33, 2 }
  0x60   : > { %v991_v1 = vsel %vm963_vm2, %v989_v13, %v990_v39 }
  0x62   : > { %2364 = vmatmul.msk.bf16.vlgmr.msrb.gmra.mxu3 %vm676_vm1, %v463_v43 }
  0x66   : > { %2392 = vmatmul.msk.bf16.vlgmr.msrb.gmra.mxu0 %vm676_vm1, %v2877_v25  ;;  %v977_v25 = vrot.slane %v2935_v24, 2  ;;  %v980_v24 = vrot.slane %v418_v51, 2  ;;  %v984_v51 = vrot.slane %v2720_v23, 2  ;;  %v3107_v23 = vpack.c.bf16 %v2790_v33, %v2788_v32 }
  0x68   : > { %v978_v20 = vsel %vm963_vm2, %v975_v50, %v977_v25  ;;  %v981_v30 = vsel %vm963_vm2, %v979_v15, %v980_v24  ;;  %v983_v61 = vsel %vm963_vm2, %v980_v24, %v982_v54  ;;  %v986_v12 = vsel %vm963_vm2, %v984_v51, %v985_v62 }
  0x69   : > { %v3064_v63 = vpack.c.bf16 %v978_v20, %v976_v26  ;;  %v3078_v10 = vpack.c.bf16 %v983_v61, %v981_v30  ;;  %v3099_v56 = vpack.c.bf16 %v988_v27, %v986_v12  ;;  %v994_v20 = vrot.slane %v2879_v31, 2 }
  0x6a   : > { %v995_v15 = vrot.slane %v2881_v37, 2  ;;  %v997_v24 = vrot.slane %v2883_v38, 2  ;;  %v3177_v38 = vpack.c.bf16 %v2949_v5, %v2947_v4 }
  0x6c   : > { %2309 = vmatmul.msk.bf16.gmra.mxu1 %vm676_vm1, %v463_v43  ;;  %v992_v43 = vrot.slane %v2792_v36, 2  ;;  %v3142_v36 = vpack.c.bf16 %v2881_v37, %v2879_v31  ;;  %v996_v30 = vsel %vm963_vm2, %v994_v20, %v995_v15  ;;  %v998_v61 = vsel %vm963_vm2, %v995_v15, %v997_v24  ;;  %3829 = vst [vmem:[#allocation27_spill] sm:$0xff] %v3177_v38  ;;  %v2537_v15 = vld [vmem:[%s3752_s2 + $0x70] sm:$0xff] }
  0x6d   : > { %v3165_v60 = vpack.c.bf16 %v998_v61, %v996_v30  ;;  %1901 = vmatpush.bf16.msra.mxu3 %v2537_v15 }
  0x6e   : > { %2337 = vmatmul.msk.bf16.gmra.mxu2 %vm676_vm1, %v3046_v46  ;;  %v993_v59 = vsel %vm963_vm2, %v990_v39, %v992_v43  ;;  %v999_v39 = vrot.slane %v2947_v4, 2  ;;  %v1000_v43 = vrot.slane %v2949_v5, 2  ;;  %v2533_v4 = vld [vmem:[%s3752_s2 + $0x50] sm:$0xff] }
  0x6f   : > { %v3130_v49 = vpack.c.bf16 %v993_v59, %v991_v1  ;;  %3827 = vst [vmem:[#allocation25_spill] sm:$0xff] %v3165_v60  ;;  %v1002_v1 = vrot.slane %v2951_v6, 2  ;;  %v2535_v59 = vld [vmem:[%s3752_s2 + $0x60] sm:$0xff]  ;;  %1607 = vmatpush.bf16.msra.mxu1 %v2533_v4 }
  0x70   : > { %1749 = vmatpush.bf16.msra.mxu2 %v2535_v59  ;;  %v1001_v5 = vsel %vm963_vm2, %v999_v39, %v1000_v43 }
  0x71   : > { %v1003_v6 = vsel %vm963_vm2, %v1000_v43, %v1002_v1  ;;  %v3224_v43 = vpack.c.bf16 %v2731_v35, %v2729_v34 }
  0x72   : > { %2365 = vmatmul.msk.bf16.gmra.mxu3 %vm676_vm1, %v3053_v48  ;;  %v3209_v61 = vpack.c.bf16 %v1003_v6, %v1001_v5  ;;  %v1004_v5 = vrot.slane %v2729_v34, 2  ;;  %v1007_v6 = vrot.slane %v2736_v40, 2  ;;  %v3258_v40 = vpack.c.bf16 %v2825_v8, %v2806_v57 }
  0x73   : > { %3833 = vst [vmem:[#allocation31_spill] sm:$0xff] %v3224_v43 }
  0x74   : > { %3831 = vst [vmem:[#allocation29_spill] sm:$0xff] %v3209_v61 }
  0x76   : > { %2393 = vmatmul.msk.bf16.gmra.mxu0 %vm676_vm1, %v2960_v2 }
  0x7c   : > { %2310 = vmatmul.msk.bf16.gmra.mxu1 %vm676_vm1, %v3053_v48 }
  0x7e   : > { %2338 = vmatmul.msk.bf16.gmra.mxu2 %vm676_vm1, %v3064_v63 }
  0x82   : > { %2366 = vmatmul.msk.bf16.gmra.mxu3 %vm676_vm1, %v3070_v14 }
  0x86   : > { %2394 = vmatmul.msk.bf16.gmra.mxu0 %vm676_vm1, %v3023_v58 }
  0x8c   : > { %2311 = vmatmul.msk.bf16.gmra.mxu1 %vm676_vm1, %v3070_v14 }
  0x8e   : > { %2339 = vmatmul.msk.bf16.gmra.mxu2 %vm676_vm1, %v3078_v10 }
  0x92   : > { %2367 = vmatmul.msk.bf16.gmra.mxu3 %vm676_vm1, %v3086_v19 }
  0x96   : > { %2395 = vmatmul.msk.bf16.gmra.mxu0 %vm676_vm1, %v2745_v52 }
  0x99   : > { %v3097_v22 = vpop.f32.mrf.mxu1 }
  0x9c   : > { %2312 = vmatmul.msk.bf16.gmra.mxu1 %vm676_vm1, %v3086_v19 }
  0x9e   : > { %2340 = vmatmul.msk.bf16.gmra.mxu2 %vm676_vm1, %v3099_v56 }
  0xa1   : > { %v3109_v28 = vpop.f32.mrf.mxu2  ;;  %v3111_v29 = vpop.f32.mrf.mxu1 }
  0xa2   : > { %2368 = vmatmul.msk.bf16.gmra.mxu3 %vm676_vm1, %v3107_v23 }
  0xa3   : > { %v3115_v42 = vpop.f32.mrf.mxu0 }
  0xa5   : > { %v3120_v18 = vpop.f32.mrf.mxu3 }
  0xa6   : > { %2396 = vmatmul.msk.bf16.gmra.mxu0 %vm676_vm1, %v2823_v7 }
  0xa9   : > { %v3126_v16 = vpop.f32.mrf.mxu2  ;;  %v3128_v17 = vpop.f32.mrf.mxu1 }
  0xab   : > { %v3132_v32 = vpop.f32.mrf.mxu0 }
  0xac   : > { %2313 = vmatmul.msk.bf16.gmra.mxu1 %vm676_vm1, %v3107_v23 }
  0xad   : > { %v3136_v33 = vpop.f32.mrf.mxu3 }
  0xae   : > { %3825 = vst [vmem:[#allocation23_spill] sm:$0xff] %v3136_v33  ;;  %2341 = vmatmul.msk.bf16.gmra.mxu2 %vm676_vm1, %v3130_v49 }
  0xb1   : > { %v3144_v50 = vpop.f32.mrf.mxu2  ;;  %v3146_v25 = vpop.f32.mrf.mxu1 }
  0xb2   : > { %2369 = vmatmul.msk.bf16.gmra.mxu3 %vm676_vm1, %v3142_v36 }
  0xb3   : > { %v3150_v26 = vpop.f32.mrf.mxu0 }
  0xb5   : > { %v3155_v54 = vpop.f32.mrf.mxu3 }
  0xb6   : > { %3826 = vst [vmem:[#allocation24_spill] sm:$0xff] %v3155_v54  ;;  %2397 = vmatmul.msk.bf16.gmra.mxu0 %vm676_vm1, %v2903_v11 }
  0xb9   : > { %v3161_v51 = vpop.f32.mrf.mxu2  ;;  %v3163_v62 = vpop.f32.mrf.mxu1 }
  0xbb   : > { %v3167_v31 = vpop.f32.mrf.mxu0 }
  0xbc   : > { %2314 = vmatmul.msk.bf16.gmra.mxu1 %vm676_vm1, %v3142_v36 }
  0xbd   : > { %v3171_v37 = vpop.f32.mrf.mxu3 }
  0xbe   : > { %3828 = vst [vmem:[#allocation26_spill] sm:$0xff] %v3171_v37  ;;  %2342 = vmatmul.msk.bf16.gmra.mxu2 %vm676_vm1, %v3165_v60 }
  0xc1   : > { %v3179_v12 = vpop.f32.mrf.mxu2  ;;  %v3181_v27 = vpop.f32.mrf.mxu1 }
  0xc2   : > { %2370 = vmatmul.msk.bf16.gmra.mxu3 %vm676_vm1, %v3177_v38 }
  0xc3   : > { %v3185_v13 = vpop.f32.mrf.mxu0 }
  0xc5   : > { %v3193_v20 = vpop.f32.mrf.mxu3 }
  0xc6   : > { %3830 = vst [vmem:[#allocation28_spill] sm:$0xff] %v3193_v20  ;;  %2398 = vmatmul.msk.bf16.gmra.mxu0 %vm676_vm1, %v2976_v55  ;;  %v2539_v20 = vld [vmem:[%s3752_s2 + $0x80] sm:$0xff] }
  0xc7   : > { %2050 = vmatpush.bf16.msra.mxu0 %v2539_v20  ;;  %v1005_v20 = vrot.slane %v2731_v35, 2 }
  0xc9   : > { %v3205_v24 = vpop.f32.mrf.mxu2  ;;  %v3207_v30 = vpop.f32.mrf.mxu1  ;;  %v1006_v37 = vsel %vm963_vm2, %v1004_v5, %v1005_v20 }
  0xcb   : > { %v3211_v59 = vpop.f32.mrf.mxu0 }
  0xcc   : > { %2315 = vmatmul.msk.bf16.gmra.mxu1 %vm676_vm1, %v3177_v38 }
  0xcd   : > { %v3218_v39 = vpop.f32.mrf.mxu3 }
  0xce   : > { %3832 = vst [vmem:[#allocation30_spill] sm:$0xff] %v3218_v39  ;;  %2343 = vmatmul.msk.bf16.gmra.mxu2 %vm676_vm1, %v3209_v61  ;;  %v1008_v61 = vsel %vm963_vm2, %v1005_v20, %v1007_v6  ;;  %v1010_v6 = vrot.slane %v2825_v8, 2 }
  0xcf   : > { %v3246_v33 = vpack.c.bf16 %v1008_v61, %v1006_v37  ;;  %v1009_v61 = vrot.slane %v2806_v57, 2 }
  0xd1   : > { %v3226_v1 = vpop.f32.mrf.mxu2  ;;  %v3228_v15 = vpop.f32.mrf.mxu1  ;;  %3835 = vst [vmem:[#allocation33_spill] sm:$0xff] %v3246_v33 }
  0xd2   : > { %2371 = vmatmul.msk.bf16.gmra.mxu3 %vm676_vm1, %v3224_v43 }
  0xd3   : > { %v3232_v4 = vpop.f32.mrf.mxu0 }
  0xd5   : > { %v3237_v39 = vpop.f32.mrf.mxu3 }
  0xd6   : > { %3834 = vst [vmem:[#allocation32_spill] sm:$0xff] %v3237_v39  ;;  %2399 = vmatmul.msk.bf16.gmra.mxu0 %vm676_vm1, %v2761_v0  ;;  %v1011_v0 = vsel %vm963_vm2, %v1009_v61, %v1010_v6 }
  0xd9   : > { %v3243_v55 = vpop.f32.mrf.mxu2  ;;  %v883_v54 = vpop.f32.mrf.mxu1 }
  0xda   : > { %v884_v38 = vadd.f32 %v883_v54, %v3115_v42 }
  0xdb   : > { %v3248_v34 = vpop.f32.mrf.mxu0 }
  0xdc   : > { %2316 = vmatmul.msk.bf16.gmra.mxu1 %vm676_vm1, %v3224_v43 }
  0xdd   : > { %v3252_v35 = vpop.f32.mrf.mxu3 }
  0xde   : > { %3836 = vst [vmem:[#allocation34_spill] sm:$0xff] %v3252_v35  ;;  %2344 = vmatmul.msk.bf16.gmra.mxu2 %vm676_vm1, %v3246_v33  ;;  %v1012_v35 = vrot.slane %v2827_v9, 2 }
  0xe0   : > { %v1013_v43 = vsel %vm963_vm2, %v1010_v6, %v1012_v35  ;;  %v3839_v35 = vld [vmem:[#allocation13_spill] sm:$0xff] }
  0xe1   : > { %v1166_v5 = vpop.f32.mrf.mxu2  ;;  %v885_v20 = vpop.f32.mrf.mxu1  ;;  %v1015_v6 = vrot.slane %v3839_v35, 2 }
  0xe2   : > { %2372 = vmatmul.msk.bf16.gmra.mxu3 %vm676_vm1, %v3258_v40  ;;  %v1246_v42 = vadd.f32 %v1166_v5, %v884_v38  ;;  %v886_v54 = vadd.f32 %v885_v20, %v3132_v32  ;;  %v3273_v20 = vpack.c.bf16 %v1013_v43, %v1011_v0 }
  0xe3   : > { %v1460_v37 = vpop.f32.mrf.mxu0 }
  0xe5   : > { %v1308_v39 = vpop.f32.mrf.mxu3 }
  0xe6   : > { %2400 = vmatmul.msk.bf16.gmra.mxu0 %vm676_vm1, %v2846_v44  ;;  %v1388_v33 = vadd.f32 %v1308_v39, %v1246_v42  ;;  %v3838_v39 = vld [vmem:[#allocation12_spill] sm:$0xff] }
  0xe7   : > { %v1014_v61 = vrot.slane %v3838_v39, 2 }
  0xe8   : > { %v3270_v60 = vadd.f32 %v1460_v37, %v1388_v33  ;;  %v3281_v33 = vpack.c.bf16 %v3839_v35, %v3838_v39 }
  0xe9   : > { %v1168_v38 = vpop.f32.mrf.mxu2  ;;  %v888_v32 = vpop.f32.mrf.mxu1 }
  0xea   : > { %3837 = vst [vmem:[#allocation35_spill] sm:$0xff] %v3270_v60  ;;  %v1247_v5 = vadd.f32 %v1168_v38, %v886_v54  ;;  %v889_v57 = vadd.f32 %v888_v32, %v3150_v26  ;;  %v3841_v38 = vld [vmem:[#allocation14_spill] sm:$0xff] }
  0xeb   : > { %v1462_v8 = vpop.f32.mrf.mxu0  ;;  %v1017_v32 = vrot.slane %v3841_v38, 2 }
  0xec   : > { %2317 = vmatmul.msk.bf16.gmra.mxu1 %vm676_vm1, %v3258_v40 }
  0xed   : > { %v1310_v9 = vpop.f32.mrf.mxu3 }
  0xee   : > { %v1389_v44 = vadd.f32 %v1310_v9, %v1247_v5  ;;  %2345 = vmatmul.msk.bf16.gmra.mxu2 %vm676_vm1, %v3273_v20  ;;  %v3842_v9 = vld [vmem:[#allocation17_spill] sm:$0xff] }
  0xf0   : > { %v3283_v42 = vadd.f32 %v1462_v8, %v1389_v44  ;;  %v1016_v8 = vsel %vm963_vm2, %v1014_v61, %v1015_v6  ;;  %v3844_v61 = vld [vmem:[#allocation22_spill] sm:$0xff] }
  0xf1   : > { %v1171_v54 = vpop.f32.mrf.mxu2  ;;  %v890_v37 = vpop.f32.mrf.mxu1 }
  0xf2   : > { %3840 = vst [vmem:[#allocation12_spill] sm:$0xff] %v3283_v42  ;;  %2373 = vmatmul.msk.bf16.gmra.mxu3 %vm676_vm1, %v3281_v33  ;;  %v1248_v0 = vadd.f32 %v1171_v54, %v889_v57  ;;  %v891_v26 = vadd.f32 %v890_v37, %v3167_v31  ;;  %v1018_v42 = vsel %vm963_vm2, %v1015_v6, %v1017_v32 }
  0xf3   : > { %v1465_v43 = vpop.f32.mrf.mxu0  ;;  %v3298_v37 = vpack.c.bf16 %v1018_v42, %v1016_v8  ;;  %v1020_v8 = vrot.slane %v3844_v61, 2 }
  0xf5   : > { %v1313_v5 = vpop.f32.mrf.mxu3 }
  0xf6   : > { %2401 = vmatmul.msk.bf16.gmra.mxu0 %vm676_vm1, %v3842_v9  ;;  %v1390_v44 = vadd.f32 %v1313_v5, %v1248_v0  ;;  %v3843_v0 = vld [vmem:[#allocation20_spill] sm:$0xff] }
  0xf8   : > { %v3295_v60 = vadd.f32 %v1465_v43, %v1390_v44  ;;  %v3306_v43 = vpack.c.bf16 %v3844_v61, %v3843_v0  ;;  %v1019_v44 = vrot.slane %v3843_v0, 2 }
  0xf9   : > { %v1173_v57 = vpop.f32.mrf.mxu2  ;;  %v893_v31 = vpop.f32.mrf.mxu1 }
  0xfa   : > { %v1249_v54 = vadd.f32 %v1173_v57, %v891_v26  ;;  %v894_v39 = vadd.f32 %v893_v31, %v3185_v13  ;;  %v1022_v57 = vrot.slane %v2980_v3, 2 }
  0xfb   : > { %v1467_v35 = vpop.f32.mrf.mxu0 }
  0xfc   : > { %2318 = vmatmul.msk.bf16.gmra.mxu1 %vm676_vm1, %v3281_v33 }
  0xfd   : > { %v1315_v38 = vpop.f32.mrf.mxu3 }
  0xfe   : > { %v1391_v9 = vadd.f32 %v1315_v38, %v1249_v54  ;;  %2346 = vmatmul.msk.bf16.gmra.mxu2 %vm676_vm1, %v3298_v37  ;;  %v1021_v54 = vsel %vm963_vm2, %v1019_v44, %v1020_v8  ;;  %v3848_v44 = vld [vmem:[#allocation3_spill] sm:$0xff] }
 0x100   : > { %v3308_v6 = vadd.f32 %v1467_v35, %v1391_v9  ;;  %v1023_v35 = vsel %vm963_vm2, %v1020_v8, %v1022_v57 }
 0x101   : > { %v1176_v26 = vpop.f32.mrf.mxu2  ;;  %v895_v32 = vpop.f32.mrf.mxu1 }
 0x102   : > { %3845 = vst [vmem:[#allocation13_spill] sm:$0xff] %v3308_v6  ;;  %2374 = vmatmul.msk.bf16.gmra.mxu3 %vm676_vm1, %v3306_v43  ;;  %v1250_v13 = vadd.f32 %v1176_v26, %v894_v39  ;;  %v896_v42 = vadd.f32 %v895_v32, %v3211_v59  ;;  %v3323_v32 = vpack.c.bf16 %v1023_v35, %v1021_v54  ;;  %v1025_v35 = vrot.slane %v3848_v44, 2 }
 0x103   : > { %v1470_v5 = vpop.f32.mrf.mxu0 }
 0x105   : > { %v1318_v31 = vpop.f32.mrf.mxu3 }
 0x106   : > { %2402 = vmatmul.msk.bf16.gmra.mxu0 %vm676_vm1, %v3006_v41  ;;  %v1392_v9 = vadd.f32 %v1318_v31, %v1250_v13  ;;  %v3847_v13 = vld [vmem:[#allocation2_spill] sm:$0xff] }
 0x107   : > { %v1024_v54 = vrot.slane %v3847_v13, 2 }
 0x108   : > { %v3320_v38 = vadd.f32 %v1470_v5, %v1392_v9  ;;  %v3331_v5 = vpack.c.bf16 %v3848_v44, %v3847_v13 }
 0x109   : > { %v1178_v39 = vpop.f32.mrf.mxu2  ;;  %v898_v59 = vpop.f32.mrf.mxu1 }
 0x10a   : > { %3846 = vst [vmem:[#allocation14_spill] sm:$0xff] %v3320_v38  ;;  %v1251_v26 = vadd.f32 %v1178_v39, %v896_v42  ;;  %v899_v0 = vadd.f32 %v898_v59, %v3232_v4  ;;  %v3850_v39 = vld [vmem:[#allocation4_spill] sm:$0xff] }
 0x10b   : > { %v1472_v61 = vpop.f32.mrf.mxu0  ;;  %v1027_v59 = vrot.slane %v3850_v39, 2 }
 0x10c   : > { %2319 = vmatmul.msk.bf16.gmra.mxu1 %vm676_vm1, %v3306_v43 }
 0x10d   : > { %v1320_v3 = vpop.f32.mrf.mxu3 }
 0x10e   : > { %v1393_v6 = vadd.f32 %v1320_v3, %v1251_v26  ;;  %2347 = vmatmul.msk.bf16.gmra.mxu2 %vm676_vm1, %v3323_v32  ;;  %v3851_v3 = vld [vmem:[#allocation6_spill] sm:$0xff] }
 0x110   : > { %v3333_v8 = vadd.f32 %v1472_v61, %v1393_v6  ;;  %v1026_v61 = vsel %vm963_vm2, %v1024_v54, %v1025_v35  ;;  %v3855_v54 = vld [vmem:[#allocation8_spill] sm:$0xff] }
 0x111   : > { %v1181_v42 = vpop.f32.mrf.mxu2  ;;  %v900_v57 = vpop.f32.mrf.mxu1 }
 0x112   : > { %3849 = vst [vmem:[#allocation20_spill] sm:$0xff] %v3333_v8  ;;  %2375 = vmatmul.msk.bf16.gmra.mxu3 %vm676_vm1, %v3331_v5  ;;  %v1252_v4 = vadd.f32 %v1181_v42, %v899_v0  ;;  %v901_v31 = vadd.f32 %v900_v57, %v3248_v34  ;;  %v1028_v8 = vsel %vm963_vm2, %v1025_v35, %v1027_v59 }
 0x113   : > { %v1475_v9 = vpop.f32.mrf.mxu0  ;;  %v3347_v57 = vpack.c.bf16 %v1028_v8, %v1026_v61 }
 0x115   : > { %v1323_v26 = vpop.f32.mrf.mxu3  ;;  %3853 = vst [vmem:[#allocation2_spill] sm:$0xff] %v3347_v57 }
 0x116   : > { %2403 = vmatmul.msk.bf16.gmra.mxu0 %vm676_vm1, %v3851_v3  ;;  %v1394_v6 = vadd.f32 %v1323_v26, %v1252_v4  ;;  %v3854_v4 = vld [vmem:[#allocation7_spill] sm:$0xff] }
 0x117   : > { %v3355_v26 = vpack.c.bf16 %v3855_v54, %v3854_v4  ;;  %v1029_v61 = vrot.slane %v3854_v4, 2 }
 0x118   : > { %v3345_v38 = vadd.f32 %v1475_v9, %v1394_v6 }
 0x119   : > { %v1183_v0 = vpop.f32.mrf.mxu2  ;;  %v903_v34 = vpop.f32.mrf.mxu1 }
 0x11a   : > { %3852 = vst [vmem:[#allocation22_spill] sm:$0xff] %v3345_v38  ;;  %v1253_v42 = vadd.f32 %v1183_v0, %v901_v31  ;;  %v904_v9 = vadd.f32 %v903_v34, %v3097_v22  ;;  %v1030_v0 = vrot.slane %v3855_v54, 2 }
 0x11b   : > { %v1477_v13 = vpop.f32.mrf.mxu0 }
 0x11c   : > { %2320 = vmatmul.msk.bf16.gmra.mxu1 %vm676_vm1, %v3331_v5  ;;  %v1031_v34 = vsel %vm963_vm2, %v1029_v61, %v1030_v0 }
 0x11d   : > { %v1325_v44 = vpop.f32.mrf.mxu3 }
 0x11e   : > { %v1395_v39 = vadd.f32 %v1325_v44, %v1253_v42  ;;  %2348 = vmatmul.msk.bf16.gmra.mxu2 %vm676_vm1, %v3347_v57  ;;  %v3857_v42 = vld [vmem:[#allocation9_spill] sm:$0xff]  ;;  %v3858_v57 = vld [vmem:[#allocation11_spill] sm:$0xff] }
 0x11f   : > { %v1032_v44 = vrot.slane %v3857_v42, 2 }
 0x120   : > { %v3358_v35 = vadd.f32 %v1477_v13, %v1395_v39 }
 0x121   : > { %v1186_v31 = vpop.f32.mrf.mxu2  ;;  %v905_v8 = vpop.f32.mrf.mxu1  ;;  %v1033_v13 = vsel %vm963_vm2, %v1030_v0, %v1032_v44 }
 0x122   : > { %3856 = vst [vmem:[#allocation3_spill] sm:$0xff] %v3358_v35  ;;  %2376 = vmatmul.msk.bf16.gmra.mxu3 %vm676_vm1, %v3355_v26  ;;  %v1254_v59 = vadd.f32 %v1186_v31, %v904_v9  ;;  %v906_v39 = vadd.f32 %v905_v8, %v3111_v29  ;;  %v3372_v3 = vpack.c.bf16 %v1033_v13, %v1031_v34 }
 0x123   : > { %v1480_v6 = vpop.f32.mrf.mxu0 }
 0x124   : > { %3860 = vst [vmem:[#allocation7_spill] sm:$0xff] %v3372_v3 }
 0x125   : > { %v1328_v38 = vpop.f32.mrf.mxu3 }
 0x126   : > { %2404 = vmatmul.msk.bf16.gmra.mxu0 %vm676_vm1, %v3858_v57  ;;  %v1396_v22 = vadd.f32 %v1328_v38, %v1254_v59  ;;  %v3861_v38 = vld [vmem:[#allocation15_spill] sm:$0xff]  ;;  %v3862_v59 = vld [vmem:[#allocation16_spill] sm:$0xff] }
 0x127   : > { %v3380_v61 = vpack.c.bf16 %v3862_v59, %v3861_v38  ;;  %v1034_v34 = vrot.slane %v3861_v38, 2  ;;  %v1035_v13 = vrot.slane %v3862_v59, 2 }
 0x128   : > { %v3370_v35 = vadd.f32 %v1480_v6, %v1396_v22 }
 0x129   : > { %v1188_v9 = vpop.f32.mrf.mxu2  ;;  %v908_v31 = vpop.f32.mrf.mxu1  ;;  %3863 = vst [vmem:[#allocation8_spill] sm:$0xff] %v3380_v61 }
 0x12a   : > { %3859 = vst [vmem:[#allocation4_spill] sm:$0xff] %v3370_v35  ;;  %v1255_v4 = vadd.f32 %v1188_v9, %v906_v39  ;;  %v909_v29 = vadd.f32 %v908_v31, %v3128_v17  ;;  %v3865_v39 = vld [vmem:[#allocation18_spill] sm:$0xff]  ;;  %v1039_v35 = vrot.slane %v2998_v21, 2 }
 0x12b   : > { %v1482_v54 = vpop.f32.mrf.mxu0  ;;  %v1037_v9 = vrot.slane %v3865_v39, 2 }
 0x12c   : > { %2321 = vmatmul.msk.bf16.gmra.mxu1 %vm676_vm1, %v3355_v26 }
 0x12d   : > { %v1330_v42 = vpop.f32.mrf.mxu3  ;;  %v1038_v31 = vsel %vm963_vm2, %v1035_v13, %v1037_v9  ;;  %v350_v9 = vld [vmem:[%s2709_s5 + $0xc8] sm:$0x1] }
 0x12e   : > { %v1397_v57 = vadd.f32 %v1330_v42, %v1255_v4  ;;  %2349 = vmatmul.msk.bf16.gmra.mxu2 %vm676_vm1, %v3372_v3  ;;  %v3866_v42 = vld [vmem:[#allocation19_spill] sm:$0xff] }
 0x130   : > { %v3383_v8 = vadd.f32 %v1482_v54, %v1397_v57  ;;  %v1036_v57 = vsel %vm963_vm2, %v1034_v34, %v1035_v13  ;;  %v242_v34 = vld [vmem:[%s2704_s29 + $0xc8] sm:$0x1] }
 0x131   : > { %v1191_v6 = vpop.f32.mrf.mxu2  ;;  %v910_v0 = vpop.f32.mrf.mxu1  ;;  %v3397_v39 = vpack.c.bf16 %v1038_v31, %v1036_v57 }
 0x132   : > { %3864 = vst [vmem:[#allocation9_spill] sm:$0xff] %v3383_v8  ;;  %2377 = vmatmul.msk.bf16.gmra.mxu3 %vm676_vm1, %v3380_v61  ;;  %v1256_v44 = vadd.f32 %v1191_v6, %v909_v29  ;;  %v911_v54 = vadd.f32 %v910_v0, %v3146_v25  ;;  %v3405_v25 = vpack.c.bf16 %v3000_v47, %v2998_v21  ;;  %v2620_v0 = vld [vmem:[%s2704_s29 + $0xc0] sm:$0xff]  }
 0x133   : > { %v1485_v22 = vpop.f32.mrf.mxu0  ;;  %3868 = vst [vmem:[#allocation16_spill] sm:$0xff] %v3397_v39 }
 0x135   : > { %v1333_v4 = vpop.f32.mrf.mxu3 }
 0x136   : > { %2405 = vmatmul.msk.bf16.gmra.mxu0 %vm676_vm1, %v3866_v42  ;;  %v1398_v17 = vadd.f32 %v1333_v4, %v1256_v44 }
 0x138   : > { %v3395_v38 = vadd.f32 %v1485_v22, %v1398_v17  ;;  %v2628_v22 = vld [vmem:[%s2709_s5 + $0xc0] sm:$0xff]  }
 0x139   : > { %v1193_v59 = vpop.f32.mrf.mxu2  ;;  %v913_v29 = vpop.f32.mrf.mxu1 }
 0x13a   : > { %3867 = vst [vmem:[#allocation15_spill] sm:$0xff] %v3395_v38  ;;  %v1257_v6 = vadd.f32 %v1193_v59, %v911_v54  ;;  %v914_v13 = vadd.f32 %v913_v29, %v3163_v62  ;;  %v2575_v54 = vunpack.c.l.bf16 %v2620_v0  ;;  %v2576_v59 = vunpack.c.h.bf16 %v2620_v0 }
 0x13b   : > { %v1487_v8 = vpop.f32.mrf.mxu0  ;;  %v2612_v38 = vunpack.c.h.bf16 %v2628_v22  ;;  %v1042_v62 = vrot.slane %v3002_v53, 2 }
 0x13c   : > { %2322 = vmatmul.msk.bf16.gmra.mxu1 %vm676_vm1, %v3380_v61  ;;  %v1040_v61 = vrot.slane %v3000_v47, 2 }
 0x13d   : > { %v1335_v44 = vpop.f32.mrf.mxu3 }
 0x13e   : > { %v1399_v4 = vadd.f32 %v1335_v44, %v1257_v6  ;;  %2350 = vmatmul.msk.bf16.gmra.mxu2 %vm676_vm1, %v3397_v39  ;;  %v2611_v44 = vunpack.c.l.bf16 %v2628_v22  ;;  %v296_v39 = vunpack.c.l.bf16 %v242_v34  ;;  %v1043_v22 = vsel %vm963_vm2, %v1040_v61, %v1042_v62 }
 0x13f   : > { %v3425_v34 = vadd.f32 %v2612_v38, %v2576_v59 }
 0x140   : > { %v3412_v17 = vadd.f32 %v1487_v8, %v1399_v4  ;;  %v404_v8 = vunpack.c.l.bf16 %v350_v9  ;;  %v3421_v0 = vadd.f32 %v2611_v44, %v2575_v54 }
 0x141   : > { %v1196_v57 = vpop.f32.mrf.mxu2  ;;  %v915_v31 = vpop.f32.mrf.mxu1 }
 0x142   : > { %3869 = vst [vmem:[#allocation18_spill] sm:$0xff] %v3412_v17  ;;  %2378 = vmatmul.msk.bf16.gmra.mxu3 %vm676_vm1, %v3405_v25  ;;  %v1258_v6 = vadd.f32 %v1196_v57, %v914_v13  ;;  %v1041_v13 = vsel %vm963_vm2, %v1039_v35, %v1040_v61  ;;  %v3427_v57 = vadd.f32 %v404_v8, %v296_v39  ;;  %v1423_v54 = vrot.slane %v3421_v0, 1 }
 0x143   : > { %v1490_v42 = vpop.f32.mrf.mxu0  ;;  %v916_v21 = vadd.f32 %v915_v31, %v3181_v27  ;;  %v3432_v3 = vpack.c.bf16 %v1043_v22, %v1041_v13  ;;  %v1424_v35 = vrot.slane %v3425_v34, 1  ;;  %v3443_v27 = vpack.c.bf16 %v3425_v34, %v3421_v0 }
 0x144   : > { %v1426_v61 = vrot.slane %v3427_v57, 1 }
 0x145   : > { %v1338_v29 = vpop.f32.mrf.mxu3 }
 0x146   : > { %2406 = vmatmul.msk.bf16.gmra.mxu0 %vm676_vm1, %v3017_v45  ;;  %v1400_v4 = vadd.f32 %v1338_v29, %v1258_v6  ;;  %v1427_v31 = vsel %vm530_vm0, %v1424_v35, %v1426_v61 }
 0x148   : > { %v3430_v47 = vadd.f32 %v1490_v42, %v1400_v4  ;;  %v1425_v42 = vsel %vm530_vm0, %v1423_v54, %v1424_v35 }
 0x149   : > { %v1198_v53 = vpop.f32.mrf.mxu2  ;;  %v918_v9 = vpop.f32.mrf.mxu1 }
 0x14a   : > { %v1259_v17 = vadd.f32 %v1198_v53, %v916_v21  ;;  %v919_v59 = vadd.f32 %v918_v9, %v3207_v30 }
 0x14b   : > { %v1492_v6 = vpop.f32.mrf.mxu0 }
 0x14c   : > { %2323 = vmatmul.msk.bf16.gmra.mxu1 %vm676_vm1, %v3405_v25 }
 0x14d   : > { %v1340_v38 = vpop.f32.mrf.mxu3 }
 0x14e   : > { %v1401_v39 = vadd.f32 %v1340_v38, %v1259_v17  ;;  %2351 = vmatmul.msk.bf16.gmra.mxu2 %vm676_vm1, %v3432_v3  ;;  %v3452_v17 = vpack.c.bf16 %v1427_v31, %v1425_v42 }
 0x150   : > { %v3448_v44 = vadd.f32 %v1492_v6, %v1401_v39 }
 0x151   : > { %v1201_v62 = vpop.f32.mrf.mxu2  ;;  %v920_v8 = vpop.f32.mrf.mxu1 }
 0x152   : > { %2379 = vmatmul.msk.bf16.gmra.mxu3 %vm676_vm1, %v3443_v27  ;;  %v1260_v29 = vadd.f32 %v1201_v62, %v919_v59  ;;  %v921_v21 = vadd.f32 %v920_v8, %v3228_v15 }
 0x153   : > { %v1495_v4 = vpop.f32.mrf.mxu0 }
 0x155   : > { %v1343_v13 = vpop.f32.mrf.mxu3 }
 0x156   : > { %2407 = vmatmul.msk.bf16.gmra.mxu0 %vm676_vm1, %v3452_v17  ;;  %v1402_v22 = vadd.f32 %v1343_v13, %v1260_v29 }
 0x158   : > { %v3457_v53 = vadd.f32 %v1495_v4, %v1402_v22 }
 0x159   : > { %v1203_v30 = vpop.f32.mrf.mxu2  ;;  %v923_v9 = vpop.f32.mrf.mxu1 }
 0x15a   : > { %v1261_v6 = vadd.f32 %v1203_v30, %v921_v21  ;;  %v924_v38 = vadd.f32 %v923_v9, %v3109_v28 }
 0x15b   : > { %v1497_v54 = vpop.f32.mrf.mxu0 }
 0x15c   : > { %2420 = vmatmul.msk.bf16.vlgmr.msra.gmra.mxu1 %vm676_vm1, %v3046_v46 }
 0x15d   : > { %v1345_v35 = vpop.f32.mrf.mxu3 }
 0x15e   : > { %v1403_v61 = vadd.f32 %v1345_v35, %v1261_v6  ;;  %2448 = vmatmul.msk.bf16.vlgmr.msra.gmra.mxu2 %vm676_vm1, %v3053_v48 }
 0x160   : > { %v3464_v39 = vadd.f32 %v1497_v54, %v1403_v61 }
 0x161   : > { %v1206_v42 = vpop.f32.mrf.mxu2  ;;  %v925_v15 = vpop.f32.mrf.mxu1 }
 0x162   : > { %2476 = vmatmul.msk.bf16.vlgmr.msra.gmra.mxu3 %vm676_vm1, %v2960_v2  ;;  %v1262_v31 = vadd.f32 %v1206_v42, %v924_v38  ;;  %v926_v8 = vadd.f32 %v925_v15, %v3126_v16 }
 0x163   : > { %v1500_v59 = vpop.f32.mrf.mxu0 }
 0x165   : > { %v1348_v62 = vpop.f32.mrf.mxu3 }
 0x166   : > { %2504 = vmatmul.msk.bf16.vlgmr.msra.gmra.mxu0 %vm676_vm1, %v3064_v63  ;;  %v1404_v46 = vadd.f32 %v1348_v62, %v1262_v31 }
 0x168   : > { %v3471_v29 = vadd.f32 %v1500_v59, %v1404_v46 }
 0x169   : > { %v1208_v48 = vpop.f32.mrf.mxu2  ;;  %v928_v28 = vpop.f32.mrf.mxu1 }
 0x16a   : > { %v1263_v4 = vadd.f32 %v1208_v48, %v926_v8  ;;  %v929_v21 = vadd.f32 %v928_v28, %v3144_v50 }
 0x16b   : > { %v1502_v13 = vpop.f32.mrf.mxu0 }
 0x16c   : > { %2421 = vmatmul.msk.bf16.gmra.mxu1 %vm676_vm1, %v3064_v63 }
 0x16d   : > { %v1350_v22 = vpop.f32.mrf.mxu3 }
 0x16e   : > { %v1405_v2 = vadd.f32 %v1350_v22, %v1263_v4  ;;  %2449 = vmatmul.msk.bf16.gmra.mxu2 %vm676_vm1, %v3070_v14 }
 0x170   : > { %v3478_v30 = vadd.f32 %v1502_v13, %v1405_v2 }
 0x171   : > { %v1211_v9 = vpop.f32.mrf.mxu2  ;;  %v930_v16 = vpop.f32.mrf.mxu1 }
 0x172   : > { %2477 = vmatmul.msk.bf16.gmra.mxu3 %vm676_vm1, %v3023_v58  ;;  %v1264_v6 = vadd.f32 %v1211_v9, %v929_v21  ;;  %v931_v61 = vadd.f32 %v930_v16, %v3161_v51 }
 0x173   : > { %v1505_v54 = vpop.f32.mrf.mxu0 }
 0x175   : > { %v1353_v35 = vpop.f32.mrf.mxu3 }
 0x176   : > { %2505 = vmatmul.msk.bf16.gmra.mxu0 %vm676_vm1, %v3078_v10  ;;  %v1406_v63 = vadd.f32 %v1353_v35, %v1264_v6 }
 0x178   : > { %v3485_v38 = vadd.f32 %v1505_v54, %v1406_v63 }
 0x179   : > { %v1213_v14 = vpop.f32.mrf.mxu2  ;;  %v933_v50 = vpop.f32.mrf.mxu1 }
 0x17a   : > { %v1265_v42 = vadd.f32 %v1213_v14, %v931_v61  ;;  %v934_v59 = vadd.f32 %v933_v50, %v3179_v12 }
 0x17b   : > { %v1507_v15 = vpop.f32.mrf.mxu0 }
 0x17c   : > { %2422 = vmatmul.msk.bf16.gmra.mxu1 %vm676_vm1, %v3078_v10 }
 0x17d   : > { %v1355_v31 = vpop.f32.mrf.mxu3 }
 0x17e   : > { %v1407_v58 = vadd.f32 %v1355_v31, %v1265_v42  ;;  %2450 = vmatmul.msk.bf16.gmra.mxu2 %vm676_vm1, %v3086_v19 }
 0x180   : > { %v3492_v62 = vadd.f32 %v1507_v15, %v1407_v58 }
 0x181   : > { %v1216_v46 = vpop.f32.mrf.mxu2  ;;  %v935_v51 = vpop.f32.mrf.mxu1 }
 0x182   : > { %2478 = vmatmul.msk.bf16.gmra.mxu3 %vm676_vm1, %v2745_v52  ;;  %v1266_v8 = vadd.f32 %v1216_v46, %v934_v59  ;;  %v936_v4 = vadd.f32 %v935_v51, %v3205_v24 }
 0x183   : > { %v1510_v48 = vpop.f32.mrf.mxu0 }
 0x185   : > { %v1358_v28 = vpop.f32.mrf.mxu3 }
 0x186   : > { %2506 = vmatmul.msk.bf16.gmra.mxu0 %vm676_vm1, %v3099_v56  ;;  %v1408_v10 = vadd.f32 %v1358_v28, %v1266_v8  ;;  %v3871_v28 = vld [vmem:[#allocation23_spill] sm:$0xff] }
 0x188   : > { %v3499_v13 = vadd.f32 %v1510_v48, %v1408_v10  ;;  %v3870_v48 = vld [vmem:[#allocation25_spill] sm:$0xff] }
 0x189   : > { %v1218_v19 = vpop.f32.mrf.mxu2  ;;  %v938_v12 = vpop.f32.mrf.mxu1 }
 0x18a   : > { %v1267_v22 = vadd.f32 %v1218_v19, %v936_v4  ;;  %v939_v9 = vadd.f32 %v938_v12, %v3226_v1 }
 0x18b   : > { %v1512_v2 = vpop.f32.mrf.mxu0 }
 0x18c   : > { %2423 = vmatmul.msk.bf16.gmra.mxu1 %vm676_vm1, %v3099_v56 }
 0x18d   : > { %v1360_v21 = vpop.f32.mrf.mxu3 }
 0x18e   : > { %v1409_v52 = vadd.f32 %v1360_v21, %v1267_v22  ;;  %2451 = vmatmul.msk.bf16.gmra.mxu2 %vm676_vm1, %v3107_v23  ;;  %v3873_v21 = vld [vmem:[#allocation24_spill] sm:$0xff] }
 0x190   : > { %v3506_v16 = vadd.f32 %v1512_v2, %v1409_v52  ;;  %v3872_v2 = vld [vmem:[#allocation27_spill] sm:$0xff] }
 0x191   : > { %v1221_v6 = vpop.f32.mrf.mxu2  ;;  %v940_v24 = vpop.f32.mrf.mxu1 }
 0x192   : > { %2479 = vmatmul.msk.bf16.gmra.mxu3 %vm676_vm1, %v2823_v7  ;;  %v1268_v54 = vadd.f32 %v1221_v6, %v939_v9  ;;  %v941_v61 = vadd.f32 %v940_v24, %v3243_v55 }
 0x193   : > { %v1515_v35 = vpop.f32.mrf.mxu0 }
 0x195   : > { %v1363_v63 = vpop.f32.mrf.mxu3 }
 0x196   : > { %2507 = vmatmul.msk.bf16.gmra.mxu0 %vm676_vm1, %v3130_v49  ;;  %v1410_v56 = vadd.f32 %v1363_v63, %v1268_v54  ;;  %v3874_v54 = vld [vmem:[#allocation21_spill] sm:$0xff] }
 0x198   : > { %v3513_v14 = vadd.f32 %v1515_v35, %v1410_v56 }
 0x199   : > { %v1223_v23 = vpop.f32.mrf.mxu2  ;;  %v943_v1 = vpop.f32.mrf.mxu1 }
 0x19a   : > { %v1269_v50 = vadd.f32 %v1223_v23, %v941_v61  ;;  %v944_v31 = vadd.f32 %v943_v1, %v3120_v18  ;;  %v3875_v61 = vld [vmem:[#allocation29_spill] sm:$0xff]  ;;  %v3876_v1 = vld [vmem:[#allocation26_spill] sm:$0xff] }
 0x19b   : > { %v1517_v42 = vpop.f32.mrf.mxu0 }
 0x19c   : > { %2424 = vmatmul.msk.bf16.gmra.mxu1 %vm676_vm1, %v3130_v49 }
 0x19d   : > { %v1365_v15 = vpop.f32.mrf.mxu3 }
 0x19e   : > { %v1411_v7 = vadd.f32 %v1365_v15, %v1269_v50  ;;  %2452 = vmatmul.msk.bf16.gmra.mxu2 %vm676_vm1, %v3142_v36 }
 0x1a0   : > { %v3520_v58 = vadd.f32 %v1517_v42, %v1411_v7 }
 0x1a1   : > { %v1226_v59 = vpop.f32.mrf.mxu2  ;;  %v945_v55 = vpop.f32.mrf.mxu1 }
 0x1a2   : > { %2480 = vmatmul.msk.bf16.gmra.mxu3 %vm676_vm1, %v2903_v11  ;;  %v1270_v46 = vadd.f32 %v1226_v59, %v944_v31  ;;  %v946_v10 = vadd.f32 %v945_v55, %v3871_v28 }
 0x1a3   : > { %v1520_v51 = vpop.f32.mrf.mxu0 }
 0x1a5   : > { %v1368_v8 = vpop.f32.mrf.mxu3 }
 0x1a6   : > { %2508 = vmatmul.msk.bf16.gmra.mxu0 %vm676_vm1, %v3870_v48  ;;  %v1412_v49 = vadd.f32 %v1368_v8, %v1270_v46  ;;  %v3878_v8 = vld [vmem:[#allocation28_spill] sm:$0xff] }
 0x1a8   : > { %v3527_v4 = vadd.f32 %v1520_v51, %v1412_v49  ;;  %v3877_v51 = vld [vmem:[#allocation31_spill] sm:$0xff] }
 0x1a9   : > { %v1228_v36 = vpop.f32.mrf.mxu2  ;;  %v948_v18 = vpop.f32.mrf.mxu1 }
 0x1aa   : > { %v1271_v19 = vadd.f32 %v1228_v36, %v946_v10  ;;  %v949_v52 = vadd.f32 %v948_v18, %v3873_v21  ;;  %v3879_v36 = vld [vmem:[#allocation5_spill] sm:$0xff] }
 0x1ab   : > { %v1522_v12 = vpop.f32.mrf.mxu0 }
 0x1ac   : > { %2425 = vmatmul.msk.bf16.gmra.mxu1 %vm676_vm1, %v3870_v48 }
 0x1ad   : > { %v1370_v22 = vpop.f32.mrf.mxu3 }
 0x1ae   : > { %v1413_v11 = vadd.f32 %v1370_v22, %v1271_v19  ;;  %2453 = vmatmul.msk.bf16.gmra.mxu2 %vm676_vm1, %v3872_v2  ;;  %v3880_v22 = vld [vmem:[#allocation33_spill] sm:$0xff]  ;;  %v3881_v2 = vld [vmem:[#allocation30_spill] sm:$0xff] }
 0x1b0   : > { %v3534_v9 = vadd.f32 %v1522_v12, %v1413_v11 }
 0x1b1   : > { %v1231_v6 = vpop.f32.mrf.mxu2  ;;  %v950_v24 = vpop.f32.mrf.mxu1 }
 0x1b2   : > { %2481 = vmatmul.msk.bf16.gmra.mxu3 %vm676_vm1, %v3874_v54  ;;  %v1272_v35 = vadd.f32 %v1231_v6, %v949_v52  ;;  %v951_v50 = vadd.f32 %v950_v24, %v3876_v1 }
 0x1b3   : > { %v1525_v63 = vpop.f32.mrf.mxu0 }
 0x1b5   : > { %v1373_v56 = vpop.f32.mrf.mxu3 }
 0x1b6   : > { %2509 = vmatmul.msk.bf16.gmra.mxu0 %vm676_vm1, %v3875_v61  ;;  %v1414_v23 = vadd.f32 %v1373_v56, %v1272_v35 }
 0x1b8   : > { %v3541_v42 = vadd.f32 %v1525_v63, %v1414_v23 }
 0x1b9   : > { %v1233_v15 = vpop.f32.mrf.mxu2  ;;  %v953_v7 = vpop.f32.mrf.mxu1 }
 0x1ba   : > { %v1273_v31 = vadd.f32 %v1233_v15, %v951_v50  ;;  %v954_v48 = vadd.f32 %v953_v7, %v3878_v8  ;;  %v3883_v7 = vld [vmem:[#allocation10_spill] sm:$0xff] }
 0x1bb   : > { %v1527_v59 = vpop.f32.mrf.mxu0 }
 0x1bc   : > { %2426 = vmatmul.msk.bf16.gmra.mxu1 %vm676_vm1, %v3875_v61  ;;  %v3882_v61 = vld [vmem:[#allocation32_spill] sm:$0xff] }
 0x1bd   : > { %v1375_v55 = vpop.f32.mrf.mxu3 }
 0x1be   : > { %v1415_v46 = vadd.f32 %v1375_v55, %v1273_v31  ;;  %2454 = vmatmul.msk.bf16.gmra.mxu2 %vm676_vm1, %v3877_v51  ;;  %v3884_v51 = vld [vmem:[#allocation34_spill] sm:$0xff] }
 0x1c0   : > { %v3548_v49 = vadd.f32 %v1527_v59, %v1415_v46 }
 0x1c1   : > { %v1236_v28 = vpop.f32.mrf.mxu2  ;;  %v955_v10 = vpop.f32.mrf.mxu1 }
 0x1c2   : > { %2482 = vmatmul.msk.bf16.gmra.mxu3 %vm676_vm1, %v3879_v36  ;;  %v1274_v18 = vadd.f32 %v1236_v28, %v954_v48  ;;  %v956_v21 = vadd.f32 %v955_v10, %v3881_v2 }
 0x1c3   : > { %v1530_v19 = vpop.f32.mrf.mxu0 }
 0x1c5   : > { %v1378_v12 = vpop.f32.mrf.mxu3 }
 0x1c6   : > { %2510 = vmatmul.msk.bf16.gmra.mxu0 %vm676_vm1, %v3880_v22  ;;  %v1416_v11 = vadd.f32 %v1378_v12, %v1274_v18  ;;  %v3885_v12 = vld [vmem:[#allocation35_spill] sm:$0xff] }
 0x1c8   : > { %v3555_v52 = vadd.f32 %v1530_v19, %v1416_v11 }
 0x1c9   : > { %v1238_v6 = vpop.f32.mrf.mxu2  ;;  %v958_v24 = vpop.f32.mrf.mxu1 }
 0x1ca   : > { %v1275_v54 = vadd.f32 %v1238_v6, %v956_v21  ;;  %v959_v23 = vadd.f32 %v958_v24, %v3882_v61  ;;  %v3886_v6 = vld [vmem:[#allocation17_spill] sm:$0xff] }
 0x1cb   : > { %v1532_v35 = vpop.f32.mrf.mxu0 }
 0x1cc   : > { %2427 = vmatmul.msk.bf16.gmra.mxu1 %vm676_vm1, %v3880_v22 }
 0x1cd   : > { %v1380_v63 = vpop.f32.mrf.mxu3 }
 0x1ce   : > { %v1417_v56 = vadd.f32 %v1380_v63, %v1275_v54  ;;  %2455 = vmatmul.msk.bf16.gmra.mxu2 %vm676_vm1, %v3258_v40  ;;  %v3887_v63 = vld [vmem:[#allocation12_spill] sm:$0xff] }
 0x1d0   : > { %v3562_v1 = vadd.f32 %v1532_v35, %v1417_v56 }
 0x1d1   : > { %v1241_v50 = vpop.f32.mrf.mxu2  ;;  %v960_v15 = vpop.f32.mrf.mxu1 }
 0x1d2   : > { %2483 = vmatmul.msk.bf16.gmra.mxu3 %vm676_vm1, %v3883_v7  ;;  %v1276_v31 = vadd.f32 %v1241_v50, %v959_v23  ;;  %v961_v8 = vadd.f32 %v960_v15, %v3884_v51 }
 0x1d3   : > { %v1535_v59 = vpop.f32.mrf.mxu0 }
 0x1d5   : > { %v1383_v55 = vpop.f32.mrf.mxu3 }
 0x1d6   : > { %2511 = vmatmul.msk.bf16.gmra.mxu0 %vm676_vm1, %v3273_v20  ;;  %v1418_v46 = vadd.f32 %v1383_v55, %v1276_v31 }
 0x1d8   : > { %v3569_v48 = vadd.f32 %v1535_v59, %v1418_v46 }
 0x1d9   : > { %v1243_v40 = vpop.f32.mrf.mxu2  ;;  %v1609_v28 = vpop.f32.mrf.mxu1 }
 0x1da   : > { %v1277_v10 = vadd.f32 %v1243_v40, %v961_v8  ;;  %v1689_v22 = vadd.f32 %v1609_v28, %v3885_v12 }
 0x1db   : > { %v1537_v36 = vpop.f32.mrf.mxu0 }
 0x1dc   : > { %2428 = vmatmul.msk.bf16.gmra.mxu1 %vm676_vm1, %v3273_v20 }
 0x1dd   : > { %v1385_v18 = vpop.f32.mrf.mxu3 }
 0x1de   : > { %v1419_v19 = vadd.f32 %v1385_v18, %v1277_v10  ;;  %2456 = vmatmul.msk.bf16.gmra.mxu2 %vm676_vm1, %v3281_v33  ;;  %v3888_v10 = vld [vmem:[#allocation13_spill] sm:$0xff] }
 0x1e0   : > { %v3576_v11 = vadd.f32 %v1537_v36, %v1419_v19 }
 0x1e1   : > { %v1751_v2 = vpop.f32.mrf.mxu2  ;;  %v1611_v21 = vpop.f32.mrf.mxu1 }
 0x1e2   : > { %2484 = vmatmul.msk.bf16.gmra.mxu3 %vm676_vm1, %v3886_v6  ;;  %v1831_v24 = vadd.f32 %v1751_v2, %v1689_v22  ;;  %v1690_v56 = vadd.f32 %v1611_v21, %v3887_v63  ;;  %v3889_v21 = vld [vmem:[#allocation14_spill] sm:$0xff] }
 0x1e3   : > { %v2052_v54 = vpop.f32.mrf.mxu0 }
 0x1e5   : > { %v1903_v35 = vpop.f32.mrf.mxu3 }
 0x1e6   : > { %2512 = vmatmul.msk.bf16.gmra.mxu0 %vm676_vm1, %v3298_v37  ;;  %v1983_v20 = vadd.f32 %v1903_v35, %v1831_v24  ;;  %v3890_v35 = vld [vmem:[#allocation6_spill] sm:$0xff] }
 0x1e8   : > { %v2132_v33 = vadd.f32 %v2052_v54, %v1983_v20 }
 0x1e9   : > { %v1753_v61 = vpop.f32.mrf.mxu2  ;;  %v1614_v23 = vpop.f32.mrf.mxu1 }
 0x1ea   : > { %2164 = vst.msk [vmem:[%s3586_s10] sm:$0xff] %vm676_vm1, %v2132_v33  ;;  %v1832_v50 = vadd.f32 %v1753_v61, %v1690_v56  ;;  %v1691_v55 = vadd.f32 %v1614_v23, %v3295_v60  ;;  %v3892_v61 = vld [vmem:[#allocation20_spill] sm:$0xff] }
 0x1eb   : > { %v2054_v15 = vpop.f32.mrf.mxu0 }
 0x1ec   : > { %2429 = vmatmul.msk.bf16.gmra.mxu1 %vm676_vm1, %v3298_v37 }
 0x1ed   : > { %v1905_v7 = vpop.f32.mrf.mxu3 }
 0x1ee   : > { %v1984_v31 = vadd.f32 %v1905_v7, %v1832_v50  ;;  %2457 = vmatmul.msk.bf16.gmra.mxu2 %vm676_vm1, %v3306_v43 }
 0x1f0   : > { %v2133_v59 = vadd.f32 %v2054_v15, %v1984_v31 }
 0x1f1   : > { %v1756_v46 = vpop.f32.mrf.mxu2  ;;  %v1616_v51 = vpop.f32.mrf.mxu1 }
 0x1f2   : > { %2165 = vst.msk [vmem:[%s3586_s10 + $0x8] sm:$0xff] %vm676_vm1, %v2133_v59  ;;  %2485 = vmatmul.msk.bf16.gmra.mxu3 %vm676_vm1, %v3006_v41  ;;  %v1833_v8 = vadd.f32 %v1756_v46, %v1691_v55  ;;  %v1692_v36 = vadd.f32 %v1616_v51, %v3888_v10  ;;  %v3893_v51 = vld [vmem:[#allocation22_spill] sm:$0xff] }
 0x1f3   : > { %v2057_v40 = vpop.f32.mrf.mxu0 }
 0x1f5   : > { %v1908_v28 = vpop.f32.mrf.mxu3 }
 0x1f6   : > { %2513 = vmatmul.msk.bf16.gmra.mxu0 %vm676_vm1, %v3323_v32  ;;  %v1985_v37 = vadd.f32 %v1908_v28, %v1833_v8 }
 0x1f8   : > { %v2134_v43 = vadd.f32 %v2057_v40, %v1985_v37  ;;  %v3894_v37 = vld [vmem:[#allocation11_spill] sm:$0xff] }
 0x1f9   : > { %v1758_v18 = vpop.f32.mrf.mxu2  ;;  %v1619_v60 = vpop.f32.mrf.mxu1 }
 0x1fa   : > { %2166 = vst.msk [vmem:[%s3586_s10 + $0x10] sm:$0xff] %vm676_vm1, %v2134_v43  ;;  %v1834_v19 = vadd.f32 %v1758_v18, %v1692_v36  ;;  %v1693_v6 = vadd.f32 %v1619_v60, %v3889_v21  ;;  %v3895_v18 = vld [vmem:[#allocation7_spill] sm:$0xff] }
 0x1fb   : > { %v2059_v12 = vpop.f32.mrf.mxu0 }
 0x1fc   : > { %2430 = vmatmul.msk.bf16.gmra.mxu1 %vm676_vm1, %v3323_v32  ;;  %v3891_v32 = vld [vmem:[#allocation2_spill] sm:$0xff] }
 0x1fd   : > { %v1910_v41 = vpop.f32.mrf.mxu3 }
 0x1fe   : > { %v1986_v22 = vadd.f32 %v1910_v41, %v1834_v19  ;;  %2458 = vmatmul.msk.bf16.gmra.mxu2 %vm676_vm1, %v3331_v5  ;;  %v3896_v19 = vld [vmem:[#allocation3_spill] sm:$0xff] }
 0x200   : > { %v2135_v2 = vadd.f32 %v2059_v12, %v1986_v22 }
 0x201   : > { %v1761_v24 = vpop.f32.mrf.mxu2  ;;  %v1621_v54 = vpop.f32.mrf.mxu1 }
 0x202   : > { %2167 = vst.msk [vmem:[%s3586_s10 + $0x18] sm:$0xff] %vm676_vm1, %v2135_v2  ;;  %2486 = vmatmul.msk.bf16.gmra.mxu3 %vm676_vm1, %v3890_v35  ;;  %v1835_v20 = vadd.f32 %v1761_v24, %v1693_v6  ;;  %v1694_v23 = vadd.f32 %v1621_v54, %v3892_v61  ;;  %v3897_v54 = vld [vmem:[#allocation8_spill] sm:$0xff] }
 0x203   : > { %v2062_v33 = vpop.f32.mrf.mxu0 }
 0x205   : > { %v1913_v63 = vpop.f32.mrf.mxu3 }
 0x206   : > { %2514 = vmatmul.msk.bf16.gmra.mxu0 %vm676_vm1, %v3891_v32  ;;  %v1987_v56 = vadd.f32 %v1913_v63, %v1835_v20  ;;  %v3898_v20 = vld [vmem:[#allocation4_spill] sm:$0xff] }
 0x208   : > { %v2136_v5 = vadd.f32 %v2062_v33, %v1987_v56  ;;  %v3899_v56 = vld [vmem:[#allocation19_spill] sm:$0xff] }
 0x209   : > { %v1763_v50 = vpop.f32.mrf.mxu2  ;;  %v1624_v15 = vpop.f32.mrf.mxu1 }
 0x20a   : > { %2168 = vst.msk [vmem:[%s3586_s10 + $0x20] sm:$0xff] %vm676_vm1, %v2136_v5  ;;  %v1836_v7 = vadd.f32 %v1763_v50, %v1694_v23  ;;  %v1695_v8 = vadd.f32 %v1624_v15, %v3893_v51  ;;  %v3900_v50 = vld [vmem:[#allocation16_spill] sm:$0xff] }
 0x20b   : > { %v2064_v31 = vpop.f32.mrf.mxu0 }
 0x20c   : > { %2431 = vmatmul.msk.bf16.gmra.mxu1 %vm676_vm1, %v3891_v32 }
 0x20d   : > { %v1915_v59 = vpop.f32.mrf.mxu3 }
 0x20e   : > { %v1988_v55 = vadd.f32 %v1915_v59, %v1836_v7  ;;  %2459 = vmatmul.msk.bf16.gmra.mxu2 %vm676_vm1, %v3355_v26 }
 0x210   : > { %v2137_v46 = vadd.f32 %v2064_v31, %v1988_v55  ;;  %v3901_v31 = vld [vmem:[#allocation9_spill] sm:$0xff] }
 0x211   : > { %v1766_v40 = vpop.f32.mrf.mxu2  ;;  %v1626_v28 = vpop.f32.mrf.mxu1 }
 0x212   : > { %2169 = vst.msk [vmem:[%s3586_s10 + $0x28] sm:$0xff] %vm676_vm1, %v2137_v46  ;;  %2487 = vmatmul.msk.bf16.gmra.mxu3 %vm676_vm1, %v3894_v37  ;;  %v1837_v43 = vadd.f32 %v1766_v40, %v1695_v8  ;;  %v1696_v12 = vadd.f32 %v1626_v28, %v3896_v19 }
 0x213   : > { %v2067_v10 = vpop.f32.mrf.mxu0 }
 0x215   : > { %v1918_v36 = vpop.f32.mrf.mxu3 }
 0x216   : > { %2515 = vmatmul.msk.bf16.gmra.mxu0 %vm676_vm1, %v3895_v18  ;;  %v1989_v60 = vadd.f32 %v1918_v36, %v1837_v43  ;;  %v3902_v43 = vld [vmem:[#allocation15_spill] sm:$0xff] }
 0x218   : > { %v2138_v26 = vadd.f32 %v2067_v10, %v1989_v60 }
 0x219   : > { %v1768_v41 = vpop.f32.mrf.mxu2  ;;  %v1629_v22 = vpop.f32.mrf.mxu1 }
 0x21a   : > { %2170 = vst.msk [vmem:[%s3586_s10 + $0x30] sm:$0xff] %vm676_vm1, %v2138_v26  ;;  %v1838_v2 = vadd.f32 %v1768_v41, %v1696_v12  ;;  %v1697_v33 = vadd.f32 %v1629_v22, %v3898_v20  ;;  %v3903_v41 = vld [vmem:[#allocation18_spill] sm:$0xff] }
 0x21b   : > { %v2069_v21 = vpop.f32.mrf.mxu0 }
 0x21c   : > { %2432 = vmatmul.msk.bf16.gmra.mxu1 %vm676_vm1, %v3895_v18 }
 0x21d   : > { %v1920_v6 = vpop.f32.mrf.mxu3 }
 0x21e   : > { %v1990_v24 = vadd.f32 %v1920_v6, %v1838_v2  ;;  %2460 = vmatmul.msk.bf16.gmra.mxu2 %vm676_vm1, %v3897_v54  ;;  %v1572_v6 = vrot.slane %v3421_v0, 2 }
 0x220   : > { %v2139_v35 = vadd.f32 %v2069_v21, %v1990_v24  ;;  %v1573_v24 = vrot.slane %v3425_v34, 2 }
 0x221   : > { %v1771_v63 = vpop.f32.mrf.mxu2  ;;  %v1631_v32 = vpop.f32.mrf.mxu1 }
 0x222   : > { %2171 = vst.msk [vmem:[%s3586_s10 + $0x38] sm:$0xff] %vm676_vm1, %v2139_v35  ;;  %2488 = vmatmul.msk.bf16.gmra.mxu3 %vm676_vm1, %v3899_v56  ;;  %v1839_v5 = vadd.f32 %v1771_v63, %v1697_v33  ;;  %v1698_v59 = vadd.f32 %v1631_v32, %v3901_v31  ;;  %v243_v35 = vld [vmem:[%s2704_s29 + $0xcc] sm:$0xff]   ;;  %v245_v63 = vld [vmem:[%s2704_s29 + $0xd4] sm:$0x1] }
 0x223   : > { %v2072_v61 = vpop.f32.mrf.mxu0  ;;  %v351_v33 = vld [vmem:[%s2709_s5 + $0xcc] sm:$0xff]   ;;  %v353_v32 = vld [vmem:[%s2709_s5 + $0xd4] sm:$0x1]  ;;  %v297_v34 = vunpack.c.l.bf16 %v243_v35 }
 0x225   : > { %v1923_v23 = vpop.f32.mrf.mxu3 }
 0x226   : > { %2516 = vmatmul.msk.bf16.gmra.mxu0 %vm676_vm1, %v3900_v50  ;;  %v1991_v15 = vadd.f32 %v1923_v23, %v1839_v5  ;;  %v1574_v5 = vsel %vm963_vm2, %v1572_v6, %v1573_v24  ;;  %v405_v23 = vunpack.c.l.bf16 %v351_v33 }
 0x228   : > { %v2140_v7 = vadd.f32 %v2072_v61, %v1991_v15  ;;  %v299_v15 = vunpack.c.l.bf16 %v245_v63 }
 0x229   : > { %v1773_v55 = vpop.f32.mrf.mxu2  ;;  %v1634_v46 = vpop.f32.mrf.mxu1 }
 0x22a   : > { %2172 = vst.msk [vmem:[%s3586_s10 + $0x40] sm:$0xff] %vm676_vm1, %v2140_v7  ;;  %v1840_v51 = vadd.f32 %v1773_v55, %v1698_v59  ;;  %v1699_v10 = vadd.f32 %v1634_v46, %v3902_v43  ;;  %v407_v7 = vunpack.c.l.bf16 %v353_v32 }
 0x22b   : > { %v2074_v8 = vpop.f32.mrf.mxu0 }
 0x22c   : > { %2433 = vmatmul.msk.bf16.gmra.mxu1 %vm676_vm1, %v3900_v50  ;;  %v406_v50 = vunpack.c.h.bf16 %v351_v33 }
 0x22d   : > { %v1925_v40 = vpop.f32.mrf.mxu3 }
 0x22e   : > { %v1992_v28 = vadd.f32 %v1925_v40, %v1840_v51  ;;  %2461 = vmatmul.msk.bf16.gmra.mxu2 %vm676_vm1, %v3405_v25 }
 0x230   : > { %v2141_v37 = vadd.f32 %v2074_v8, %v1992_v28  ;;  %v459_v8 = vadd.f32 %v405_v23, %v297_v34  ;;  %v461_v28 = vadd.f32 %v407_v7, %v299_v15 }
 0x231   : > { %v1776_v36 = vpop.f32.mrf.mxu2  ;;  %v1636_v18 = vpop.f32.mrf.mxu1 }
 0x232   : > { %2173 = vst.msk [vmem:[%s3586_s10 + $0x48] sm:$0xff] %vm676_vm1, %v2141_v37  ;;  %2489 = vmatmul.msk.bf16.gmra.mxu3 %vm676_vm1, %v3017_v45  ;;  %v1841_v60 = vadd.f32 %v1776_v36, %v1699_v10  ;;  %v1700_v22 = vadd.f32 %v1636_v18, %v3903_v41  ;;  %v1575_v45 = vrot.slane %v3427_v57, 2  ;;  %v298_v57 = vunpack.c.h.bf16 %v243_v35 }
 0x233   : > { %v2077_v26 = vpop.f32.mrf.mxu0  ;;  %v1866_v10 = vrot.slane %v459_v8, 1  ;;  %v1869_v36 = vrot.slane %v461_v28, 1  ;;  %v2018_v6 = vrot.slane %v461_v28, 2 }
 0x234   : > { %v1576_v0 = vsel %vm963_vm2, %v1573_v24, %v1575_v45 }
 0x235   : > { %v1928_v19 = vpop.f32.mrf.mxu3  ;;  %v1579_v59 = vpack.c.bf16 %v1576_v0, %v1574_v5 }
 0x236   : > { %2517 = vmatmul.msk.bf16.gmra.mxu0 %vm676_vm1, %v3432_v3  ;;  %v1993_v25 = vadd.f32 %v1928_v19, %v1841_v60 }
 0x238   : > { %v2142_v12 = vadd.f32 %v2077_v26, %v1993_v25 }
 0x239   : > { %v1778_v2 = vpop.f32.mrf.mxu2  ;;  %v1639_v21 = vpop.f32.mrf.mxu1 }
 0x23a   : > { %2174 = vst.msk [vmem:[%s3586_s10 + $0x50] sm:$0xff] %vm676_vm1, %v2142_v12  ;;  %v1842_v54 = vadd.f32 %v1778_v2, %v1700_v22  ;;  %v2015_v2 = vrot.slane %v459_v8, 2 }
 0x23b   : > { %v2079_v20 = vpop.f32.mrf.mxu0 }
 0x23c   : > { %2434 = vmatmul.msk.bf16.gmra.mxu1 %vm676_vm1, %v3432_v3  ;;  %v1701_v3 = vadd.f32 %v1639_v21, %v3430_v47 }
 0x23d   : > { %v1930_v56 = vpop.f32.mrf.mxu3 }
 0x23e   : > { %v1994_v61 = vadd.f32 %v1930_v56, %v1842_v54  ;;  %2462 = vmatmul.msk.bf16.gmra.mxu2 %vm676_vm1, %v3443_v27  ;;  %v460_v27 = vadd.f32 %v406_v50, %v298_v57 }
 0x240   : > { %v2143_v31 = vadd.f32 %v2079_v20, %v1994_v61  ;;  %v1867_v47 = vrot.slane %v460_v27, 1  ;;  %v1721_v25 = vpack.c.bf16 %v460_v27, %v459_v8  ;;  %v2016_v21 = vrot.slane %v460_v27, 2 }
 0x241   : > { %v1781_v55 = vpop.f32.mrf.mxu2  ;;  %v1641_v46 = vpop.f32.mrf.mxu1 }
 0x242   : > { %2175 = vst.msk [vmem:[%s3586_s10 + $0x58] sm:$0xff] %vm676_vm1, %v2143_v31  ;;  %2490 = vmatmul.msk.bf16.gmra.mxu3 %vm676_vm1, %v3452_v17  ;;  %v1843_v51 = vadd.f32 %v1781_v55, %v1701_v3  ;;  %v1702_v60 = vadd.f32 %v1641_v46, %v3448_v44  ;;  %v1868_v12 = vsel %vm530_vm0, %v1866_v10, %v1867_v47 }
 0x243   : > { %v2082_v40 = vpop.f32.mrf.mxu0  ;;  %v1870_v22 = vsel %vm530_vm0, %v1867_v47, %v1869_v36  ;;  %v2017_v54 = vsel %vm963_vm2, %v2015_v2, %v2016_v21  ;;  %v2019_v35 = vsel %vm963_vm2, %v2016_v21, %v2018_v6 }
 0x244   : > { %v1873_v44 = vpack.c.bf16 %v1870_v22, %v1868_v12  ;;  %v2022_v56 = vpack.c.bf16 %v2019_v35, %v2017_v54 }
 0x245   : > { %v1933_v37 = vpop.f32.mrf.mxu3 }
 0x246   : > { %2518 = vmatmul.msk.bf16.gmra.mxu0 %vm676_vm1, %v1579_v59  ;;  %v1995_v43 = vadd.f32 %v1933_v37, %v1843_v51 }
 0x248   : > { %v2144_v18 = vadd.f32 %v2082_v40, %v1995_v43 }
 0x249   : > { %v1783_v26 = vpop.f32.mrf.mxu2  ;;  %v1644_v19 = vpop.f32.mrf.mxu1 }
 0x24a   : > { %2176 = vst.msk [vmem:[%s3586_s10 + $0x60] sm:$0xff] %vm676_vm1, %v2144_v18  ;;  %v1844_v17 = vadd.f32 %v1783_v26, %v1702_v60  ;;  %v1703_v33 = vadd.f32 %v1644_v19, %v3457_v53 }
 0x24b   : > { %v2084_v41 = vpop.f32.mrf.mxu0 }
 0x24c   : > { %2435 = vmatmul.msk.bf16.gmra.mxu1 %vm676_vm1, %v1579_v59 }
 0x24d   : > { %v1935_v24 = vpop.f32.mrf.mxu3 }
 0x24e   : > { %v1996_v45 = vadd.f32 %v1935_v24, %v1844_v17  ;;  %2463 = vmatmul.msk.bf16.gmra.mxu2 %vm676_vm1, %v1721_v25 }
 0x250   : > { %v2145_v20 = vadd.f32 %v2084_v41, %v1996_v45 }
 0x251   : > { %v1786_v63 = vpop.f32.mrf.mxu2  ;;  %v1646_v32 = vpop.f32.mrf.mxu1 }
 0x252   : > { %2177 = vst.msk [vmem:[%s3586_s10 + $0x68] sm:$0xff] %vm676_vm1, %v2145_v20  ;;  %2491 = vmatmul.msk.bf16.gmra.mxu3 %vm676_vm1, %v1873_v44  ;;  %v1845_v5 = vadd.f32 %v1786_v63, %v1703_v33  ;;  %v1704_v23 = vadd.f32 %v1646_v32, %v3464_v39 }
 0x253   : > { %v2087_v0 = vpop.f32.mrf.mxu0 }
 0x255   : > { %v1938_v34 = vpop.f32.mrf.mxu3 }
 0x256   : > { %2519 = vmatmul.msk.bf16.gmra.mxu0 %vm676_vm1, %v2022_v56  ;;  %v1997_v61 = vadd.f32 %v1938_v34, %v1845_v5 }
 0x258   : > { %v2146_v57 = vadd.f32 %v2087_v0, %v1997_v61 }
 0x259   : > { %v1788_v50 = vpop.f32.mrf.mxu2  ;;  %v1649_v15 = vpop.f32.mrf.mxu1 }
 0x25a   : > { %2178 = vst.msk [vmem:[%s3586_s10 + $0x70] sm:$0xff] %vm676_vm1, %v2146_v57  ;;  %v1846_v53 = vadd.f32 %v1788_v50, %v1704_v23  ;;  %v1705_v55 = vadd.f32 %v1649_v15, %v3471_v29 }
 0x25b   : > { %v2089_v7 = vpop.f32.mrf.mxu0 }
 0x25d   : > { %v1940_v31 = vpop.f32.mrf.mxu3 }
 0x25e   : > { %v1998_v3 = vadd.f32 %v1940_v31, %v1846_v53 }
 0x260   : > { %v2147_v59 = vadd.f32 %v2089_v7, %v1998_v3 }
 0x261   : > { %v1791_v46 = vpop.f32.mrf.mxu2  ;;  %v1651_v51 = vpop.f32.mrf.mxu1 }
 0x262   : > { %2179 = vst.msk [vmem:[%s3586_s10 + $0x78] sm:$0xff] %vm676_vm1, %v2147_v59  ;;  %v1847_v8 = vadd.f32 %v1791_v46, %v1705_v55  ;;  %v1706_v37 = vadd.f32 %v1651_v51, %v3478_v30 }
 0x263   : > { %v2092_v27 = vpop.f32.mrf.mxu0 }
 0x265   : > { %v1943_v39 = vpop.f32.mrf.mxu3 }
 0x266   : > { %v1999_v40 = vadd.f32 %v1943_v39, %v1847_v8 }
 0x268   : > { %v2148_v28 = vadd.f32 %v2092_v27, %v1999_v40 }
 0x269   : > { %v1793_v43 = vpop.f32.mrf.mxu2  ;;  %v1654_v10 = vpop.f32.mrf.mxu1 }
 0x26a   : > { %2180 = vst.msk [vmem:[%s3586_s10 + $0x80] sm:$0xff] %vm676_vm1, %v2148_v28  ;;  %v1848_v47 = vadd.f32 %v1793_v43, %v1706_v37  ;;  %v1707_v26 = vadd.f32 %v1654_v10, %v3485_v38 }
 0x26b   : > { %v2094_v36 = vpop.f32.mrf.mxu0 }
 0x26d   : > { %v1945_v29 = vpop.f32.mrf.mxu3 }
 0x26e   : > { %v2000_v18 = vadd.f32 %v1945_v29, %v1848_v47 }
 0x270   : > { %v2149_v60 = vadd.f32 %v2094_v36, %v2000_v18 }
 0x271   : > { %v1796_v19 = vpop.f32.mrf.mxu2  ;;  %v1656_v17 = vpop.f32.mrf.mxu1 }
 0x272   : > { %2181 = vst.msk [vmem:[%s3586_s10 + $0x88] sm:$0xff] %vm676_vm1, %v2149_v60  ;;  %v1849_v25 = vadd.f32 %v1796_v19, %v1707_v26  ;;  %v1708_v2 = vadd.f32 %v1656_v17, %v3492_v62 }
 0x273   : > { %v2097_v12 = vpop.f32.mrf.mxu0 }
 0x275   : > { %v1948_v30 = vpop.f32.mrf.mxu3 }
 0x276   : > { %v2001_v41 = vadd.f32 %v1948_v30, %v1849_v25 }
 0x278   : > { %v2150_v22 = vadd.f32 %v2097_v12, %v2001_v41 }
 0x279   : > { %v1798_v21 = vpop.f32.mrf.mxu2  ;;  %v1659_v6 = vpop.f32.mrf.mxu1 }
 0x27a   : > { %2182 = vst.msk [vmem:[%s3586_s10 + $0x90] sm:$0xff] %vm676_vm1, %v2150_v22  ;;  %v1850_v24 = vadd.f32 %v1798_v21, %v1708_v2  ;;  %v1709_v35 = vadd.f32 %v1659_v6, %v3499_v13 }
 0x27b   : > { %v2099_v45 = vpop.f32.mrf.mxu0 }
 0x27d   : > { %v1950_v38 = vpop.f32.mrf.mxu3 }
 0x27e   : > { %v2002_v44 = vadd.f32 %v1950_v38, %v1850_v24 }
 0x280   : > { %v2151_v54 = vadd.f32 %v2099_v45, %v2002_v44 }
 0x281   : > { %v1801_v20 = vpop.f32.mrf.mxu2  ;;  %v1661_v33 = vpop.f32.mrf.mxu1 }
 0x282   : > { %2183 = vst.msk [vmem:[%s3586_s10 + $0x98] sm:$0xff] %vm676_vm1, %v2151_v54  ;;  %v1851_v63 = vadd.f32 %v1801_v20, %v1709_v35  ;;  %v1710_v0 = vadd.f32 %v1661_v33, %v3506_v16 }
 0x283   : > { %v2102_v32 = vpop.f32.mrf.mxu0 }
 0x285   : > { %v1953_v62 = vpop.f32.mrf.mxu3 }
 0x286   : > { %v2003_v56 = vadd.f32 %v1953_v62, %v1851_v63 }
 0x288   : > { %v2152_v5 = vadd.f32 %v2102_v32, %v2003_v56 }
 0x289   : > { %v1803_v34 = vpop.f32.mrf.mxu2  ;;  %v1664_v61 = vpop.f32.mrf.mxu1 }
 0x28a   : > { %2184 = vst.msk [vmem:[%s3586_s10 + $0xa0] sm:$0xff] %vm676_vm1, %v2152_v5  ;;  %v1852_v57 = vadd.f32 %v1803_v34, %v1710_v0  ;;  %v1711_v53 = vadd.f32 %v1664_v61, %v3513_v14 }
 0x28b   : > { %v2104_v23 = vpop.f32.mrf.mxu0 }
 0x28d   : > { %v1955_v13 = vpop.f32.mrf.mxu3 }
 0x28e   : > { %v2004_v50 = vadd.f32 %v1955_v13, %v1852_v57 }
 0x290   : > { %v2153_v15 = vadd.f32 %v2104_v23, %v2004_v50 }
 0x291   : > { %v1806_v7 = vpop.f32.mrf.mxu2  ;;  %v1666_v31 = vpop.f32.mrf.mxu1 }
 0x292   : > { %2185 = vst.msk [vmem:[%s3586_s10 + $0xa8] sm:$0xff] %vm676_vm1, %v2153_v15  ;;  %v1853_v3 = vadd.f32 %v1806_v7, %v1711_v53  ;;  %v1712_v51 = vadd.f32 %v1666_v31, %v3520_v58 }
 0x293   : > { %v2107_v59 = vpop.f32.mrf.mxu0 }
 0x295   : > { %v1958_v16 = vpop.f32.mrf.mxu3 }
 0x296   : > { %v2005_v55 = vadd.f32 %v1958_v16, %v1853_v3 }
 0x298   : > { %v2154_v46 = vadd.f32 %v2107_v59, %v2005_v55 }
 0x299   : > { %v1808_v8 = vpop.f32.mrf.mxu2  ;;  %v1669_v27 = vpop.f32.mrf.mxu1 }
 0x29a   : > { %2186 = vst.msk [vmem:[%s3586_s10 + $0xb0] sm:$0xff] %vm676_vm1, %v2154_v46  ;;  %v1854_v39 = vadd.f32 %v1808_v8, %v1712_v51  ;;  %v1713_v43 = vadd.f32 %v1669_v27, %v3527_v4 }
 0x29b   : > { %v2109_v40 = vpop.f32.mrf.mxu0 }
 0x29d   : > { %v1960_v14 = vpop.f32.mrf.mxu3 }
 0x29e   : > { %v2006_v28 = vadd.f32 %v1960_v14, %v1854_v39 }
 0x2a0   : > { %v2155_v37 = vadd.f32 %v2109_v40, %v2006_v28 }
 0x2a1   : > { %v1811_v10 = vpop.f32.mrf.mxu2  ;;  %v1671_v47 = vpop.f32.mrf.mxu1 }
 0x2a2   : > { %2187 = vst.msk [vmem:[%s3586_s10 + $0xb8] sm:$0xff] %vm676_vm1, %v2155_v37  ;;  %v1855_v36 = vadd.f32 %v1811_v10, %v1713_v43  ;;  %v1714_v26 = vadd.f32 %v1671_v47, %v3534_v9 }
 0x2a3   : > { %v2112_v29 = vpop.f32.mrf.mxu0 }
 0x2a5   : > { %v1963_v58 = vpop.f32.mrf.mxu3 }
 0x2a6   : > { %v2007_v18 = vadd.f32 %v1963_v58, %v1855_v36 }
 0x2a8   : > { %v2156_v60 = vadd.f32 %v2112_v29, %v2007_v18 }
 0x2a9   : > { %v1813_v19 = vpop.f32.mrf.mxu2  ;;  %v1674_v17 = vpop.f32.mrf.mxu1 }
 0x2aa   : > { %2188 = vst.msk [vmem:[%s3586_s10 + $0xc0] sm:$0xff] %vm676_vm1, %v2156_v60  ;;  %v1856_v25 = vadd.f32 %v1813_v19, %v1714_v26  ;;  %v1715_v22 = vadd.f32 %v1674_v17, %v3541_v42 }
 0x2ab   : > { %v2114_v12 = vpop.f32.mrf.mxu0 }
 0x2ad   : > { %v1965_v4 = vpop.f32.mrf.mxu3 }
 0x2ae   : > { %v2008_v30 = vadd.f32 %v1965_v4, %v1856_v25 }
 0x2b0   : > { %v2157_v41 = vadd.f32 %v2114_v12, %v2008_v30 }
 0x2b1   : > { %v1816_v2 = vpop.f32.mrf.mxu2  ;;  %v1676_v21 = vpop.f32.mrf.mxu1 }
 0x2b2   : > { %2189 = vst.msk [vmem:[%s3586_s10 + $0xc8] sm:$0xff] %vm676_vm1, %v2157_v41  ;;  %v1857_v6 = vadd.f32 %v1816_v2, %v1715_v22  ;;  %v1716_v44 = vadd.f32 %v1676_v21, %v3548_v49 }
 0x2b3   : > { %v2117_v24 = vpop.f32.mrf.mxu0 }
 0x2b5   : > { %v1968_v9 = vpop.f32.mrf.mxu3 }
 0x2b6   : > { %v2009_v45 = vadd.f32 %v1968_v9, %v1857_v6 }
 0x2b8   : > { %v2158_v38 = vadd.f32 %v2117_v24, %v2009_v45 }
 0x2b9   : > { %v1818_v54 = vpop.f32.mrf.mxu2  ;;  %v1679_v35 = vpop.f32.mrf.mxu1 }
 0x2ba   : > { %2190 = vst.msk [vmem:[%s3586_s10 + $0xd0] sm:$0xff] %vm676_vm1, %v2158_v38  ;;  %v1858_v20 = vadd.f32 %v1818_v54, %v1716_v44  ;;  %v1717_v62 = vadd.f32 %v1679_v35, %v3555_v52 }
 0x2bb   : > { %v2119_v33 = vpop.f32.mrf.mxu0 }
 0x2bd   : > { %v1970_v42 = vpop.f32.mrf.mxu3 }
 0x2be   : > { %v2010_v63 = vadd.f32 %v1970_v42, %v1858_v20 }
 0x2c0   : > { %v2159_v32 = vadd.f32 %v2119_v33, %v2010_v63 }
 0x2c1   : > { %v1821_v56 = vpop.f32.mrf.mxu2  ;;  %v1681_v5 = vpop.f32.mrf.mxu1 }
 0x2c2   : > { %2191 = vst.msk [vmem:[%s3586_s10 + $0xd8] sm:$0xff] %vm676_vm1, %v2159_v32  ;;  %v1859_v0 = vadd.f32 %v1821_v56, %v1717_v62  ;;  %v1718_v23 = vadd.f32 %v1681_v5, %v3562_v1 }
 0x2c3   : > { %v2122_v34 = vpop.f32.mrf.mxu0 }
 0x2c5   : > { %v1973_v49 = vpop.f32.mrf.mxu3 }
 0x2c6   : > { %v2011_v61 = vadd.f32 %v1973_v49, %v1859_v0 }
 0x2c8   : > { %v2160_v57 = vadd.f32 %v2122_v34, %v2011_v61 }
 0x2c9   : > { %v1823_v13 = vpop.f32.mrf.mxu2  ;;  %v1684_v15 = vpop.f32.mrf.mxu1 }
 0x2ca   : > { %2192 = vst.msk [vmem:[%s3586_s10 + $0xe0] sm:$0xff] %vm676_vm1, %v2160_v57  ;;  %v1860_v50 = vadd.f32 %v1823_v13, %v1718_v23  ;;  %v1719_v3 = vadd.f32 %v1684_v15, %v3569_v48 }
 0x2cb   : > { %v2124_v53 = vpop.f32.mrf.mxu0 }
 0x2cd   : > { %v1975_v52 = vpop.f32.mrf.mxu3 }
 0x2ce   : > { %v2012_v7 = vadd.f32 %v1975_v52, %v1860_v50 }
 0x2d0   : > { %v2161_v31 = vadd.f32 %v2124_v53, %v2012_v7 }
 0x2d1   : > { %v1826_v59 = vpop.f32.mrf.mxu2  ;;  %v1686_v55 = vpop.f32.mrf.mxu1 }
 0x2d2   : > { %2193 = vst.msk [vmem:[%s3586_s10 + $0xe8] sm:$0xff] %vm676_vm1, %v2161_v31  ;;  %v1861_v16 = vadd.f32 %v1826_v59, %v1719_v3  ;;  %v1720_v27 = vadd.f32 %v1686_v55, %v3576_v11 }
 0x2d3   : > { %v2127_v46 = vpop.f32.mrf.mxu0 }
 0x2d5   : > { %v1978_v1 = vpop.f32.mrf.mxu3 }
 0x2d6   : > { %v2013_v51 = vadd.f32 %v1978_v1, %v1861_v16 }
 0x2d8   : > { %v2162_v8 = vadd.f32 %v2127_v46, %v2013_v51 }
 0x2d9   : > { %v1828_v39 = vpop.f32.mrf.mxu2 }
 0x2da   : > { %2194 = vst.msk [vmem:[%s3586_s10 + $0xf0] sm:$0xff] %vm676_vm1, %v2162_v8  ;;  %v1862_v40 = vadd.f32 %v1828_v39, %v1720_v27 }
 0x2db   : > { %v2129_v37 = vpop.f32.mrf.mxu0 }
 0x2dd   : > { %v1980_v14 = vpop.f32.mrf.mxu3 }
 0x2de   : > { %v2014_v28 = vadd.f32 %v1980_v14, %v1862_v40 }
 0x2e0   : > { %v2163_v48 = vadd.f32 %v2129_v37, %v2014_v28 }
 0x2e2   : > { %2195 = vst.msk [vmem:[%s3586_s10 + $0xf8] sm:$0xff] %vm676_vm1, %v2163_v48 }
 0x2e3 PF: > { %s13_s12 = sadd.s32 1, %s2650_s12  }
 0x2e4   : > { %p10_p4 = scmp.ge.s32.totalorder %s13_s12, 4  }
 0x2e6   :  { %12 = sbr.rel (!%p10_p4) target bundleno = 1 (0x1), region = 73 }

// kernel: forward.3
= control target key start
LH: loop header
LB: loop body
LE: loop exit
PB: predicated region body
PF: predicated region fallthrough
CT: control target
= control target key end

     0   :  { %s2408_s9 = smov 0   ;;  %s3509_s0 = inlined_call_operand.vmem [shape: bf16[2,18,18,32], index: 0, kind: input, shape index: {}]   ;;  %s3510_s1 = inlined_call_operand.vmem [shape: bf16[9,32,8], index: 1, kind: input, shape index: {}]   ;;  %s3511_s2 = inlined_call_operand.vmem [shape: f32[2,256,8], index: 2, kind: output, shape index: {}]  }
   0x1 LB: > { %s2043_s10 = sadd.s32 4294967295, %s2391_s9   ;;  %p2047_p0 = scmp.ge.s32.totalorder %s2391_s9, 1  ;;  %s2391_s9 = sphi %s2408_s9, %s12_s9  }
   0x2   : > { %p112_p1 = scmp.lt.s32.totalorder %s2391_s9, 3 }
   0x4   : > { %p113_p2 = pnand %p2047_p0, %p112_p1 }
   0x6   : > { %116 = sbr.rel (%p113_p2) target bundleno = 733 (0x2dd), region = 28 }
   0xb   : > { %v2305_v0 = vld [vmem:[%s3510_s1 + $0x18] sm:$0xff]  ;;  %p134_p3 = scmp.lt.s32.totalorder %s2043_s10, 1  ;;  %v2304_v1 = vld [vmem:[%s3510_s1 + $0x10] sm:$0xff]  ;;  %v2307_v2 = vld [vmem:[%s3510_s1 + $0x28] sm:$0xff]  ;;  %vm321_vm0 = vcmask 1046528   ;;  %vm467_vm1 = vcmask 261120  }
   0xc   : > { %2364 = vmatpush.bf16.msra.mxu1 %v2305_v0  ;;  %2365 = vmatpush.bf16.msra.mxu2 %v2305_v0  ;;  %v2309_v3 = vld [vmem:[%s3510_s1 + $0x38] sm:$0xff]  ;;  %v2303_v4 = vld [vmem:[%s3510_s1 + $0x8] sm:$0xff]  ;;  %v2306_v61 = vld [vmem:[%s3510_s1 + $0x20] sm:$0xff]  ;;  %vm754_vm2 = vcmask 1045504   ;;  %vm1955_vm3 = vcmask 64512  }
   0xd   : > { %s3687_s10 = smov (!%p134_p3, %s2043_s10), 1  ;;  %2366 = vmatpush.bf16.msra.mxu3 %v2305_v0  ;;  %522 = vmatpush.bf16.msra.mxu0 %v2305_v0  ;;  %v2311_v5 = vld [vmem:[%s3510_s1 + $0x48] sm:$0xff] }
   0xe   : > { %s2370_s15 = smul.u32 216, %s3687_s10  ;;  %s2301_s25 = sshll.u32 %s3687_s10, 8 }
   0xf   : > { %s3340_s29 = scalar_lea.vmem %s3511_s2, %s2301_s25 }
  0x10   : > { %2367 = vmatpush.bf16.msra.mxu1 %v2304_v1  ;;  %2368 = vmatpush.bf16.msra.mxu2 %v2304_v1  ;;  %s2440_s26 = scalar_lea.vmem %s3509_s0, %s2370_s15 }
  0x11   : > { %2369 = vmatpush.bf16.msra.mxu3 %v2304_v1  ;;  %523 = vmatpush.bf16.msra.mxu0 %v2304_v1  ;;  %v2443_v6 = vld [vmem:[%s2440_s26 + $0x30] sm:$0xff]   ;;  %v2446_v7 = vld [vmem:[%s2440_s26 + $0x38] sm:$0x1]  ;;  %v2449_v8 = vld [vmem:[%s2440_s26 + $0x60] sm:$0xff]  }
  0x12   : > { %v3538_v9 = vunpack.c.l.bf16 %v2443_v6  ;;  %v3537_v10 = vunpack.c.h.bf16 %v2443_v6  ;;  %v3536_v11 = vunpack.c.l.bf16 %v2446_v7  ;;  %v3526_v12 = vunpack.c.l.bf16 %v2449_v8  ;;  %v2456_v13 = vld [vmem:[%s2440_s26 + $0x68] sm:$0x1]  ;;  %v2459_v14 = vld [vmem:[%s2440_s26 + $0x90] sm:$0xff]   ;;  %v2462_v15 = vld [vmem:[%s2440_s26 + $0x98] sm:$0x1] }
  0x13   : > { %v3524_v16 = vunpack.c.h.bf16 %v2449_v8  ;;  %v3521_v17 = vunpack.c.l.bf16 %v2456_v13  ;;  %v3517_v18 = vunpack.c.l.bf16 %v2459_v14  ;;  %v3516_v19 = vunpack.c.h.bf16 %v2459_v14  ;;  %v2469_v20 = vld [vmem:[%s2440_s26] sm:$0xff]   ;;  %v2487_v29 = vld [vmem:[%s2440_s26 + $0x8] sm:$0x1]  ;;  %v2512_v44 = vld [vmem:[%s2440_s26 + $0x6c] sm:$0xff]  }
  0x14   : > { %954 = vmatpush.bf16.msrb.mxu2 %v2307_v2  ;;  %671 = vmatpush.bf16.msrb.mxu1 %v2303_v4  ;;  %v342_v21 = vrot.slane %v3538_v9, 1  ;;  %v343_v22 = vrot.slane %v3537_v10, 1  ;;  %v345_v23 = vrot.slane %v3536_v11, 1  ;;  %v362_v24 = vrot.slane %v3526_v12, 1  ;;  %v2495_v34 = vld [vmem:[%s2440_s26 + $0x3c] sm:$0xff]   ;;  %v2552_v0 = vld [vmem:[%s2440_s26 + $0xc] sm:$0xff]  }
  0x15   : > { %1096 = vmatpush.bf16.msrb.mxu3 %v2309_v3  ;;  %1248 = vmatpush.bf16.msrb.mxu0 %v2311_v5  ;;  %v363_v25 = vrot.slane %v3524_v16, 1  ;;  %v365_v26 = vrot.slane %v3521_v17, 1  ;;  %v3515_v27 = vunpack.c.l.bf16 %v2462_v15  ;;  %v382_v28 = vrot.slane %v3517_v18, 1  ;;  %3582 = vst [vmem:[#allocation2_spill] sm:$0xff] %v2495_v34  ;;  %v2504_v39 = vld [vmem:[%s2440_s26 + $0x44] sm:$0x1] }
  0x16   : > { %v344_v30 = vsel %vm321_vm0, %v342_v21, %v343_v22  ;;  %v346_v31 = vsel %vm321_vm0, %v343_v22, %v345_v23  ;;  %v383_v32 = vrot.slane %v3516_v19, 1  ;;  %v3553_v33 = vunpack.c.l.bf16 %v2469_v20  ;;  %v2522_v49 = vld [vmem:[%s2440_s26 + $0x74] sm:$0x1]  ;;  %v2536_v56 = vld [vmem:[%s2440_s26 + $0x9c] sm:$0xff]   ;;  %v2544_v60 = vld [vmem:[%s2440_s26 + $0xa4] sm:$0x1] }
  0x17   : > { %v2497_v35 = vpack.c.bf16 %v346_v31, %v344_v30  ;;  %v364_v36 = vsel %vm321_vm0, %v362_v24, %v363_v25  ;;  %v366_v37 = vsel %vm321_vm0, %v363_v25, %v365_v26  ;;  %v385_v38 = vrot.slane %v3515_v27, 1  ;;  %v2561_v5 = vld [vmem:[%s2440_s26 + $0x14] sm:$0x1]  ;;  %v2302_v26 = vld [vmem:[%s3510_s1] sm:$0xff]  ;;  %v2735_v11 = vld [vmem:[%s2440_s26 + $0x2c] sm:$0x1] }
  0x18   : > { %v2506_v40 = vpack.c.bf16 %v366_v37, %v364_v36  ;;  %v384_v41 = vsel %vm321_vm0, %v382_v28, %v383_v32  ;;  %v3552_v42 = vunpack.c.h.bf16 %v2469_v20  ;;  %v3551_v43 = vunpack.c.l.bf16 %v2487_v29  ;;  %955 = vmatpush.bf16.msrb.mxu2 %v2306_v61  ;;  %v2308_v25 = vld [vmem:[%s3510_s1 + $0x30] sm:$0xff]  ;;  %v2310_v28 = vld [vmem:[%s3510_s1 + $0x40] sm:$0xff]  ;;  %672 = vmatpush.bf16.msrb.mxu1 %v2302_v26  ;;  %v2616_v26 = vld [vmem:[%s2440_s26 + $0x78] sm:$0xff]  }
  0x19   : > { %2067 = vmatmul.msk.bf16.vlgmr.msra.gmra.mxu1 %vm467_vm1, %v2497_v35  ;;  %v386_v45 = vsel %vm321_vm0, %v383_v32, %v385_v38  ;;  %v322_v46 = vrot.slane %v3553_v33, 1  ;;  %v3535_v47 = vunpack.c.l.bf16 %v2495_v34  ;;  %v3534_v48 = vunpack.c.h.bf16 %v2495_v34  ;;  %1097 = vmatpush.bf16.msrb.mxu3 %v2308_v25 }
  0x1a   : > { %3583 = vst [vmem:[#allocation3_spill] sm:$0xff] %v2506_v40  ;;  %2071 = vmatmul.msk.bf16.vlgmr.msra.gmra.mxu2 %vm467_vm1, %v2506_v40  ;;  %v2526_v50 = vpack.c.bf16 %v386_v45, %v384_v41  ;;  %v323_v51 = vrot.slane %v3552_v42, 1  ;;  %v325_v52 = vrot.slane %v3551_v43, 1  ;;  %v3533_v53 = vunpack.c.l.bf16 %v2504_v39  ;;  %1249 = vmatpush.bf16.msrb.mxu0 %v2310_v28  ;;  %v2619_v28 = vld [vmem:[%s2440_s26 + $0x80] sm:$0x1] }
  0x1b   : > { %v3520_v54 = vunpack.c.l.bf16 %v2512_v44  ;;  %v3519_v55 = vunpack.c.h.bf16 %v2512_v44  ;;  %v3518_v59 = vunpack.c.l.bf16 %v2522_v49  ;;  %v347_v63 = vrot.slane %v3535_v47, 1 }
  0x1c   : > { %2075 = vmatmul.msk.bf16.vlgmr.msra.gmra.mxu3 %vm467_vm1, %v2526_v50  ;;  %v324_v57 = vsel %vm321_vm0, %v322_v46, %v323_v51  ;;  %v326_v58 = vsel %vm321_vm0, %v323_v51, %v325_v52  ;;  %v348_v1 = vrot.slane %v3534_v48, 1  ;;  %v350_v2 = vrot.slane %v3533_v53, 1 }
  0x1d   : > { %v434_v62 = vpack.c.bf16 %v326_v58, %v324_v57  ;;  %v3514_v3 = vunpack.c.l.bf16 %v2536_v56  ;;  %v3513_v4 = vunpack.c.h.bf16 %v2536_v56  ;;  %v367_v21 = vrot.slane %v3520_v54, 1 }
  0x1e   : > { %v368_v22 = vrot.slane %v3519_v55, 1  ;;  %v370_v23 = vrot.slane %v3518_v59, 1  ;;  %v3512_v24 = vunpack.c.l.bf16 %v2544_v60  ;;  %v3550_v30 = vunpack.c.l.bf16 %v2552_v0 }
  0x1f   : > { %2063 = vmatmul.msk.bf16.vlgmr.msra.gmra.mxu0 %vm467_vm1, %v434_v62  ;;  %v3549_v31 = vunpack.c.h.bf16 %v2552_v0  ;;  %v387_v32 = vrot.slane %v3514_v3, 1  ;;  %v388_v36 = vrot.slane %v3513_v4, 1  ;;  %v3542_v38 = vunpack.c.l.bf16 %v2561_v5  ;;  %v2648_v4 = vld [vmem:[%s2440_s26 + $0x20] sm:$0x1] }
  0x20   : > { %v390_v37 = vrot.slane %v3512_v24, 1  ;;  %v349_v41 = vsel %vm321_vm0, %v347_v63, %v348_v1  ;;  %v351_v45 = vsel %vm321_vm0, %v348_v1, %v350_v2  ;;  %v369_v46 = vsel %vm321_vm0, %v367_v21, %v368_v22  ;;  %v2606_v2 = vld [vmem:[%s2440_s26 + $0x48] sm:$0xff]   ;;  %v2609_v21 = vld [vmem:[%s2440_s26 + $0x50] sm:$0x1]  ;;  %v2645_v24 = vld [vmem:[%s2440_s26 + $0x18] sm:$0xff]  }
  0x21   : > { %v371_v51 = vsel %vm321_vm0, %v368_v22, %v370_v23  ;;  %v327_v52 = vrot.slane %v3550_v30, 1  ;;  %v328_v57 = vrot.slane %v3549_v31, 1  ;;  %v330_v58 = vrot.slane %v3542_v38, 1 }
  0x22   : > { %v2599_v61 = vpack.c.bf16 %v351_v45, %v349_v41  ;;  %v389_v62 = vsel %vm321_vm0, %v387_v32, %v388_v36  ;;  %v391_v63 = vsel %vm321_vm0, %v388_v36, %v390_v37  ;;  %v2603_v1 = vpack.c.bf16 %v371_v51, %v369_v46  ;;  %v2629_v41 = vld [vmem:[%s2440_s26 + $0xa8] sm:$0xff]   ;;  %v2632_v45 = vld [vmem:[%s2440_s26 + $0xb0] sm:$0x1] }
  0x23   : > { %v2611_v22 = vpack.c.bf16 %v391_v63, %v389_v62  ;;  %v329_v23 = vsel %vm321_vm0, %v327_v52, %v328_v57  ;;  %v331_v25 = vsel %vm321_vm0, %v328_v57, %v330_v58  ;;  %v3532_v32 = vunpack.c.l.bf16 %v2606_v2  ;;  %3586 = vst [vmem:[#allocation6_spill] sm:$0xff] %v2629_v41 }
  0x24   : > { %3584 = vst [vmem:[#allocation4_spill] sm:$0xff] %v2599_v61  ;;  %v3528_v36 = vunpack.c.h.bf16 %v2606_v2  ;;  %v3527_v37 = vunpack.c.l.bf16 %v2609_v21  ;;  %v2634_v46 = vpack.c.bf16 %v331_v25, %v329_v23  ;;  %v3522_v51 = vunpack.c.l.bf16 %v2616_v26 }
  0x25   : > { %3585 = vst [vmem:[#allocation5_spill] sm:$0xff] %v2603_v1  ;;  %v3523_v52 = vunpack.c.h.bf16 %v2616_v26  ;;  %v3525_v57 = vunpack.c.l.bf16 %v2619_v28  ;;  %v3529_v58 = vunpack.c.l.bf16 %v2629_v41  ;;  %v3530_v62 = vunpack.c.h.bf16 %v2629_v41 }
  0x26   : > { %3587 = vst [vmem:[#allocation7_spill] sm:$0xff] %v2632_v45  ;;  %v3531_v63 = vunpack.c.l.bf16 %v2632_v45  ;;  %v352_v23 = vrot.slane %v3532_v32, 1  ;;  %v353_v25 = vrot.slane %v3528_v36, 1  ;;  %v355_v3 = vrot.slane %v3527_v37, 1 }
  0x27   : > { %v372_v27 = vrot.slane %v3522_v51, 1  ;;  %v373_v19 = vrot.slane %v3523_v52, 1  ;;  %v375_v18 = vrot.slane %v3525_v57, 1  ;;  %v3541_v59 = vunpack.c.l.bf16 %v2645_v24 }
  0x28   : > { %v3540_v55 = vunpack.c.h.bf16 %v2645_v24  ;;  %v3539_v54 = vunpack.c.l.bf16 %v2648_v4  ;;  %v392_v17 = vrot.slane %v3529_v58, 1  ;;  %v393_v51 = vrot.slane %v3530_v62, 1 }
  0x29   : > { %2068 = vmatmul.msk.bf16.gmra.mxu1 %vm467_vm1, %v2599_v61  ;;  %v395_v52 = vrot.slane %v3531_v63, 1  ;;  %v354_v16 = vsel %vm321_vm0, %v352_v23, %v353_v25  ;;  %v356_v57 = vsel %vm321_vm0, %v353_v25, %v355_v3  ;;  %v374_v12 = vsel %vm321_vm0, %v372_v27, %v373_v19 }
  0x2a   : > { %2072 = vmatmul.msk.bf16.gmra.mxu2 %vm467_vm1, %v2603_v1  ;;  %v376_v37 = vsel %vm321_vm0, %v373_v19, %v375_v18  ;;  %v332_v36 = vrot.slane %v3541_v59, 1  ;;  %v333_v58 = vrot.slane %v3540_v55, 1  ;;  %v335_v62 = vrot.slane %v3539_v54, 1  ;;  %v2690_v18 = vld [vmem:[%s2440_s26 + $0x54] sm:$0xff]   ;;  %v2693_v19 = vld [vmem:[%s2440_s26 + $0x5c] sm:$0x1] }
  0x2b   : > { %v2683_v63 = vpack.c.bf16 %v356_v57, %v354_v16  ;;  %v394_v23 = vsel %vm321_vm0, %v392_v17, %v393_v51  ;;  %v396_v3 = vsel %vm321_vm0, %v393_v51, %v395_v52  ;;  %v2687_v27 = vpack.c.bf16 %v376_v37, %v374_v12  ;;  %3589 = vst [vmem:[#allocation9_spill] sm:$0xff] %v2690_v18  ;;  %v2700_v16 = vld [vmem:[%s2440_s26 + $0x84] sm:$0xff]   ;;  %v2703_v57 = vld [vmem:[%s2440_s26 + $0x8c] sm:$0x1]  ;;  %v2713_v37 = vld [vmem:[%s2440_s26 + $0xb4] sm:$0xff]  }
  0x2c   : > { %2076 = vmatmul.msk.bf16.gmra.mxu3 %vm467_vm1, %v2611_v22  ;;  %v2695_v25 = vpack.c.bf16 %v396_v3, %v394_v23  ;;  %v334_v32 = vsel %vm321_vm0, %v332_v36, %v333_v58  ;;  %v336_v53 = vsel %vm321_vm0, %v333_v58, %v335_v62  ;;  %v3546_v12 = vunpack.c.l.bf16 %v2690_v18  ;;  %v2716_v51 = vld [vmem:[%s2440_s26 + $0xbc] sm:$0x1]  ;;  %v2315_v3 = vld [vmem:[%s3510_s1 + $0x68] sm:$0xff] }
  0x2d   : > { %3588 = vst [vmem:[#allocation8_spill] sm:$0xff] %v2683_v63  ;;  %v3543_v17 = vunpack.c.h.bf16 %v2690_v18  ;;  %v3544_v36 = vunpack.c.l.bf16 %v2693_v19  ;;  %v2718_v52 = vpack.c.bf16 %v336_v53, %v334_v32  ;;  %v3545_v58 = vunpack.c.l.bf16 %v2700_v16  ;;  %v2732_v32 = vld [vmem:[%s2440_s26 + $0x24] sm:$0xff]   ;;  %1539 = vmatpush.bf16.msra.mxu2 %v2315_v3  ;;  %v2313_v3 = vld [vmem:[%s3510_s1 + $0x58] sm:$0xff] }
  0x2e   : > { %3590 = vst [vmem:[#allocation10_spill] sm:$0xff] %v2695_v25  ;;  %v3547_v62 = vunpack.c.h.bf16 %v2700_v16  ;;  %v3548_v23 = vunpack.c.l.bf16 %v2703_v57  ;;  %v3557_v48 = vunpack.c.l.bf16 %v2713_v37  ;;  %v3560_v47 = vunpack.c.h.bf16 %v2713_v37  ;;  %1397 = vmatpush.bf16.msra.mxu1 %v2313_v3 }
  0x2f   : > { %2064 = vmatmul.msk.bf16.gmra.mxu0 %vm467_vm1, %v2634_v46  ;;  %v3561_v53 = vunpack.c.l.bf16 %v2716_v51  ;;  %v357_v10 = vrot.slane %v3546_v12, 1  ;;  %v358_v9 = vrot.slane %v3543_v17, 1  ;;  %v360_v54 = vrot.slane %v3544_v36, 1  ;;  %v2317_v17 = vld [vmem:[%s3510_s1 + $0x78] sm:$0xff]  ;;  %v2319_v36 = vld [vmem:[%s3510_s1 + $0x88] sm:$0xff] }
  0x30   : > { %v377_v55 = vrot.slane %v3545_v58, 1  ;;  %v378_v59 = vrot.slane %v3547_v62, 1  ;;  %v380_v38 = vrot.slane %v3548_v23, 1  ;;  %v208_v58 = vunpack.c.l.bf16 %v2732_v32  ;;  %1691 = vmatpush.bf16.msra.mxu3 %v2317_v17  ;;  %1840 = vmatpush.bf16.msra.mxu0 %v2319_v36 }
  0x31   : > { %v209_v12 = vunpack.c.h.bf16 %v2732_v32  ;;  %v210_v62 = vunpack.c.l.bf16 %v2735_v11  ;;  %v397_v23 = vrot.slane %v3557_v48, 1  ;;  %v398_v31 = vrot.slane %v3560_v47, 1 }
  0x32   : > { %v400_v30 = vrot.slane %v3561_v53, 1  ;;  %v359_v43 = vsel %vm321_vm0, %v357_v10, %v358_v9  ;;  %v361_v42 = vsel %vm321_vm0, %v358_v9, %v360_v54  ;;  %v379_v33 = vsel %vm321_vm0, %v377_v55, %v378_v59 }
  0x33   : > { %v381_v11 = vsel %vm321_vm0, %v378_v59, %v380_v38  ;;  %v337_v45 = vrot.slane %v208_v58, 1  ;;  %v340_v48 = vrot.slane %v210_v62, 1  ;;  %v2773_v41 = vpack.c.bf16 %v361_v42, %v359_v43 }
  0x34   : > { %v399_v47 = vsel %vm321_vm0, %v397_v23, %v398_v31  ;;  %v401_v53 = vsel %vm321_vm0, %v398_v31, %v400_v30  ;;  %v2777_v17 = vpack.c.bf16 %v381_v11, %v379_v33  ;;  %v3592_v33 = vunpack.c.l.bf16 %v2469_v20 }
  0x35   : > { %3591 = vst [vmem:[#allocation11_spill] sm:$0xff] %v2773_v41  ;;  %v2779_v3 = vpack.c.bf16 %v401_v53, %v399_v47  ;;  %v3593_v47 = vunpack.c.h.bf16 %v2469_v20  ;;  %v3594_v54 = vunpack.c.l.bf16 %v2487_v29  ;;  %v3595_v29 = vunpack.c.l.bf16 %v2552_v0 }
  0x36   : > { %v755_v43 = vrot.slane %v3592_v33, 2  ;;  %v3597_v36 = vunpack.c.l.bf16 %v2561_v5  ;;  %v3598_v5 = vunpack.c.l.bf16 %v2645_v24  ;;  %v3600_v33 = vunpack.c.l.bf16 %v2648_v4 }
  0x37   : > { %v758_v55 = vrot.slane %v3594_v54, 2  ;;  %v760_v38 = vrot.slane %v3595_v29, 2  ;;  %v770_v4 = vrot.slane %v208_v58, 2  ;;  %v771_v54 = vrot.slane %v209_v12, 2 }
  0x38   : > { %v763_v23 = vrot.slane %v3597_v36, 2 }
  0x39   : > { %2069 = vmatmul.msk.bf16.gmra.mxu1 %vm467_vm1, %v2683_v63 }
  0x3a   : > { %2073 = vmatmul.msk.bf16.gmra.mxu2 %vm467_vm1, %v2687_v27 }
  0x3c   : > { %2077 = vmatmul.msk.bf16.gmra.mxu3 %vm467_vm1, %v2695_v25  ;;  %v338_v25 = vrot.slane %v209_v12, 1  ;;  %v3601_v12 = vunpack.c.l.bf16 %v2443_v6 }
  0x3e   : > { %v339_v9 = vsel %vm321_vm0, %v337_v45, %v338_v25  ;;  %v341_v10 = vsel %vm321_vm0, %v338_v25, %v340_v48  ;;  %v756_v48 = vrot.slane %v3593_v47, 2  ;;  %v3596_v45 = vunpack.c.h.bf16 %v2552_v0 }
  0x3f   : > { %2065 = vmatmul.msk.bf16.gmra.mxu0 %vm467_vm1, %v2718_v52  ;;  %v2787_v42 = vpack.c.bf16 %v341_v10, %v339_v9  ;;  %v3599_v9 = vunpack.c.h.bf16 %v2645_v24  ;;  %v775_v58 = vrot.slane %v3601_v12, 2 }
  0x40   : > { %v757_v59 = vsel %vm754_vm2, %v755_v43, %v756_v48  ;;  %v759_v30 = vsel %vm754_vm2, %v756_v48, %v758_v55  ;;  %v761_v25 = vrot.slane %v3596_v45, 2  ;;  %v768_v43 = vrot.slane %v3600_v33, 2 }
  0x41   : > { %v867_v31 = vpack.c.bf16 %v759_v30, %v757_v59  ;;  %v766_v10 = vrot.slane %v3599_v9, 2  ;;  %v773_v55 = vrot.slane %v210_v62, 2  ;;  %v772_v59 = vsel %vm754_vm2, %v770_v4, %v771_v54 }
  0x42   : > { %v762_v53 = vsel %vm754_vm2, %v760_v38, %v761_v25  ;;  %v3602_v62 = vunpack.c.h.bf16 %v2443_v6  ;;  %v3603_v38 = vunpack.c.l.bf16 %v2446_v7  ;;  %v3606_v9 = vunpack.c.l.bf16 %v2495_v34 }
  0x43   : > { %v769_v47 = vsel %vm754_vm2, %v766_v10, %v768_v43  ;;  %v774_v30 = vsel %vm754_vm2, %v771_v54, %v773_v55  ;;  %v3608_v43 = vunpack.c.l.bf16 %v2504_v39 }
  0x44   : > { %v776_v29 = vrot.slane %v3602_v62, 2  ;;  %v778_v45 = vrot.slane %v3603_v38, 2  ;;  %v3612_v38 = vunpack.c.l.bf16 %v2606_v2 }
  0x46   : > { %v779_v36 = vsel %vm754_vm2, %v776_v29, %v778_v45  ;;  %v785_v45 = vrot.slane %v3612_v38, 2  ;;  %v2314_v38 = vld [vmem:[%s3510_s1 + $0x60] sm:$0xff] }
  0x47   : > { %1540 = vmatpush.bf16.msra.mxu2 %v2314_v38  ;;  %v2312_v38 = vld [vmem:[%s3510_s1 + $0x50] sm:$0xff] }
  0x48   : > { %1398 = vmatpush.bf16.msra.mxu1 %v2312_v38 }
  0x49   : > { %2070 = vmatmul.msk.bf16.gmra.mxu1 %vm467_vm1, %v2773_v41 }
  0x4a   : > { %2074 = vmatmul.msk.bf16.gmra.mxu2 %vm467_vm1, %v2777_v17 }
  0x4c   : > { %2078 = vmatmul.msk.bf16.gmra.mxu3 %vm467_vm1, %v2779_v3 }
  0x4f   : > { %2066 = vmatmul.msk.bf16.gmra.mxu0 %vm467_vm1, %v2787_v42 }
  0x59   : > { %2087 = vmatmul.msk.bf16.vlgmr.msrb.gmra.mxu1 %vm467_vm1, %v2469_v20  ;;  %v764_v20 = vsel %vm754_vm2, %v761_v25, %v763_v23  ;;  %v777_v25 = vsel %vm754_vm2, %v775_v58, %v776_v29 }
  0x5a   : > { %2115 = vmatmul.msk.bf16.vlgmr.msrb.gmra.mxu2 %vm467_vm1, %v867_v31  ;;  %v2816_v11 = vpack.c.bf16 %v764_v20, %v762_v53  ;;  %v2846_v31 = vpack.c.bf16 %v774_v30, %v772_v59  ;;  %v2866_v53 = vpack.c.bf16 %v779_v36, %v777_v25  ;;  %v3613_v25 = vunpack.c.h.bf16 %v2606_v2 }
  0x5c   : > { %2143 = vmatmul.msk.bf16.vlgmr.msrb.gmra.mxu3 %vm467_vm1, %v2552_v0  ;;  %3604 = vst [vmem:[#allocation12_spill] sm:$0xff] %v2866_v53  ;;  %v786_v36 = vrot.slane %v3613_v25, 2 }
  0x5f   : > { %2171 = vmatmul.msk.bf16.vlgmr.msrb.gmra.mxu0 %vm467_vm1, %v2634_v46  ;;  %v765_v46 = vrot.slane %v3598_v5, 2 }
  0x69   : > { %2088 = vmatmul.msk.bf16.gmra.mxu1 %vm467_vm1, %v2552_v0  ;;  %v767_v0 = vsel %vm754_vm2, %v765_v46, %v766_v10  ;;  %v3607_v10 = vunpack.c.h.bf16 %v2495_v34 }
  0x6a   : > { %2116 = vmatmul.msk.bf16.gmra.mxu2 %vm467_vm1, %v2816_v11  ;;  %v2834_v48 = vpack.c.bf16 %v769_v47, %v767_v0  ;;  %v783_v0 = vrot.slane %v3608_v43, 2 }
  0x6b   : > { %v781_v33 = vrot.slane %v3607_v10, 2  ;;  %v787_v10 = vsel %vm754_vm2, %v785_v45, %v786_v36 }
  0x6c   : > { %2144 = vmatmul.msk.bf16.gmra.mxu3 %vm467_vm1, %v2645_v24 }
  0x6d   : > { %v784_v4 = vsel %vm754_vm2, %v781_v33, %v783_v0 }
  0x6f   : > { %2172 = vmatmul.msk.bf16.gmra.mxu0 %vm467_vm1, %v2718_v52 }
  0x79   : > { %2089 = vmatmul.msk.bf16.gmra.mxu1 %vm467_vm1, %v2645_v24 }
  0x7a   : > { %2117 = vmatmul.msk.bf16.gmra.mxu2 %vm467_vm1, %v2834_v48 }
  0x7c   : > { %2145 = vmatmul.msk.bf16.gmra.mxu3 %vm467_vm1, %v2732_v32 }
  0x7f   : > { %2173 = vmatmul.msk.bf16.gmra.mxu0 %vm467_vm1, %v2787_v42 }
  0x89   : > { %2090 = vmatmul.msk.bf16.gmra.mxu1 %vm467_vm1, %v2732_v32 }
  0x8a   : > { %2118 = vmatmul.msk.bf16.gmra.mxu2 %vm467_vm1, %v2846_v31 }
  0x8c   : > { %2146 = vmatmul.msk.bf16.gmra.mxu3 %vm467_vm1, %v2443_v6 }
  0x8f   : > { %2174 = vmatmul.msk.bf16.gmra.mxu0 %vm467_vm1, %v2497_v35 }
  0x96   : > { %v2864_v23 = vpop.f32.mrf.mxu1 }
  0x99   : > { %2091 = vmatmul.msk.bf16.gmra.mxu1 %vm467_vm1, %v2443_v6  ;;  %v780_v6 = vrot.slane %v3606_v9, 2  ;;  %v3614_v9 = vunpack.c.l.bf16 %v2609_v21 }
  0x9a   : > { %2119 = vmatmul.msk.bf16.gmra.mxu2 %vm467_vm1, %v2866_v53 }
  0x9b   : > { %v782_v47 = vsel %vm754_vm2, %v780_v6, %v781_v33  ;;  %v788_v6 = vrot.slane %v3614_v9, 2 }
  0x9c   : > { %v2872_v20 = vpop.f32.mrf.mxu0  ;;  %2147 = vmatmul.msk.bf16.gmra.mxu3 %vm467_vm1, %v2495_v34  ;;  %v2898_v30 = vpack.c.bf16 %v784_v4, %v782_v47 }
  0x9d   : > { %v2876_v7 = vpop.f32.mrf.mxu2  ;;  %v789_v33 = vsel %vm754_vm2, %v786_v36, %v788_v6  ;;  %v3618_v36 = vunpack.c.l.bf16 %v2690_v18  ;;  %v3619_v6 = vunpack.c.h.bf16 %v2690_v18 }
  0x9e   : > { %v2878_v5 = vpop.f32.mrf.mxu1  ;;  %3609 = vst [vmem:[#allocation14_spill] sm:$0xff] %v2898_v30  ;;  %v2932_v4 = vpack.c.bf16 %v789_v33, %v787_v10  ;;  %v3620_v33 = vunpack.c.l.bf16 %v2693_v19  ;;  %v2318_v19 = vld [vmem:[%s3510_s1 + $0x80] sm:$0xff] }
  0x9f   : > { %2175 = vmatmul.msk.bf16.gmra.mxu0 %vm467_vm1, %v2599_v61  ;;  %v2882_v46 = vpop.f32.mrf.mxu3  ;;  %v790_v9 = vrot.slane %v3618_v36, 2  ;;  %v791_v10 = vrot.slane %v3619_v6, 2 }
  0xa0   : > { %3605 = vst [vmem:[#allocation13_spill] sm:$0xff] %v2882_v46  ;;  %1841 = vmatpush.bf16.msra.mxu0 %v2318_v19 }
  0xa1   : > { %3615 = vst [vmem:[#allocation17_spill] sm:$0xff] %v2932_v4 }
  0xa4   : > { %v2892_v54 = vpop.f32.mrf.mxu0 }
  0xa5   : > { %v2894_v55 = vpop.f32.mrf.mxu2 }
  0xa6   : > { %v2896_v59 = vpop.f32.mrf.mxu1 }
  0xa7   : > { %v2900_v12 = vpop.f32.mrf.mxu3 }
  0xa8   : > { %3610 = vst [vmem:[#allocation15_spill] sm:$0xff] %v2900_v12  ;;  %v2316_v12 = vld [vmem:[%s3510_s1 + $0x70] sm:$0xff] }
  0xa9   : > { %2092 = vmatmul.msk.bf16.gmra.mxu1 %vm467_vm1, %v2495_v34  ;;  %1692 = vmatpush.bf16.msra.mxu3 %v2316_v12 }
  0xaa   : > { %2120 = vmatmul.msk.bf16.gmra.mxu2 %vm467_vm1, %v2898_v30 }
  0xac   : > { %v2906_v39 = vpop.f32.mrf.mxu0  ;;  %2148 = vmatmul.msk.bf16.gmra.mxu3 %vm467_vm1, %v2606_v2 }
  0xad   : > { %v2910_v58 = vpop.f32.mrf.mxu2 }
  0xae   : > { %v2912_v62 = vpop.f32.mrf.mxu1 }
  0xaf   : > { %2176 = vmatmul.msk.bf16.gmra.mxu0 %vm467_vm1, %v2683_v63  ;;  %v2916_v29 = vpop.f32.mrf.mxu3 }
  0xb0   : > { %3611 = vst [vmem:[#allocation16_spill] sm:$0xff] %v2916_v29 }
  0xb4   : > { %v2926_v43 = vpop.f32.mrf.mxu0 }
  0xb5   : > { %v2928_v0 = vpop.f32.mrf.mxu2 }
  0xb6   : > { %v2930_v47 = vpop.f32.mrf.mxu1 }
  0xb7   : > { %v2934_v29 = vpop.f32.mrf.mxu3 }
  0xb8   : > { %3616 = vst [vmem:[#allocation18_spill] sm:$0xff] %v2934_v29  ;;  %v793_v29 = vrot.slane %v3620_v33, 2 }
  0xb9   : > { %2093 = vmatmul.msk.bf16.gmra.mxu1 %vm467_vm1, %v2606_v2 }
  0xba   : > { %2121 = vmatmul.msk.bf16.gmra.mxu2 %vm467_vm1, %v2932_v4  ;;  %v794_v36 = vsel %vm754_vm2, %v791_v10, %v793_v29 }
  0xbc   : > { %v2940_v21 = vpop.f32.mrf.mxu0  ;;  %2149 = vmatmul.msk.bf16.gmra.mxu3 %vm467_vm1, %v2690_v18 }
  0xbd   : > { %v2947_v45 = vpop.f32.mrf.mxu2 }
  0xbe   : > { %v2949_v25 = vpop.f32.mrf.mxu1 }
  0xbf   : > { %2177 = vmatmul.msk.bf16.gmra.mxu0 %vm467_vm1, %v2773_v41  ;;  %v2953_v2 = vpop.f32.mrf.mxu3 }
  0xc0   : > { %3617 = vst [vmem:[#allocation19_spill] sm:$0xff] %v2953_v2  ;;  %v792_v2 = vsel %vm754_vm2, %v790_v9, %v791_v10  ;;  %v3626_v10 = vunpack.c.l.bf16 %v2449_v8 }
  0xc1   : > { %v2978_v4 = vpack.c.bf16 %v794_v36, %v792_v2  ;;  %v3627_v36 = vunpack.c.h.bf16 %v2449_v8 }
  0xc2   : > { %v795_v38 = vrot.slane %v3626_v10, 2 }
  0xc3   : > { %3622 = vst [vmem:[#allocation21_spill] sm:$0xff] %v2978_v4  ;;  %v796_v19 = vrot.slane %v3627_v36, 2 }
  0xc4   : > { %v2969_v41 = vpop.f32.mrf.mxu0 }
  0xc5   : > { %v2974_v6 = vpop.f32.mrf.mxu2 }
  0xc6   : > { %3621 = vst [vmem:[#allocation20_spill] sm:$0xff] %v2974_v6  ;;  %v2976_v33 = vpop.f32.mrf.mxu1 }
  0xc7   : > { %v2980_v63 = vpop.f32.mrf.mxu3 }
  0xc8   : > { %3623 = vst [vmem:[#allocation22_spill] sm:$0xff] %v2980_v63  ;;  %v3628_v63 = vunpack.c.l.bf16 %v2456_v13 }
  0xc9   : > { %2094 = vmatmul.msk.bf16.gmra.mxu1 %vm467_vm1, %v2690_v18  ;;  %v797_v18 = vsel %vm754_vm2, %v795_v38, %v796_v19 }
  0xca   : > { %2122 = vmatmul.msk.bf16.gmra.mxu2 %vm467_vm1, %v2978_v4  ;;  %v798_v4 = vrot.slane %v3628_v63, 2 }
  0xcc   : > { %v2986_v12 = vpop.f32.mrf.mxu0  ;;  %2150 = vmatmul.msk.bf16.gmra.mxu3 %vm467_vm1, %v2449_v8  ;;  %v799_v46 = vsel %vm754_vm2, %v796_v19, %v798_v4  ;;  %v3634_v19 = vunpack.c.l.bf16 %v2522_v49 }
  0xcd   : > { %v2990_v29 = vpop.f32.mrf.mxu2 }
  0xce   : > { %3624 = vst [vmem:[#allocation23_spill] sm:$0xff] %v2990_v29  ;;  %v2992_v9 = vpop.f32.mrf.mxu1  ;;  %v3010_v29 = vpack.c.bf16 %v799_v46, %v797_v18 }
  0xcf   : > { %2178 = vmatmul.msk.bf16.gmra.mxu0 %vm467_vm1, %v2506_v40  ;;  %v2996_v2 = vpop.f32.mrf.mxu3 }
  0xd0   : > { %3625 = vst [vmem:[#allocation24_spill] sm:$0xff] %v2996_v2 }
  0xd1   : > { %3630 = vst [vmem:[#allocation26_spill] sm:$0xff] %v3010_v29 }
  0xd4   : > { %v3006_v30 = vpop.f32.mrf.mxu0 }
  0xd5   : > { %v3008_v61 = vpop.f32.mrf.mxu2 }
  0xd6   : > { %3629 = vst [vmem:[#allocation25_spill] sm:$0xff] %v3008_v61  ;;  %v674_v40 = vpop.f32.mrf.mxu1 }
  0xd7   : > { %v3012_v2 = vpop.f32.mrf.mxu3  ;;  %v675_v10 = vadd.f32 %v674_v40, %v2872_v20  ;;  %v3632_v40 = vunpack.c.l.bf16 %v2512_v44 }
  0xd8   : > { %3631 = vst [vmem:[#allocation27_spill] sm:$0xff] %v3012_v2  ;;  %v803_v2 = vrot.slane %v3634_v19, 2 }
  0xd9   : > { %2095 = vmatmul.msk.bf16.gmra.mxu1 %vm467_vm1, %v2449_v8  ;;  %v800_v20 = vrot.slane %v3632_v40, 2  ;;  %v3633_v8 = vunpack.c.h.bf16 %v2512_v44 }
  0xda   : > { %2123 = vmatmul.msk.bf16.gmra.mxu2 %vm467_vm1, %v3010_v29 }
  0xdb   : > { %v801_v36 = vrot.slane %v3633_v8, 2 }
  0xdc   : > { %v1251_v13 = vpop.f32.mrf.mxu0  ;;  %2151 = vmatmul.msk.bf16.gmra.mxu3 %vm467_vm1, %v2512_v44 }
  0xdd   : > { %v957_v63 = vpop.f32.mrf.mxu2 }
  0xde   : > { %v1037_v4 = vadd.f32 %v957_v63, %v675_v10  ;;  %v676_v38 = vpop.f32.mrf.mxu1  ;;  %v802_v10 = vsel %vm754_vm2, %v800_v20, %v801_v36  ;;  %v804_v63 = vsel %vm754_vm2, %v801_v36, %v803_v2  ;;  %v3637_v20 = vunpack.c.l.bf16 %v2619_v28 }
  0xdf   : > { %2179 = vmatmul.msk.bf16.gmra.mxu0 %vm467_vm1, %v2603_v1  ;;  %v1099_v18 = vpop.f32.mrf.mxu3  ;;  %v677_v46 = vadd.f32 %v676_v38, %v2892_v54  ;;  %v3034_v38 = vpack.c.bf16 %v804_v63, %v802_v10 }
  0xe0   : > { %v1179_v29 = vadd.f32 %v1099_v18, %v1037_v4  ;;  %v3635_v4 = vunpack.c.l.bf16 %v2616_v26  ;;  %v808_v36 = vrot.slane %v3637_v20, 2  ;;  %v3639_v20 = vunpack.c.h.bf16 %v2700_v16 }
  0xe2   : > { %v3030_v61 = vadd.f32 %v1251_v13, %v1179_v29  ;;  %v805_v18 = vrot.slane %v3635_v4, 2 }
  0xe4   : > { %v1253_v1 = vpop.f32.mrf.mxu0 }
  0xe5   : > { %v959_v34 = vpop.f32.mrf.mxu2 }
  0xe6   : > { %v1038_v6 = vadd.f32 %v959_v34, %v677_v46  ;;  %v679_v54 = vpop.f32.mrf.mxu1  ;;  %v3636_v46 = vunpack.c.h.bf16 %v2616_v26 }
  0xe7   : > { %v1101_v40 = vpop.f32.mrf.mxu3  ;;  %v680_v53 = vadd.f32 %v679_v54, %v2906_v39 }
  0xe8   : > { %v1180_v8 = vadd.f32 %v1101_v40, %v1038_v6 }
  0xe9   : > { %2096 = vmatmul.msk.bf16.gmra.mxu1 %vm467_vm1, %v2512_v44 }
  0xea   : > { %2124 = vmatmul.msk.bf16.gmra.mxu2 %vm467_vm1, %v3034_v38  ;;  %v3041_v49 = vadd.f32 %v1253_v1, %v1180_v8  ;;  %v806_v1 = vrot.slane %v3636_v46, 2 }
  0xec   : > { %v1256_v29 = vpop.f32.mrf.mxu0  ;;  %2152 = vmatmul.msk.bf16.gmra.mxu3 %vm467_vm1, %v2616_v26  ;;  %v809_v63 = vsel %vm754_vm2, %v806_v1, %v808_v36  ;;  %v811_v36 = vrot.slane %v3639_v20, 2  ;;  %v3641_v20 = vunpack.c.l.bf16 %v2459_v14 }
  0xed   : > { %v962_v34 = vpop.f32.mrf.mxu2 }
  0xee   : > { %v1039_v2 = vadd.f32 %v962_v34, %v680_v53  ;;  %v681_v13 = vpop.f32.mrf.mxu1  ;;  %v807_v53 = vsel %vm754_vm2, %v805_v18, %v806_v1 }
  0xef   : > { %2180 = vmatmul.msk.bf16.gmra.mxu0 %vm467_vm1, %v2687_v27  ;;  %v1104_v39 = vpop.f32.mrf.mxu3  ;;  %v682_v6 = vadd.f32 %v681_v13, %v2926_v43  ;;  %v3058_v34 = vpack.c.bf16 %v809_v63, %v807_v53 }
  0xf0   : > { %v1181_v19 = vadd.f32 %v1104_v39, %v1039_v2 }
  0xf2   : > { %v3054_v10 = vadd.f32 %v1256_v29, %v1181_v19  ;;  %v3640_v19 = vunpack.c.l.bf16 %v2703_v57 }
  0xf4   : > { %v1258_v54 = vpop.f32.mrf.mxu0  ;;  %v813_v53 = vrot.slane %v3640_v19, 2  ;;  %v3642_v19 = vunpack.c.h.bf16 %v2459_v14 }
  0xf5   : > { %v964_v40 = vpop.f32.mrf.mxu2 }
  0xf6   : > { %v1040_v8 = vadd.f32 %v964_v40, %v682_v6  ;;  %v684_v43 = vpop.f32.mrf.mxu1 }
  0xf7   : > { %v1106_v13 = vpop.f32.mrf.mxu3  ;;  %v685_v4 = vadd.f32 %v684_v43, %v2940_v21 }
  0xf8   : > { %v1182_v46 = vadd.f32 %v1106_v13, %v1040_v8  ;;  %v814_v8 = vsel %vm754_vm2, %v811_v36, %v813_v53  ;;  %v816_v53 = vrot.slane %v3642_v19, 2 }
  0xf9   : > { %2097 = vmatmul.msk.bf16.gmra.mxu1 %vm467_vm1, %v2616_v26  ;;  %v3638_v26 = vunpack.c.l.bf16 %v2700_v16 }
  0xfa   : > { %2125 = vmatmul.msk.bf16.gmra.mxu2 %vm467_vm1, %v3058_v34  ;;  %v3065_v28 = vadd.f32 %v1258_v54, %v1182_v46 }
  0xfb   : > { %v810_v1 = vrot.slane %v3638_v26, 2 }
  0xfc   : > { %v1261_v29 = vpop.f32.mrf.mxu0  ;;  %2153 = vmatmul.msk.bf16.gmra.mxu3 %vm467_vm1, %v2700_v16 }
  0xfd   : > { %v967_v2 = vpop.f32.mrf.mxu2  ;;  %v812_v40 = vsel %vm754_vm2, %v810_v1, %v811_v36  ;;  %v815_v36 = vrot.slane %v3641_v20, 2 }
  0xfe   : > { %v1041_v39 = vadd.f32 %v967_v2, %v685_v4  ;;  %v686_v6 = vpop.f32.mrf.mxu1  ;;  %v3082_v46 = vpack.c.bf16 %v814_v8, %v812_v40 }
  0xff   : > { %2181 = vmatmul.msk.bf16.gmra.mxu0 %vm467_vm1, %v2777_v17  ;;  %v1109_v21 = vpop.f32.mrf.mxu3  ;;  %v687_v18 = vadd.f32 %v686_v6, %v2969_v41 }
 0x100   : > { %v1183_v63 = vadd.f32 %v1109_v21, %v1041_v39 }
 0x102   : > { %v3078_v54 = vadd.f32 %v1261_v29, %v1183_v63  ;;  %v3643_v63 = vunpack.c.l.bf16 %v2462_v15 }
 0x104   : > { %v1263_v43 = vpop.f32.mrf.mxu0  ;;  %v818_v40 = vrot.slane %v3643_v63, 2 }
 0x105   : > { %v969_v13 = vpop.f32.mrf.mxu2 }
 0x106   : > { %v1042_v4 = vadd.f32 %v969_v13, %v687_v18  ;;  %v689_v41 = vpop.f32.mrf.mxu1  ;;  %v817_v13 = vsel %vm754_vm2, %v815_v36, %v816_v53 }
 0x107   : > { %v1111_v2 = vpop.f32.mrf.mxu3  ;;  %v690_v6 = vadd.f32 %v689_v41, %v2986_v12 }
 0x108   : > { %v1184_v26 = vadd.f32 %v1111_v2, %v1042_v4  ;;  %v819_v4 = vsel %vm754_vm2, %v816_v53, %v818_v40  ;;  %v3645_v53 = vunpack.c.h.bf16 %v2536_v56  ;;  %v3646_v40 = vunpack.c.l.bf16 %v2544_v60 }
 0x109   : > { %2098 = vmatmul.msk.bf16.gmra.mxu1 %vm467_vm1, %v2700_v16 }
 0x10a   : > { %2126 = vmatmul.msk.bf16.gmra.mxu2 %vm467_vm1, %v3082_v46  ;;  %v3089_v57 = vadd.f32 %v1263_v43, %v1184_v26  ;;  %v3106_v26 = vpack.c.bf16 %v819_v4, %v817_v13  ;;  %v821_v63 = vrot.slane %v3645_v53, 2  ;;  %v3649_v53 = vld [vmem:[#allocation10_spill] sm:$0xff] }
 0x10c   : > { %v1266_v29 = vpop.f32.mrf.mxu0  ;;  %2154 = vmatmul.msk.bf16.gmra.mxu3 %vm467_vm1, %v2459_v14 }
 0x10d   : > { %v972_v39 = vpop.f32.mrf.mxu2 }
 0x10e   : > { %v1043_v21 = vadd.f32 %v972_v39, %v690_v6  ;;  %v691_v18 = vpop.f32.mrf.mxu1 }
 0x10f   : > { %2182 = vmatmul.msk.bf16.gmra.mxu0 %vm467_vm1, %v2526_v50  ;;  %v1114_v12 = vpop.f32.mrf.mxu3  ;;  %v692_v1 = vadd.f32 %v691_v18, %v3006_v30 }
 0x110   : > { %v1185_v8 = vadd.f32 %v1114_v12, %v1043_v21 }
 0x112   : > { %v3102_v43 = vadd.f32 %v1266_v29, %v1185_v8 }
 0x114   : > { %v1268_v41 = vpop.f32.mrf.mxu0 }
 0x115   : > { %v974_v2 = vpop.f32.mrf.mxu2 }
 0x116   : > { %v1044_v6 = vadd.f32 %v974_v2, %v692_v1  ;;  %v694_v30 = vpop.f32.mrf.mxu1 }
 0x117   : > { %v1116_v39 = vpop.f32.mrf.mxu3  ;;  %v695_v29 = vadd.f32 %v694_v30, %v2864_v23  ;;  %v823_v23 = vrot.slane %v3646_v40, 2 }
 0x118   : > { %v1186_v18 = vadd.f32 %v1116_v39, %v1044_v6 }
 0x119   : > { %2099 = vmatmul.msk.bf16.gmra.mxu1 %vm467_vm1, %v2459_v14  ;;  %v3644_v14 = vunpack.c.l.bf16 %v2536_v56 }
 0x11a   : > { %2127 = vmatmul.msk.bf16.gmra.mxu2 %vm467_vm1, %v3106_v26  ;;  %v3112_v15 = vadd.f32 %v1268_v41, %v1186_v18  ;;  %v824_v41 = vsel %vm754_vm2, %v821_v63, %v823_v23 }
 0x11b   : > { %v820_v19 = vrot.slane %v3644_v14, 2 }
 0x11c   : > { %v1271_v21 = vpop.f32.mrf.mxu0  ;;  %2155 = vmatmul.msk.bf16.gmra.mxu3 %vm467_vm1, %v2536_v56 }
 0x11d   : > { %v977_v12 = vpop.f32.mrf.mxu2  ;;  %v822_v4 = vsel %vm754_vm2, %v820_v19, %v821_v63 }
 0x11e   : > { %v1045_v1 = vadd.f32 %v977_v12, %v695_v29  ;;  %v696_v20 = vpop.f32.mrf.mxu1  ;;  %v3130_v29 = vpack.c.bf16 %v824_v41, %v822_v4  ;;  %v3652_v41 = vld [vmem:[#allocation7_spill] sm:$0xff] }
 0x11f   : > { %2183 = vmatmul.msk.bf16.gmra.mxu0 %vm467_vm1, %v2611_v22  ;;  %v1119_v36 = vpop.f32.mrf.mxu3  ;;  %v697_v2 = vadd.f32 %v696_v20, %v2878_v5  ;;  %v3648_v5 = vld [vmem:[#allocation6_spill] sm:$0xff] }
 0x120   : > { %v1187_v8 = vadd.f32 %v1119_v36, %v1045_v1  ;;  %v3650_v40 = vunpack.c.l.bf16 %v3648_v5 }
 0x122   : > { %v3125_v13 = vadd.f32 %v1271_v21, %v1187_v8  ;;  %v825_v23 = vrot.slane %v3650_v40, 2  ;;  %v3651_v8 = vunpack.c.h.bf16 %v3648_v5 }
 0x124   : > { %v1273_v6 = vpop.f32.mrf.mxu0  ;;  %v826_v4 = vrot.slane %v3651_v8, 2 }
 0x125   : > { %v979_v30 = vpop.f32.mrf.mxu2 }
 0x126   : > { %v1046_v39 = vadd.f32 %v979_v30, %v697_v2  ;;  %v699_v18 = vpop.f32.mrf.mxu1  ;;  %v3653_v2 = vunpack.c.l.bf16 %v3652_v41 }
 0x127   : > { %v1121_v12 = vpop.f32.mrf.mxu3  ;;  %v700_v21 = vadd.f32 %v699_v18, %v2896_v59 }
 0x128   : > { %v1188_v14 = vadd.f32 %v1121_v12, %v1046_v39  ;;  %v828_v59 = vrot.slane %v3653_v2, 2  ;;  %v827_v39 = vsel %vm754_vm2, %v825_v23, %v826_v4  ;;  %v3169_v23 = vld [vmem:[%s2440_s26 + $0xc8] sm:$0x1] }
 0x129   : > { %2100 = vmatmul.msk.bf16.gmra.mxu1 %vm467_vm1, %v2536_v56 }
 0x12a   : > { %2128 = vmatmul.msk.bf16.gmra.mxu2 %vm467_vm1, %v3130_v29  ;;  %v3136_v60 = vadd.f32 %v1273_v6, %v1188_v14  ;;  %v829_v18 = vsel %vm754_vm2, %v826_v4, %v828_v59  ;;  %v3654_v59 = vunpack.c.l.bf16 %v2713_v37 }
 0x12c   : > { %3647 = vst [vmem:[#allocation28_spill] sm:$0xff] %v3136_v60  ;;  %v1276_v1 = vpop.f32.mrf.mxu0  ;;  %2156 = vmatmul.msk.bf16.gmra.mxu3 %vm467_vm1, %v3648_v5  ;;  %v3154_v60 = vpack.c.bf16 %v829_v18, %v827_v39  ;;  %v3656_v18 = vunpack.c.l.bf16 %v2716_v51 }
 0x12d   : > { %v982_v20 = vpop.f32.mrf.mxu2 }
 0x12e   : > { %v1047_v36 = vadd.f32 %v982_v20, %v700_v21  ;;  %v701_v19 = vpop.f32.mrf.mxu1 }
 0x12f   : > { %2184 = vmatmul.msk.bf16.gmra.mxu0 %vm467_vm1, %v3649_v53  ;;  %v1124_v63 = vpop.f32.mrf.mxu3  ;;  %v702_v12 = vadd.f32 %v701_v19, %v2912_v62 }
 0x130   : > { %v1189_v6 = vadd.f32 %v1124_v63, %v1047_v36  ;;  %v3166_v63 = vld [vmem:[%s2440_s26 + $0xc0] sm:$0xff]  }
 0x132   : > { %v3149_v30 = vadd.f32 %v1276_v1, %v1189_v6  ;;  %v830_v6 = vrot.slane %v3654_v59, 2 }
 0x134   : > { %v1278_v14 = vpop.f32.mrf.mxu0 }
 0x135   : > { %v984_v21 = vpop.f32.mrf.mxu2 }
 0x136   : > { %v1048_v20 = vadd.f32 %v984_v21, %v702_v12  ;;  %v704_v40 = vpop.f32.mrf.mxu1  ;;  %v833_v12 = vrot.slane %v3656_v18, 2  ;;  %v3581_v21 = vunpack.c.l.bf16 %v3166_v63 }
 0x137   : > { %v1126_v8 = vpop.f32.mrf.mxu3  ;;  %v705_v36 = vadd.f32 %v704_v40, %v2930_v47  ;;  %v3655_v47 = vunpack.c.h.bf16 %v2713_v37  ;;  %v3579_v40 = vunpack.c.l.bf16 %v3169_v23 }
 0x138   : > { %v1190_v41 = vadd.f32 %v1126_v8, %v1048_v20  ;;  %v3580_v20 = vunpack.c.h.bf16 %v3166_v63  ;;  %v1214_v51 = vrot.slane %v3581_v21, 1 }
 0x139   : > { %2101 = vmatmul.msk.bf16.gmra.mxu1 %vm467_vm1, %v3648_v5  ;;  %v831_v39 = vrot.slane %v3655_v47, 2 }
 0x13a   : > { %2129 = vmatmul.msk.bf16.gmra.mxu2 %vm467_vm1, %v3154_v60  ;;  %v3160_v1 = vadd.f32 %v1278_v14, %v1190_v41 }
 0x13b   : > { %v832_v41 = vsel %vm754_vm2, %v830_v6, %v831_v39 }
 0x13c   : > { %v1281_v62 = vpop.f32.mrf.mxu0  ;;  %2157 = vmatmul.msk.bf16.gmra.mxu3 %vm467_vm1, %v2713_v37 }
 0x13d   : > { %v987_v19 = vpop.f32.mrf.mxu2 }
 0x13e   : > { %v1049_v4 = vadd.f32 %v987_v19, %v705_v36  ;;  %v706_v2 = vpop.f32.mrf.mxu1  ;;  %v834_v36 = vsel %vm754_vm2, %v831_v39, %v833_v12 }
 0x13f   : > { %2185 = vmatmul.msk.bf16.gmra.mxu0 %vm467_vm1, %v2779_v3  ;;  %v1129_v5 = vpop.f32.mrf.mxu3  ;;  %v707_v19 = vadd.f32 %v706_v2, %v2949_v25 }
 0x140   : > { %v1191_v14 = vadd.f32 %v1129_v5, %v1049_v4  ;;  %v1215_v4 = vrot.slane %v3580_v20, 1  ;;  %v1217_v5 = vrot.slane %v3579_v40, 1 }
 0x142   : > { %v3182_v8 = vadd.f32 %v1281_v62, %v1191_v14  ;;  %v3193_v14 = vpack.c.bf16 %v834_v36, %v832_v41  ;;  %v1216_v39 = vsel %vm321_vm0, %v1214_v51, %v1215_v4  ;;  %v1218_v25 = vsel %vm321_vm0, %v1215_v4, %v1217_v5 }
 0x143   : > { %v3203_v12 = vpack.c.bf16 %v1218_v25, %v1216_v39 }
 0x144   : > { %3657 = vst [vmem:[#allocation6_spill] sm:$0xff] %v3182_v8  ;;  %v1283_v59 = vpop.f32.mrf.mxu0 }
 0x145   : > { %v989_v47 = vpop.f32.mrf.mxu2 }
 0x146   : > { %v1050_v18 = vadd.f32 %v989_v47, %v707_v19  ;;  %v709_v62 = vpop.f32.mrf.mxu1 }
 0x147   : > { %v1131_v6 = vpop.f32.mrf.mxu3  ;;  %v710_v19 = vadd.f32 %v709_v62, %v2976_v33 }
 0x148   : > { %v1192_v8 = vadd.f32 %v1131_v6, %v1050_v18 }
 0x149   : > { %2102 = vmatmul.msk.bf16.gmra.mxu1 %vm467_vm1, %v2713_v37 }
 0x14a   : > { %2130 = vmatmul.msk.bf16.gmra.mxu2 %vm467_vm1, %v3193_v14  ;;  %v3201_v2 = vadd.f32 %v1283_v59, %v1192_v8 }
 0x14c   : > { %v1286_v41 = vpop.f32.mrf.mxu0  ;;  %2158 = vmatmul.msk.bf16.gmra.mxu3 %vm467_vm1, %v3166_v63 }
 0x14d   : > { %v992_v36 = vpop.f32.mrf.mxu2 }
 0x14e   : > { %v1051_v51 = vadd.f32 %v992_v36, %v710_v19  ;;  %v711_v47 = vpop.f32.mrf.mxu1 }
 0x14f   : > { %2186 = vmatmul.msk.bf16.gmra.mxu0 %vm467_vm1, %v3203_v12  ;;  %v1134_v4 = vpop.f32.mrf.mxu3  ;;  %v712_v8 = vadd.f32 %v711_v47, %v2992_v9 }
 0x150   : > { %v1193_v5 = vadd.f32 %v1134_v4, %v1051_v51 }
 0x152   : > { %v3210_v18 = vadd.f32 %v1286_v41, %v1193_v5 }
 0x154   : > { %v1288_v59 = vpop.f32.mrf.mxu0 }
 0x155   : > { %v994_v6 = vpop.f32.mrf.mxu2 }
 0x156   : > { %v1052_v39 = vadd.f32 %v994_v6, %v712_v8  ;;  %v714_v33 = vpop.f32.mrf.mxu1 }
 0x157   : > { %v1136_v62 = vpop.f32.mrf.mxu3  ;;  %v715_v36 = vadd.f32 %v714_v33, %v2876_v7 }
 0x158   : > { %v1194_v25 = vadd.f32 %v1136_v62, %v1052_v39 }
 0x159   : > { %2199 = vmatmul.msk.bf16.vlgmr.msra.gmra.mxu1 %vm467_vm1, %v2816_v11 }
 0x15a   : > { %2227 = vmatmul.msk.bf16.vlgmr.msra.gmra.mxu2 %vm467_vm1, %v2645_v24  ;;  %v3217_v19 = vadd.f32 %v1288_v59, %v1194_v25 }
 0x15c   : > { %v1291_v41 = vpop.f32.mrf.mxu0  ;;  %2255 = vmatmul.msk.bf16.vlgmr.msra.gmra.mxu3 %vm467_vm1, %v2718_v52 }
 0x15d   : > { %v997_v9 = vpop.f32.mrf.mxu2 }
 0x15e   : > { %v1053_v51 = vadd.f32 %v997_v9, %v715_v36  ;;  %v716_v47 = vpop.f32.mrf.mxu1 }
 0x15f   : > { %2283 = vmatmul.msk.bf16.vlgmr.msra.gmra.mxu0 %vm467_vm1, %v2834_v48  ;;  %v1139_v4 = vpop.f32.mrf.mxu3  ;;  %v717_v24 = vadd.f32 %v716_v47, %v2894_v55 }
 0x160   : > { %v1195_v5 = vadd.f32 %v1139_v4, %v1053_v51 }
 0x162   : > { %v3224_v11 = vadd.f32 %v1291_v41, %v1195_v5 }
 0x164   : > { %v1293_v8 = vpop.f32.mrf.mxu0 }
 0x165   : > { %v999_v59 = vpop.f32.mrf.mxu2 }
 0x166   : > { %v1054_v6 = vadd.f32 %v999_v59, %v717_v24  ;;  %v719_v7 = vpop.f32.mrf.mxu1 }
 0x167   : > { %v1141_v39 = vpop.f32.mrf.mxu3  ;;  %v720_v62 = vadd.f32 %v719_v7, %v2910_v58 }
 0x168   : > { %v1196_v33 = vadd.f32 %v1141_v39, %v1054_v6 }
 0x169   : > { %2200 = vmatmul.msk.bf16.gmra.mxu1 %vm467_vm1, %v2834_v48 }
 0x16a   : > { %2228 = vmatmul.msk.bf16.gmra.mxu2 %vm467_vm1, %v2732_v32  ;;  %v3231_v52 = vadd.f32 %v1293_v8, %v1196_v33 }
 0x16c   : > { %v1296_v25 = vpop.f32.mrf.mxu0  ;;  %2256 = vmatmul.msk.bf16.gmra.mxu3 %vm467_vm1, %v2787_v42  ;;  %v2379_v42 = vld [vmem:[%s2440_s26 + $0x30] sm:$0xff]  }
 0x16d   : > { %v1002_v55 = vpop.f32.mrf.mxu2 }
 0x16e   : > { %v1055_v36 = vadd.f32 %v1002_v55, %v720_v62  ;;  %v721_v41 = vpop.f32.mrf.mxu1  ;;  %v3658_v62 = vld [vmem:[#allocation12_spill] sm:$0xff] }
 0x16f   : > { %2284 = vmatmul.msk.bf16.gmra.mxu0 %vm467_vm1, %v2846_v31  ;;  %v1144_v9 = vpop.f32.mrf.mxu3  ;;  %v722_v32 = vadd.f32 %v721_v41, %v2928_v0 }
 0x170   : > { %v1197_v48 = vadd.f32 %v1144_v9, %v1055_v36  ;;  %v3659_v36 = vld [vmem:[#allocation20_spill] sm:$0xff] }
 0x172   : > { %v3238_v51 = vadd.f32 %v1296_v25, %v1197_v48 }
 0x174   : > { %v1298_v47 = vpop.f32.mrf.mxu0 }
 0x175   : > { %v1004_v4 = vpop.f32.mrf.mxu2 }
 0x176   : > { %v1056_v58 = vadd.f32 %v1004_v4, %v722_v32  ;;  %v724_v5 = vpop.f32.mrf.mxu1 }
 0x177   : > { %v1146_v24 = vpop.f32.mrf.mxu3  ;;  %v725_v6 = vadd.f32 %v724_v5, %v2947_v45  ;;  %v3661_v5 = vld [vmem:[#allocation23_spill] sm:$0xff] }
 0x178   : > { %v1198_v8 = vadd.f32 %v1146_v24, %v1056_v58 }
 0x179   : > { %2201 = vmatmul.msk.bf16.gmra.mxu1 %vm467_vm1, %v2846_v31 }
 0x17a   : > { %2229 = vmatmul.msk.bf16.gmra.mxu2 %vm467_vm1, %v2379_v42  ;;  %v3245_v59 = vadd.f32 %v1298_v47, %v1198_v8  ;;  %v3662_v42 = vld [vmem:[#allocation4_spill] sm:$0xff] }
 0x17c   : > { %v1301_v7 = vpop.f32.mrf.mxu0  ;;  %2257 = vmatmul.msk.bf16.gmra.mxu3 %vm467_vm1, %v2497_v35  ;;  %v3660_v35 = vld [vmem:[#allocation2_spill] sm:$0xff] }
 0x17d   : > { %v1007_v0 = vpop.f32.mrf.mxu2 }
 0x17e   : > { %v1057_v39 = vadd.f32 %v1007_v0, %v725_v6  ;;  %v726_v33 = vpop.f32.mrf.mxu1 }
 0x17f   : > { %2285 = vmatmul.msk.bf16.gmra.mxu0 %vm467_vm1, %v3658_v62  ;;  %v1149_v25 = vpop.f32.mrf.mxu3  ;;  %v727_v41 = vadd.f32 %v726_v33, %v3659_v36 }
 0x180   : > { %v1199_v55 = vadd.f32 %v1149_v25, %v1057_v39  ;;  %v3663_v39 = vld [vmem:[#allocation14_spill] sm:$0xff] }
 0x182   : > { %v3252_v31 = vadd.f32 %v1301_v7, %v1199_v55  ;;  %v3664_v55 = vld [vmem:[#allocation25_spill] sm:$0xff] }
 0x184   : > { %v1303_v9 = vpop.f32.mrf.mxu0 }
 0x185   : > { %v1009_v48 = vpop.f32.mrf.mxu2 }
 0x186   : > { %v1058_v32 = vadd.f32 %v1009_v48, %v727_v41  ;;  %v729_v45 = vpop.f32.mrf.mxu1 }
 0x187   : > { %v1151_v47 = vpop.f32.mrf.mxu3  ;;  %v730_v24 = vadd.f32 %v729_v45, %v3661_v5  ;;  %v3665_v5 = vld [vmem:[#allocation13_spill] sm:$0xff] }
 0x188   : > { %v1200_v4 = vadd.f32 %v1151_v47, %v1058_v32 }
 0x189   : > { %2202 = vmatmul.msk.bf16.gmra.mxu1 %vm467_vm1, %v3658_v62 }
 0x18a   : > { %2230 = vmatmul.msk.bf16.gmra.mxu2 %vm467_vm1, %v3660_v35  ;;  %v3259_v58 = vadd.f32 %v1303_v9, %v1200_v4  ;;  %v2380_v4 = vld [vmem:[%s2440_s26 + $0x48] sm:$0xff]  }
 0x18c   : > { %v1306_v8 = vpop.f32.mrf.mxu0  ;;  %2258 = vmatmul.msk.bf16.gmra.mxu3 %vm467_vm1, %v3662_v42  ;;  %v3666_v42 = vld [vmem:[#allocation8_spill] sm:$0xff] }
 0x18d   : > { %v1012_v6 = vpop.f32.mrf.mxu2 }
 0x18e   : > { %v1059_v7 = vadd.f32 %v1012_v6, %v730_v24  ;;  %v731_v0 = vpop.f32.mrf.mxu1 }
 0x18f   : > { %2286 = vmatmul.msk.bf16.gmra.mxu0 %vm467_vm1, %v3663_v39  ;;  %v1154_v33 = vpop.f32.mrf.mxu3  ;;  %v732_v36 = vadd.f32 %v731_v0, %v3664_v55 }
 0x190   : > { %v1201_v62 = vadd.f32 %v1154_v33, %v1059_v7  ;;  %v3667_v33 = vld [vmem:[#allocation17_spill] sm:$0xff] }
 0x192   : > { %v3266_v25 = vadd.f32 %v1306_v8, %v1201_v62 }
 0x194   : > { %v1308_v41 = vpop.f32.mrf.mxu0 }
 0x195   : > { %v1014_v9 = vpop.f32.mrf.mxu2 }
 0x196   : > { %v1060_v48 = vadd.f32 %v1014_v9, %v732_v36  ;;  %v734_v32 = vpop.f32.mrf.mxu1  ;;  %v3668_v36 = vld [vmem:[#allocation15_spill] sm:$0xff] }
 0x197   : > { %v1156_v45 = vpop.f32.mrf.mxu3  ;;  %v735_v24 = vadd.f32 %v734_v32, %v3665_v5  ;;  %v3669_v5 = vld [vmem:[#allocation9_spill] sm:$0xff] }
 0x198   : > { %v1202_v47 = vadd.f32 %v1156_v45, %v1060_v48 }
 0x199   : > { %2203 = vmatmul.msk.bf16.gmra.mxu1 %vm467_vm1, %v3663_v39 }
 0x19a   : > { %2231 = vmatmul.msk.bf16.gmra.mxu2 %vm467_vm1, %v2380_v4  ;;  %v3273_v35 = vadd.f32 %v1308_v41, %v1202_v47 }
 0x19c   : > { %v1311_v8 = vpop.f32.mrf.mxu0  ;;  %2259 = vmatmul.msk.bf16.gmra.mxu3 %vm467_vm1, %v3666_v42  ;;  %v3670_v42 = vld [vmem:[#allocation16_spill] sm:$0xff] }
 0x19d   : > { %v1017_v6 = vpop.f32.mrf.mxu2 }
 0x19e   : > { %v1061_v7 = vadd.f32 %v1017_v6, %v735_v24  ;;  %v736_v0 = vpop.f32.mrf.mxu1 }
 0x19f   : > { %2287 = vmatmul.msk.bf16.gmra.mxu0 %vm467_vm1, %v3667_v33  ;;  %v1159_v62 = vpop.f32.mrf.mxu3  ;;  %v737_v9 = vadd.f32 %v736_v0, %v3668_v36  ;;  %v3672_v36 = vld [vmem:[#allocation21_spill] sm:$0xff] }
 0x1a0   : > { %v1203_v55 = vadd.f32 %v1159_v62, %v1061_v7  ;;  %v3671_v7 = vld [vmem:[#allocation11_spill] sm:$0xff] }
 0x1a2   : > { %v3280_v39 = vadd.f32 %v1311_v8, %v1203_v55 }
 0x1a4   : > { %v1313_v41 = vpop.f32.mrf.mxu0 }
 0x1a5   : > { %v1019_v48 = vpop.f32.mrf.mxu2 }
 0x1a6   : > { %v1062_v45 = vadd.f32 %v1019_v48, %v737_v9  ;;  %v739_v32 = vpop.f32.mrf.mxu1 }
 0x1a7   : > { %v1161_v47 = vpop.f32.mrf.mxu3  ;;  %v740_v6 = vadd.f32 %v739_v32, %v3670_v42 }
 0x1a8   : > { %v1204_v4 = vadd.f32 %v1161_v47, %v1062_v45  ;;  %v3673_v45 = vld [vmem:[#allocation18_spill] sm:$0xff] }
 0x1a9   : > { %2204 = vmatmul.msk.bf16.gmra.mxu1 %vm467_vm1, %v3667_v33 }
 0x1aa   : > { %2232 = vmatmul.msk.bf16.gmra.mxu2 %vm467_vm1, %v3669_v5  ;;  %v3287_v24 = vadd.f32 %v1313_v41, %v1204_v4 }
 0x1ac   : > { %v1316_v8 = vpop.f32.mrf.mxu0  ;;  %2260 = vmatmul.msk.bf16.gmra.mxu3 %vm467_vm1, %v3671_v7 }
 0x1ad   : > { %v1022_v0 = vpop.f32.mrf.mxu2 }
 0x1ae   : > { %v1063_v62 = vadd.f32 %v1022_v0, %v740_v6  ;;  %v741_v55 = vpop.f32.mrf.mxu1  ;;  %v2381_v6 = vld [vmem:[%s2440_s26 + $0x60] sm:$0xff]   ;;  %v3674_v0 = vld [vmem:[#allocation19_spill] sm:$0xff] }
 0x1af   : > { %2288 = vmatmul.msk.bf16.gmra.mxu0 %vm467_vm1, %v3672_v36  ;;  %v1164_v9 = vpop.f32.mrf.mxu3  ;;  %v742_v41 = vadd.f32 %v741_v55, %v3673_v45 }
 0x1b0   : > { %v1205_v33 = vadd.f32 %v1164_v9, %v1063_v62  ;;  %v3675_v9 = vld [vmem:[#allocation3_spill] sm:$0xff] }
 0x1b2   : > { %v3294_v48 = vadd.f32 %v1316_v8, %v1205_v33 }
 0x1b4   : > { %v1318_v47 = vpop.f32.mrf.mxu0 }
 0x1b5   : > { %v1024_v4 = vpop.f32.mrf.mxu2 }
 0x1b6   : > { %v1064_v32 = vadd.f32 %v1024_v4, %v742_v41  ;;  %v744_v5 = vpop.f32.mrf.mxu1  ;;  %v3676_v41 = vld [vmem:[#allocation26_spill] sm:$0xff] }
 0x1b7   : > { %v1166_v42 = vpop.f32.mrf.mxu3  ;;  %v745_v62 = vadd.f32 %v744_v5, %v3674_v0 }
 0x1b8   : > { %v1206_v40 = vadd.f32 %v1166_v42, %v1064_v32  ;;  %v3677_v42 = vld [vmem:[#allocation22_spill] sm:$0xff] }
 0x1b9   : > { %2205 = vmatmul.msk.bf16.gmra.mxu1 %vm467_vm1, %v3672_v36 }
 0x1ba   : > { %2233 = vmatmul.msk.bf16.gmra.mxu2 %vm467_vm1, %v2381_v6  ;;  %v3301_v7 = vadd.f32 %v1318_v47, %v1206_v40 }
 0x1bc   : > { %v1321_v8 = vpop.f32.mrf.mxu0  ;;  %2261 = vmatmul.msk.bf16.gmra.mxu3 %vm467_vm1, %v3675_v9  ;;  %v3678_v9 = vld [vmem:[#allocation24_spill] sm:$0xff] }
 0x1bd   : > { %v1027_v55 = vpop.f32.mrf.mxu2 }
 0x1be   : > { %v1065_v33 = vadd.f32 %v1027_v55, %v745_v62  ;;  %v746_v45 = vpop.f32.mrf.mxu1 }
 0x1bf   : > { %2289 = vmatmul.msk.bf16.gmra.mxu0 %vm467_vm1, %v3676_v41  ;;  %v1169_v4 = vpop.f32.mrf.mxu3  ;;  %v747_v6 = vadd.f32 %v746_v45, %v3677_v42 }
 0x1c0   : > { %v1207_v32 = vadd.f32 %v1169_v4, %v1065_v33  ;;  %v3679_v33 = vld [vmem:[#allocation5_spill] sm:$0xff] }
 0x1c2   : > { %v3308_v36 = vadd.f32 %v1321_v8, %v1207_v32 }
 0x1c4   : > { %v1323_v40 = vpop.f32.mrf.mxu0 }
 0x1c5   : > { %v1029_v47 = vpop.f32.mrf.mxu2 }
 0x1c6   : > { %v1066_v20 = vadd.f32 %v1029_v47, %v747_v6  ;;  %v749_v5 = vpop.f32.mrf.mxu1 }
 0x1c7   : > { %v1171_v0 = vpop.f32.mrf.mxu3  ;;  %v750_v55 = vadd.f32 %v749_v5, %v3678_v9 }
 0x1c8   : > { %v1208_v21 = vadd.f32 %v1171_v0, %v1066_v20 }
 0x1c9   : > { %2206 = vmatmul.msk.bf16.gmra.mxu1 %vm467_vm1, %v3676_v41 }
 0x1ca   : > { %2234 = vmatmul.msk.bf16.gmra.mxu2 %vm467_vm1, %v2512_v44  ;;  %v3315_v62 = vadd.f32 %v1323_v40, %v1208_v21  ;;  %v3680_v44 = vld [vmem:[#allocation27_spill] sm:$0xff] }
 0x1cc   : > { %v1326_v8 = vpop.f32.mrf.mxu0  ;;  %2262 = vmatmul.msk.bf16.gmra.mxu3 %vm467_vm1, %v3679_v33 }
 0x1cd   : > { %v1032_v45 = vpop.f32.mrf.mxu2 }
 0x1ce   : > { %v1067_v4 = vadd.f32 %v1032_v45, %v750_v55  ;;  %v751_v32 = vpop.f32.mrf.mxu1  ;;  %v2382_v55 = vld [vmem:[%s2440_s26 + $0x78] sm:$0xff]  }
 0x1cf   : > { %2290 = vmatmul.msk.bf16.gmra.mxu0 %vm467_vm1, %v3034_v38  ;;  %v1174_v20 = vpop.f32.mrf.mxu3  ;;  %v752_v21 = vadd.f32 %v751_v32, %v3680_v44 }
 0x1d0   : > { %v1209_v41 = vadd.f32 %v1174_v20, %v1067_v4 }
 0x1d2   : > { %v3322_v42 = vadd.f32 %v1326_v8, %v1209_v41 }
 0x1d4   : > { %v1328_v6 = vpop.f32.mrf.mxu0 }
 0x1d5   : > { %v1034_v40 = vpop.f32.mrf.mxu2 }
 0x1d6   : > { %v1068_v47 = vadd.f32 %v1034_v40, %v752_v21  ;;  %v1400_v5 = vpop.f32.mrf.mxu1 }
 0x1d7   : > { %v1176_v0 = vpop.f32.mrf.mxu3  ;;  %v1480_v8 = vadd.f32 %v1400_v5, %v3030_v61 }
 0x1d8   : > { %v1210_v9 = vadd.f32 %v1176_v0, %v1068_v47 }
 0x1d9   : > { %2207 = vmatmul.msk.bf16.gmra.mxu1 %vm467_vm1, %v3034_v38 }
 0x1da   : > { %2235 = vmatmul.msk.bf16.gmra.mxu2 %vm467_vm1, %v2382_v55  ;;  %v3329_v33 = vadd.f32 %v1328_v6, %v1210_v9 }
 0x1dc   : > { %v1843_v45 = vpop.f32.mrf.mxu0  ;;  %2263 = vmatmul.msk.bf16.gmra.mxu3 %vm467_vm1, %v2687_v27 }
 0x1dd   : > { %v1542_v4 = vpop.f32.mrf.mxu2 }
 0x1de   : > { %v1622_v32 = vadd.f32 %v1542_v4, %v1480_v8  ;;  %v1402_v20 = vpop.f32.mrf.mxu1 }
 0x1df   : > { %2291 = vmatmul.msk.bf16.gmra.mxu0 %vm467_vm1, %v3058_v34  ;;  %v1694_v41 = vpop.f32.mrf.mxu3  ;;  %v1481_v27 = vadd.f32 %v1402_v20, %v3041_v49 }
 0x1e0   : > { %v1774_v38 = vadd.f32 %v1694_v41, %v1622_v32 }
 0x1e2   : > { %v1923_v61 = vadd.f32 %v1843_v45, %v1774_v38 }
 0x1e4   : > { %1956 = vst.msk [vmem:[%s3340_s29] sm:$0xff] %vm1955_vm3, %v1923_v61  ;;  %v1845_v44 = vpop.f32.mrf.mxu0 }
 0x1e5   : > { %v1544_v21 = vpop.f32.mrf.mxu2 }
 0x1e6   : > { %v1623_v6 = vadd.f32 %v1544_v21, %v1481_v27  ;;  %v1405_v40 = vpop.f32.mrf.mxu1 }
 0x1e7   : > { %v1696_v47 = vpop.f32.mrf.mxu3  ;;  %v1482_v9 = vadd.f32 %v1405_v40, %v3054_v10 }
 0x1e8   : > { %v1775_v5 = vadd.f32 %v1696_v47, %v1623_v6 }
 0x1e9   : > { %2208 = vmatmul.msk.bf16.gmra.mxu1 %vm467_vm1, %v3058_v34 }
 0x1ea   : > { %v1924_v0 = vadd.f32 %v1845_v44, %v1775_v5  ;;  %2236 = vmatmul.msk.bf16.gmra.mxu2 %vm467_vm1, %v2700_v16  ;;  %v2383_v44 = vld [vmem:[%s2440_s26 + $0x90] sm:$0xff]  }
 0x1ec   : > { %1957 = vst.msk [vmem:[%s3340_s29 + $0x8] sm:$0xff] %vm1955_vm3, %v1924_v0  ;;  %v1848_v55 = vpop.f32.mrf.mxu0  ;;  %2264 = vmatmul.msk.bf16.gmra.mxu3 %vm467_vm1, %v2777_v17 }
 0x1ed   : > { %v1547_v49 = vpop.f32.mrf.mxu2 }
 0x1ee   : > { %v1624_v8 = vadd.f32 %v1547_v49, %v1482_v9  ;;  %v1407_v45 = vpop.f32.mrf.mxu1 }
 0x1ef   : > { %2292 = vmatmul.msk.bf16.gmra.mxu0 %vm467_vm1, %v3082_v46  ;;  %v1699_v34 = vpop.f32.mrf.mxu3  ;;  %v1483_v16 = vadd.f32 %v1407_v45, %v3065_v28 }
 0x1f0   : > { %v1776_v4 = vadd.f32 %v1699_v34, %v1624_v8 }
 0x1f2   : > { %v1925_v32 = vadd.f32 %v1848_v55, %v1776_v4 }
 0x1f4   : > { %1958 = vst.msk [vmem:[%s3340_s29 + $0x10] sm:$0xff] %vm1955_vm3, %v1925_v32  ;;  %v1850_v10 = vpop.f32.mrf.mxu0 }
 0x1f5   : > { %v1549_v20 = vpop.f32.mrf.mxu2 }
 0x1f6   : > { %v1625_v41 = vadd.f32 %v1549_v20, %v1483_v16  ;;  %v1410_v38 = vpop.f32.mrf.mxu1 }
 0x1f7   : > { %v1701_v17 = vpop.f32.mrf.mxu3  ;;  %v1484_v21 = vadd.f32 %v1410_v38, %v3078_v54 }
 0x1f8   : > { %v1777_v61 = vadd.f32 %v1701_v17, %v1625_v41 }
 0x1f9   : > { %2209 = vmatmul.msk.bf16.gmra.mxu1 %vm467_vm1, %v3082_v46 }
 0x1fa   : > { %v1926_v27 = vadd.f32 %v1850_v10, %v1777_v61  ;;  %2237 = vmatmul.msk.bf16.gmra.mxu2 %vm467_vm1, %v2383_v44 }
 0x1fc   : > { %1959 = vst.msk [vmem:[%s3340_s29 + $0x18] sm:$0xff] %vm1955_vm3, %v1926_v27  ;;  %v1853_v6 = vpop.f32.mrf.mxu0  ;;  %2265 = vmatmul.msk.bf16.gmra.mxu3 %vm467_vm1, %v2526_v50  ;;  %v3681_v27 = vunpack.c.l.bf16 %v3166_v63 }
 0x1fd   : > { %v1552_v28 = vpop.f32.mrf.mxu2 }
 0x1fe   : > { %v1626_v40 = vadd.f32 %v1552_v28, %v1484_v21  ;;  %v1412_v47 = vpop.f32.mrf.mxu1  ;;  %v1363_v44 = vrot.slane %v3681_v27, 2  ;;  %v3682_v21 = vunpack.c.h.bf16 %v3166_v63 }
 0x1ff   : > { %2293 = vmatmul.msk.bf16.gmra.mxu0 %vm467_vm1, %v3106_v26  ;;  %v1704_v46 = vpop.f32.mrf.mxu3  ;;  %v1485_v9 = vadd.f32 %v1412_v47, %v3089_v57  ;;  %v2384_v47 = vld [vmem:[%s2440_s26 + $0xa8] sm:$0xff]  }
 0x200   : > { %v1778_v5 = vadd.f32 %v1704_v46, %v1626_v40 }
 0x202   : > { %v1927_v0 = vadd.f32 %v1853_v6, %v1778_v5  ;;  %v1364_v6 = vrot.slane %v3682_v21, 2 }
 0x204   : > { %1960 = vst.msk [vmem:[%s3340_s29 + $0x20] sm:$0xff] %vm1955_vm3, %v1927_v0  ;;  %v1855_v55 = vpop.f32.mrf.mxu0 }
 0x205   : > { %v1554_v54 = vpop.f32.mrf.mxu2 }
 0x206   : > { %v1627_v49 = vadd.f32 %v1554_v54, %v1485_v9  ;;  %v1415_v8 = vpop.f32.mrf.mxu1  ;;  %v1365_v9 = vsel %vm754_vm2, %v1363_v44, %v1364_v6 }
 0x207   : > { %v1706_v45 = vpop.f32.mrf.mxu3  ;;  %v1486_v4 = vadd.f32 %v1415_v8, %v3102_v43 }
 0x208   : > { %v1779_v50 = vadd.f32 %v1706_v45, %v1627_v49 }
 0x209   : > { %2210 = vmatmul.msk.bf16.gmra.mxu1 %vm467_vm1, %v3106_v26 }
 0x20a   : > { %v1928_v34 = vadd.f32 %v1855_v55, %v1779_v50  ;;  %2238 = vmatmul.msk.bf16.gmra.mxu2 %vm467_vm1, %v2536_v56  ;;  %v3684_v50 = vld [vmem:[#allocation28_spill] sm:$0xff] }
 0x20c   : > { %1961 = vst.msk [vmem:[%s3340_s29 + $0x28] sm:$0xff] %vm1955_vm3, %v1928_v34  ;;  %v1858_v32 = vpop.f32.mrf.mxu0  ;;  %2266 = vmatmul.msk.bf16.gmra.mxu3 %vm467_vm1, %v2611_v22 }
 0x20d   : > { %v1557_v57 = vpop.f32.mrf.mxu2 }
 0x20e   : > { %v1628_v16 = vadd.f32 %v1557_v57, %v1486_v4  ;;  %v1417_v10 = vpop.f32.mrf.mxu1 }
 0x20f   : > { %2294 = vmatmul.msk.bf16.gmra.mxu0 %vm467_vm1, %v3130_v29  ;;  %v1709_v26 = vpop.f32.mrf.mxu3  ;;  %v1487_v56 = vadd.f32 %v1417_v10, %v3112_v15  ;;  %v3683_v15 = vunpack.c.l.bf16 %v3169_v23 }
 0x210   : > { %v1780_v20 = vadd.f32 %v1709_v26, %v1628_v16 }
 0x211   : > { %v1366_v46 = vrot.slane %v3683_v15, 2 }
 0x212   : > { %v1929_v41 = vadd.f32 %v1858_v32, %v1780_v20 }
 0x214   : > { %1962 = vst.msk [vmem:[%s3340_s29 + $0x30] sm:$0xff] %vm1955_vm3, %v1929_v41  ;;  %v1860_v43 = vpop.f32.mrf.mxu0 }
 0x215   : > { %v1559_v38 = vpop.f32.mrf.mxu2 }
 0x216   : > { %v1629_v17 = vadd.f32 %v1559_v38, %v1487_v56  ;;  %v1420_v61 = vpop.f32.mrf.mxu1 }
 0x217   : > { %v1711_v22 = vpop.f32.mrf.mxu3  ;;  %v1488_v5 = vadd.f32 %v1420_v61, %v3125_v13 }
 0x218   : > { %v1781_v28 = vadd.f32 %v1711_v22, %v1629_v17 }
 0x219   : > { %2211 = vmatmul.msk.bf16.gmra.mxu1 %vm467_vm1, %v3130_v29  ;;  %v1367_v29 = vsel %vm754_vm2, %v1364_v6, %v1366_v46 }
 0x21a   : > { %v1930_v40 = vadd.f32 %v1860_v43, %v1781_v28  ;;  %2239 = vmatmul.msk.bf16.gmra.mxu2 %vm467_vm1, %v2384_v47  ;;  %v3404_v54 = vpack.c.bf16 %v1367_v29, %v1365_v9  ;;  %v196_v28 = vld [vmem:[%s2440_s26 + $0xcc] sm:$0xff]   ;;  %v3685_v47 = vld [vmem:[#allocation6_spill] sm:$0xff] }
 0x21c   : > { %1963 = vst.msk [vmem:[%s3340_s29 + $0x38] sm:$0xff] %vm1955_vm3, %v1930_v40  ;;  %v1863_v0 = vpop.f32.mrf.mxu0  ;;  %2267 = vmatmul.msk.bf16.gmra.mxu3 %vm467_vm1, %v3649_v53  ;;  %v198_v40 = vld [vmem:[%s2440_s26 + $0xd4] sm:$0x1] }
 0x21d   : > { %v1562_v55 = vpop.f32.mrf.mxu2  ;;  %v252_v9 = vunpack.c.l.bf16 %v198_v40 }
 0x21e   : > { %v1630_v49 = vadd.f32 %v1562_v55, %v1488_v5  ;;  %v1422_v8 = vpop.f32.mrf.mxu1  ;;  %v250_v5 = vunpack.c.l.bf16 %v196_v28 }
 0x21f   : > { %2295 = vmatmul.msk.bf16.gmra.mxu0 %vm467_vm1, %v3154_v60  ;;  %v1714_v23 = vpop.f32.mrf.mxu3  ;;  %v1489_v53 = vadd.f32 %v1422_v8, %v3684_v50 }
 0x220   : > { %v1782_v45 = vadd.f32 %v1714_v23, %v1630_v49  ;;  %v1657_v49 = vrot.slane %v250_v5, 1  ;;  %v1660_v23 = vrot.slane %v252_v9, 1  ;;  %v1806_v50 = vrot.slane %v250_v5, 2 }
 0x222   : > { %v1931_v13 = vadd.f32 %v1863_v0, %v1782_v45  ;;  %v251_v0 = vunpack.c.h.bf16 %v196_v28 }
 0x224   : > { %1964 = vst.msk [vmem:[%s3340_s29 + $0x40] sm:$0xff] %vm1955_vm3, %v1931_v13  ;;  %v1865_v34 = vpop.f32.mrf.mxu0  ;;  %v1658_v8 = vrot.slane %v251_v0, 1 }
 0x225   : > { %v1564_v4 = vpop.f32.mrf.mxu2 }
 0x226   : > { %v1631_v32 = vadd.f32 %v1564_v4, %v1489_v53  ;;  %v1425_v57 = vpop.f32.mrf.mxu1  ;;  %v1807_v53 = vrot.slane %v251_v0, 2 }
 0x227   : > { %v1716_v16 = vpop.f32.mrf.mxu3  ;;  %v1490_v20 = vadd.f32 %v1425_v57, %v3149_v30  ;;  %v1661_v57 = vsel %vm321_vm0, %v1658_v8, %v1660_v23 }
 0x228   : > { %v1783_v10 = vadd.f32 %v1716_v16, %v1631_v32  ;;  %v1659_v32 = vsel %vm321_vm0, %v1657_v49, %v1658_v8 }
 0x229   : > { %2212 = vmatmul.msk.bf16.gmra.mxu1 %vm467_vm1, %v3154_v60 }
 0x22a   : > { %v1932_v26 = vadd.f32 %v1865_v34, %v1783_v10  ;;  %2240 = vmatmul.msk.bf16.gmra.mxu2 %vm467_vm1, %v2713_v37  ;;  %v1809_v34 = vrot.slane %v252_v9, 2 }
 0x22c   : > { %1965 = vst.msk [vmem:[%s3340_s29 + $0x48] sm:$0xff] %vm1955_vm3, %v1932_v26  ;;  %v1868_v41 = vpop.f32.mrf.mxu0  ;;  %2268 = vmatmul.msk.bf16.gmra.mxu3 %vm467_vm1, %v2779_v3 }
 0x22d   : > { %v1567_v56 = vpop.f32.mrf.mxu2 }
 0x22e   : > { %v1632_v43 = vadd.f32 %v1567_v56, %v1490_v20  ;;  %v1427_v38 = vpop.f32.mrf.mxu1  ;;  %v1808_v56 = vsel %vm754_vm2, %v1806_v50, %v1807_v53 }
 0x22f   : > { %2296 = vmatmul.msk.bf16.gmra.mxu0 %vm467_vm1, %v3193_v14  ;;  %v1719_v60 = vpop.f32.mrf.mxu3  ;;  %v1491_v30 = vadd.f32 %v1427_v38, %v3160_v1 }
 0x230   : > { %v1784_v17 = vadd.f32 %v1719_v60, %v1632_v43  ;;  %v1810_v43 = vsel %vm754_vm2, %v1807_v53, %v1809_v34 }
 0x231   : > { %v1813_v38 = vpack.c.bf16 %v1810_v43, %v1808_v56 }
 0x232   : > { %v1933_v37 = vadd.f32 %v1868_v41, %v1784_v17  ;;  %v1664_v41 = vpack.c.bf16 %v1661_v57, %v1659_v32 }
 0x234   : > { %1966 = vst.msk [vmem:[%s3340_s29 + $0x50] sm:$0xff] %vm1955_vm3, %v1933_v37  ;;  %v1870_v61 = vpop.f32.mrf.mxu0 }
 0x235   : > { %v1569_v22 = vpop.f32.mrf.mxu2 }
 0x236   : > { %v1633_v27 = vadd.f32 %v1569_v22, %v1491_v30  ;;  %v1430_v3 = vpop.f32.mrf.mxu1 }
 0x237   : > { %v1721_v44 = vpop.f32.mrf.mxu3  ;;  %v1492_v15 = vadd.f32 %v1430_v3, %v3685_v47 }
 0x238   : > { %v1785_v21 = vadd.f32 %v1721_v44, %v1633_v27 }
 0x239   : > { %2213 = vmatmul.msk.bf16.gmra.mxu1 %vm467_vm1, %v3193_v14 }
 0x23a   : > { %v1934_v6 = vadd.f32 %v1870_v61, %v1785_v21  ;;  %2241 = vmatmul.msk.bf16.gmra.mxu2 %vm467_vm1, %v3166_v63 }
 0x23c   : > { %1967 = vst.msk [vmem:[%s3340_s29 + $0x58] sm:$0xff] %vm1955_vm3, %v1934_v6  ;;  %v1873_v1 = vpop.f32.mrf.mxu0  ;;  %2269 = vmatmul.msk.bf16.gmra.mxu3 %vm467_vm1, %v3203_v12 }
 0x23d   : > { %v1572_v46 = vpop.f32.mrf.mxu2 }
 0x23e   : > { %v1634_v14 = vadd.f32 %v1572_v46, %v1492_v15  ;;  %v1432_v29 = vpop.f32.mrf.mxu1 }
 0x23f   : > { %2297 = vmatmul.msk.bf16.gmra.mxu0 %vm467_vm1, %v3404_v54  ;;  %v1724_v63 = vpop.f32.mrf.mxu3  ;;  %v1493_v13 = vadd.f32 %v1432_v29, %v3201_v2 }
 0x240   : > { %v1786_v55 = vadd.f32 %v1724_v63, %v1634_v14 }
 0x242   : > { %v1935_v45 = vadd.f32 %v1873_v1, %v1786_v55 }
 0x244   : > { %1968 = vst.msk [vmem:[%s3340_s29 + $0x60] sm:$0xff] %vm1955_vm3, %v1935_v45  ;;  %v1875_v12 = vpop.f32.mrf.mxu0 }
 0x245   : > { %v1574_v4 = vpop.f32.mrf.mxu2 }
 0x246   : > { %v1635_v16 = vadd.f32 %v1574_v4, %v1493_v13  ;;  %v1435_v10 = vpop.f32.mrf.mxu1 }
 0x247   : > { %v1726_v26 = vpop.f32.mrf.mxu3  ;;  %v1494_v60 = vadd.f32 %v1435_v10, %v3210_v18 }
 0x248   : > { %v1787_v20 = vadd.f32 %v1726_v26, %v1635_v16 }
 0x249   : > { %2214 = vmatmul.msk.bf16.gmra.mxu1 %vm467_vm1, %v3404_v54 }
 0x24a   : > { %v1936_v2 = vadd.f32 %v1875_v12, %v1787_v20  ;;  %2242 = vmatmul.msk.bf16.gmra.mxu2 %vm467_vm1, %v196_v28 }
 0x24c   : > { %1969 = vst.msk [vmem:[%s3340_s29 + $0x68] sm:$0xff] %vm1955_vm3, %v1936_v2  ;;  %v1878_v17 = vpop.f32.mrf.mxu0  ;;  %2270 = vmatmul.msk.bf16.gmra.mxu3 %vm467_vm1, %v1664_v41 }
 0x24d   : > { %v1577_v37 = vpop.f32.mrf.mxu2 }
 0x24e   : > { %v1636_v30 = vadd.f32 %v1577_v37, %v1494_v60  ;;  %v1437_v61 = vpop.f32.mrf.mxu1 }
 0x24f   : > { %2298 = vmatmul.msk.bf16.gmra.mxu0 %vm467_vm1, %v1813_v38  ;;  %v1729_v22 = vpop.f32.mrf.mxu3  ;;  %v1495_v3 = vadd.f32 %v1437_v61, %v3217_v19 }
 0x250   : > { %v1788_v27 = vadd.f32 %v1729_v22, %v1636_v30 }
 0x252   : > { %v1937_v54 = vadd.f32 %v1878_v17, %v1788_v27 }
 0x254   : > { %1970 = vst.msk [vmem:[%s3340_s29 + $0x70] sm:$0xff] %vm1955_vm3, %v1937_v54  ;;  %v1880_v44 = vpop.f32.mrf.mxu0 }
 0x255   : > { %v1579_v21 = vpop.f32.mrf.mxu2 }
 0x256   : > { %v1637_v18 = vadd.f32 %v1579_v21, %v1495_v3  ;;  %v1440_v6 = vpop.f32.mrf.mxu1 }
 0x257   : > { %v1731_v28 = vpop.f32.mrf.mxu3  ;;  %v1496_v15 = vadd.f32 %v1440_v6, %v3224_v11 }
 0x258   : > { %v1789_v40 = vadd.f32 %v1731_v28, %v1637_v18 }
 0x25a   : > { %v1938_v47 = vadd.f32 %v1880_v44, %v1789_v40 }
 0x25c   : > { %1971 = vst.msk [vmem:[%s3340_s29 + $0x78] sm:$0xff] %vm1955_vm3, %v1938_v47  ;;  %v1883_v1 = vpop.f32.mrf.mxu0 }
 0x25d   : > { %v1582_v46 = vpop.f32.mrf.mxu2 }
 0x25e   : > { %v1638_v5 = vadd.f32 %v1582_v46, %v1496_v15  ;;  %v1442_v0 = vpop.f32.mrf.mxu1 }
 0x25f   : > { %v1734_v9 = vpop.f32.mrf.mxu3  ;;  %v1497_v29 = vadd.f32 %v1442_v0, %v3231_v52 }
 0x260   : > { %v1790_v14 = vadd.f32 %v1734_v9, %v1638_v5 }
 0x262   : > { %v1939_v19 = vadd.f32 %v1883_v1, %v1790_v14 }
 0x264   : > { %1972 = vst.msk [vmem:[%s3340_s29 + $0x80] sm:$0xff] %vm1955_vm3, %v1939_v19  ;;  %v1885_v63 = vpop.f32.mrf.mxu0 }
 0x265   : > { %v1584_v55 = vpop.f32.mrf.mxu2 }
 0x266   : > { %v1639_v49 = vadd.f32 %v1584_v55, %v1497_v29  ;;  %v1445_v8 = vpop.f32.mrf.mxu1 }
 0x267   : > { %v1736_v23 = vpop.f32.mrf.mxu3  ;;  %v1498_v13 = vadd.f32 %v1445_v8, %v3238_v51 }
 0x268   : > { %v1791_v45 = vadd.f32 %v1736_v23, %v1639_v49 }
 0x26a   : > { %v1940_v11 = vadd.f32 %v1885_v63, %v1791_v45 }
 0x26c   : > { %1973 = vst.msk [vmem:[%s3340_s29 + $0x88] sm:$0xff] %vm1955_vm3, %v1940_v11  ;;  %v1888_v12 = vpop.f32.mrf.mxu0 }
 0x26d   : > { %v1587_v50 = vpop.f32.mrf.mxu2 }
 0x26e   : > { %v1640_v53 = vadd.f32 %v1587_v50, %v1498_v13  ;;  %v1447_v34 = vpop.f32.mrf.mxu1 }
 0x26f   : > { %v1739_v4 = vpop.f32.mrf.mxu3  ;;  %v1499_v57 = vadd.f32 %v1447_v34, %v3245_v59 }
 0x270   : > { %v1792_v32 = vadd.f32 %v1739_v4, %v1640_v53 }
 0x272   : > { %v1941_v52 = vadd.f32 %v1888_v12, %v1792_v32 }
 0x274   : > { %1974 = vst.msk [vmem:[%s3340_s29 + $0x90] sm:$0xff] %vm1955_vm3, %v1941_v52  ;;  %v1890_v16 = vpop.f32.mrf.mxu0 }
 0x275   : > { %v1589_v10 = vpop.f32.mrf.mxu2 }
 0x276   : > { %v1641_v26 = vadd.f32 %v1589_v10, %v1499_v57  ;;  %v1450_v20 = vpop.f32.mrf.mxu1 }
 0x277   : > { %v1741_v41 = vpop.f32.mrf.mxu3  ;;  %v1500_v43 = vadd.f32 %v1450_v20, %v3252_v31 }
 0x278   : > { %v1793_v56 = vadd.f32 %v1741_v41, %v1641_v26 }
 0x27a   : > { %v1942_v51 = vadd.f32 %v1890_v16, %v1793_v56 }
 0x27c   : > { %1975 = vst.msk [vmem:[%s3340_s29 + $0x98] sm:$0xff] %vm1955_vm3, %v1942_v51  ;;  %v1893_v2 = vpop.f32.mrf.mxu0 }
 0x27d   : > { %v1592_v38 = vpop.f32.mrf.mxu2 }
 0x27e   : > { %v1642_v60 = vadd.f32 %v1592_v38, %v1500_v43  ;;  %v1452_v17 = vpop.f32.mrf.mxu1 }
 0x27f   : > { %v1744_v37 = vpop.f32.mrf.mxu3  ;;  %v1501_v61 = vadd.f32 %v1452_v17, %v3259_v58 }
 0x280   : > { %v1794_v30 = vadd.f32 %v1744_v37, %v1642_v60 }
 0x282   : > { %v1943_v59 = vadd.f32 %v1893_v2, %v1794_v30 }
 0x284   : > { %1976 = vst.msk [vmem:[%s3340_s29 + $0xa0] sm:$0xff] %vm1955_vm3, %v1943_v59  ;;  %v1895_v22 = vpop.f32.mrf.mxu0 }
 0x285   : > { %v1594_v27 = vpop.f32.mrf.mxu2 }
 0x286   : > { %v1643_v54 = vadd.f32 %v1594_v27, %v1501_v61  ;;  %v1455_v3 = vpop.f32.mrf.mxu1 }
 0x287   : > { %v1746_v44 = vpop.f32.mrf.mxu3  ;;  %v1502_v18 = vadd.f32 %v1455_v3, %v3266_v25 }
 0x288   : > { %v1795_v21 = vadd.f32 %v1746_v44, %v1643_v54 }
 0x28a   : > { %v1944_v31 = vadd.f32 %v1895_v22, %v1795_v21 }
 0x28c   : > { %1977 = vst.msk [vmem:[%s3340_s29 + $0xa8] sm:$0xff] %vm1955_vm3, %v1944_v31  ;;  %v1898_v6 = vpop.f32.mrf.mxu0 }
 0x28d   : > { %v1597_v28 = vpop.f32.mrf.mxu2 }
 0x28e   : > { %v1644_v40 = vadd.f32 %v1597_v28, %v1502_v18  ;;  %v1457_v47 = vpop.f32.mrf.mxu1 }
 0x28f   : > { %v1749_v15 = vpop.f32.mrf.mxu3  ;;  %v1503_v46 = vadd.f32 %v1457_v47, %v3273_v35 }
 0x290   : > { %v1796_v1 = vadd.f32 %v1749_v15, %v1644_v40 }
 0x292   : > { %v1945_v58 = vadd.f32 %v1898_v6, %v1796_v1 }
 0x294   : > { %1978 = vst.msk [vmem:[%s3340_s29 + $0xb0] sm:$0xff] %vm1955_vm3, %v1945_v58  ;;  %v1900_v5 = vpop.f32.mrf.mxu0 }
 0x295   : > { %v1599_v0 = vpop.f32.mrf.mxu2 }
 0x296   : > { %v1645_v9 = vadd.f32 %v1599_v0, %v1503_v46  ;;  %v1460_v14 = vpop.f32.mrf.mxu1 }
 0x297   : > { %v1751_v19 = vpop.f32.mrf.mxu3  ;;  %v1504_v63 = vadd.f32 %v1460_v14, %v3280_v39 }
 0x298   : > { %v1797_v29 = vadd.f32 %v1751_v19, %v1645_v9 }
 0x29a   : > { %v1946_v25 = vadd.f32 %v1900_v5, %v1797_v29 }
 0x29c   : > { %1979 = vst.msk [vmem:[%s3340_s29 + $0xb8] sm:$0xff] %vm1955_vm3, %v1946_v25  ;;  %v1903_v55 = vpop.f32.mrf.mxu0 }
 0x29d   : > { %v1602_v49 = vpop.f32.mrf.mxu2 }
 0x29e   : > { %v1646_v8 = vadd.f32 %v1602_v49, %v1504_v63  ;;  %v1462_v23 = vpop.f32.mrf.mxu1 }
 0x29f   : > { %v1754_v45 = vpop.f32.mrf.mxu3  ;;  %v1505_v13 = vadd.f32 %v1462_v23, %v3287_v24 }
 0x2a0   : > { %v1798_v11 = vadd.f32 %v1754_v45, %v1646_v8 }
 0x2a2   : > { %v1947_v35 = vadd.f32 %v1903_v55, %v1798_v11 }
 0x2a4   : > { %1980 = vst.msk [vmem:[%s3340_s29 + $0xc0] sm:$0xff] %vm1955_vm3, %v1947_v35  ;;  %v1905_v12 = vpop.f32.mrf.mxu0 }
 0x2a5   : > { %v1604_v50 = vpop.f32.mrf.mxu2 }
 0x2a6   : > { %v1647_v53 = vadd.f32 %v1604_v50, %v1505_v13  ;;  %v1465_v34 = vpop.f32.mrf.mxu1 }
 0x2a7   : > { %v1756_v4 = vpop.f32.mrf.mxu3  ;;  %v1506_v52 = vadd.f32 %v1465_v34, %v3294_v48 }
 0x2a8   : > { %v1799_v32 = vadd.f32 %v1756_v4, %v1647_v53 }
 0x2aa   : > { %v1948_v39 = vadd.f32 %v1905_v12, %v1799_v32 }
 0x2ac   : > { %1981 = vst.msk [vmem:[%s3340_s29 + $0xc8] sm:$0xff] %vm1955_vm3, %v1948_v39  ;;  %v1908_v57 = vpop.f32.mrf.mxu0 }
 0x2ad   : > { %v1607_v16 = vpop.f32.mrf.mxu2 }
 0x2ae   : > { %v1648_v10 = vadd.f32 %v1607_v16, %v1506_v52  ;;  %v1467_v26 = vpop.f32.mrf.mxu1 }
 0x2af   : > { %v1759_v20 = vpop.f32.mrf.mxu3  ;;  %v1507_v56 = vadd.f32 %v1467_v26, %v3301_v7 }
 0x2b0   : > { %v1800_v41 = vadd.f32 %v1759_v20, %v1648_v10 }
 0x2b2   : > { %v1949_v24 = vadd.f32 %v1908_v57, %v1800_v41 }
 0x2b4   : > { %1982 = vst.msk [vmem:[%s3340_s29 + $0xd0] sm:$0xff] %vm1955_vm3, %v1949_v24  ;;  %v1910_v51 = vpop.f32.mrf.mxu0 }
 0x2b5   : > { %v1609_v43 = vpop.f32.mrf.mxu2 }
 0x2b6   : > { %v1649_v2 = vadd.f32 %v1609_v43, %v1507_v56  ;;  %v1470_v38 = vpop.f32.mrf.mxu1 }
 0x2b7   : > { %v1761_v60 = vpop.f32.mrf.mxu3  ;;  %v1508_v37 = vadd.f32 %v1470_v38, %v3308_v36 }
 0x2b8   : > { %v1801_v17 = vadd.f32 %v1761_v60, %v1649_v2 }
 0x2ba   : > { %v1950_v48 = vadd.f32 %v1910_v51, %v1801_v17 }
 0x2bc   : > { %1983 = vst.msk [vmem:[%s3340_s29 + $0xd8] sm:$0xff] %vm1955_vm3, %v1950_v48  ;;  %v1913_v30 = vpop.f32.mrf.mxu0 }
 0x2bd   : > { %v1612_v59 = vpop.f32.mrf.mxu2 }
 0x2be   : > { %v1650_v61 = vadd.f32 %v1612_v59, %v1508_v37  ;;  %v1472_v22 = vpop.f32.mrf.mxu1 }
 0x2bf   : > { %v1764_v27 = vpop.f32.mrf.mxu3  ;;  %v1509_v3 = vadd.f32 %v1472_v22, %v3315_v62 }
 0x2c0   : > { %v1802_v54 = vadd.f32 %v1764_v27, %v1650_v61 }
 0x2c2   : > { %v1951_v7 = vadd.f32 %v1913_v30, %v1802_v54 }
 0x2c4   : > { %1984 = vst.msk [vmem:[%s3340_s29 + $0xe0] sm:$0xff] %vm1955_vm3, %v1951_v7  ;;  %v1915_v44 = vpop.f32.mrf.mxu0 }
 0x2c5   : > { %v1614_v21 = vpop.f32.mrf.mxu2 }
 0x2c6   : > { %v1651_v31 = vadd.f32 %v1614_v21, %v1509_v3  ;;  %v1475_v6 = vpop.f32.mrf.mxu1 }
 0x2c7   : > { %v1766_v18 = vpop.f32.mrf.mxu3  ;;  %v1510_v40 = vadd.f32 %v1475_v6, %v3322_v42 }
 0x2c8   : > { %v1803_v28 = vadd.f32 %v1766_v18, %v1651_v31 }
 0x2ca   : > { %v1952_v36 = vadd.f32 %v1915_v44, %v1803_v28 }
 0x2cc   : > { %1985 = vst.msk [vmem:[%s3340_s29 + $0xe8] sm:$0xff] %vm1955_vm3, %v1952_v36  ;;  %v1918_v1 = vpop.f32.mrf.mxu0 }
 0x2cd   : > { %v1617_v47 = vpop.f32.mrf.mxu2 }
 0x2ce   : > { %v1652_v15 = vadd.f32 %v1617_v47, %v1510_v40  ;;  %v1477_v5 = vpop.f32.mrf.mxu1 }
 0x2cf   : > { %v1769_v58 = vpop.f32.mrf.mxu3  ;;  %v1511_v0 = vadd.f32 %v1477_v5, %v3329_v33 }
 0x2d0   : > { %v1804_v46 = vadd.f32 %v1769_v58, %v1652_v15 }
 0x2d2   : > { %v1953_v62 = vadd.f32 %v1918_v1, %v1804_v46 }
 0x2d4   : > { %1986 = vst.msk [vmem:[%s3340_s29 + $0xf0] sm:$0xff] %vm1955_vm3, %v1953_v62  ;;  %v1920_v25 = vpop.f32.mrf.mxu0 }
 0x2d5   : > { %v1619_v9 = vpop.f32.mrf.mxu2 }
 0x2d6   : > { %v1653_v14 = vadd.f32 %v1619_v9, %v1511_v0 }
 0x2d7   : > { %v1771_v19 = vpop.f32.mrf.mxu3 }
 0x2d8   : > { %v1805_v29 = vadd.f32 %v1771_v19, %v1653_v14 }
 0x2da   : > { %v1954_v63 = vadd.f32 %v1920_v25, %v1805_v29 }
 0x2dc   : > { %1987 = vst.msk [vmem:[%s3340_s29 + $0xf8] sm:$0xff] %vm1955_vm3, %v1954_v63 }
 0x2dd PF: > { %s12_s9 = sadd.s32 1, %s2391_s9  }
 0x2de   : > { %p9_p4 = scmp.ge.s32.totalorder %s12_s9, 4  }
 0x2e0   :  { %11 = sbr.rel (!%p9_p4) target bundleno = 1 (0x1), region = 66 }

</bundles_post_ra>
